<compile_context>
chip_gen: v7x
topology: tpu7x:2x2x1
jax: 0.10.0
libtpu: 0.0.40
codegen_flags: <defaults>
</compile_context>

<pallas_src>
import jax
import jax.numpy as jnp
from jax.experimental import pallas as pl
from jax.experimental.pallas import tpu as pltpu


# ----------------------------------------------------------------------------
# Per-chip defaults (VMEM budget + matmul tile targets).
# ----------------------------------------------------------------------------
_TPU_CFG = None


def _tpu_defaults():
    global _TPU_CFG
    if _TPU_CFG is not None:
        return _TPU_CFG
    gen = 6
    try:
        kind = jax.devices()[0].device_kind.lower()
        for g in (7, 6, 5, 4, 3, 2):
            if f"v{g}" in kind:
                gen = g
                break
    except Exception:
        pass
    if gen in (5, 6):
        # v5e/v6e: 128 MiB physical VMEM -> larger tiles, higher scoped limit.
        _TPU_CFG = dict(vmem_limit=100 * 1024 * 1024,
                        tm_target=512, tn_target=1024, tk_target=1024)
    else:
        # v7x (64 MiB per TC) and anything unknown: conservative budget.
        _TPU_CFG = dict(vmem_limit=64 * 1024 * 1024,
                        tm_target=256, tn_target=512, tk_target=512)
    return _TPU_CFG


def _round_up(x, m):
    return ((x + m - 1) // m) * m


def _tile_and_pad(dim, target, align):
    """Pick (tile, padded_dim): tile is a multiple of `align`, <= ~target, and
    divides padded_dim exactly. Prefers no padding (exact divisor of dim)."""
    if dim <= max(target, align):
        padded = _round_up(dim, align)
        return padded, padded
    t = max((target // align) * align, align)
    tt = t
    while tt >= align:
        if dim % tt == 0:
            return tt, dim            # exact divisor, no padding
        tt -= align
    return t, _round_up(dim, t)       # pad up to a multiple of the target tile


# ----------------------------------------------------------------------------
# Tiled matmul + bias:  (N, K) @ (K, V) + b    (bf16 MXU inputs, f32 accum)
# Activations are cast to bf16 IN-KERNEL (free VPU slot); weights arrive bf16.
# Used for the hoisted LSTM input projection and the decoder linear.
# ----------------------------------------------------------------------------
def _matmul_bias_kernel(x_ref, w_ref, b_ref, o_ref, acc_ref):
    k = pl.program_id(2)

    @pl.when(k == 0)
    def _():
        acc_ref[...] = jnp.zeros_like(acc_ref)

    acc_ref[...] += jnp.dot(x_ref[...].astype(jnp.bfloat16), w_ref[...],
                            preferred_element_type=jnp.float32)

    @pl.when(k == pl.num_programs(2) - 1)
    def _():
        o_ref[...] = (acc_ref[...] + b_ref[...]).astype(o_ref.dtype)


def matmul_bias(x, w, b, *, out_dtype=jnp.float32):
    """out = x @ w + b. x:(N,K) f32/bf16, w:(K,V) bf16, b:(1,V) f32."""
    N, K = x.shape
    V = w.shape[-1]
    cfg = _tpu_defaults()

    tm, Np = _tile_and_pad(N, cfg["tm_target"], 8)
    tn, Vp = _tile_and_pad(V, cfg["tn_target"], 128)
    tk, Kp = _tile_and_pad(K, cfg["tk_target"], 128)

    if w.dtype != jnp.bfloat16:          # params are pre-cast; this is a no-op
        w = w.astype(jnp.bfloat16)
    if Np != N or Kp != K:
        x = jnp.pad(x, ((0, Np - N), (0, Kp - K)))
    if Kp != K or Vp != V:
        w = jnp.pad(w, ((0, Kp - K), (0, Vp - V)))
    if Vp != V:
        b = jnp.pad(b, ((0, 0), (0, Vp - V)))

    cost = pl.CostEstimate(
        flops=2 * Np * Kp * Vp,
        transcendentals=0,
        bytes_accessed=(x.dtype.itemsize * Np * Kp + 2 * Kp * Vp + 4 * Vp
                        + jnp.dtype(out_dtype).itemsize * Np * Vp))

    out = pl.pallas_call(
        _matmul_bias_kernel,
        out_shape=jax.ShapeDtypeStruct((Np, Vp), out_dtype),
        grid_spec=pltpu.PrefetchScalarGridSpec(
            num_scalar_prefetch=0,
            grid=(Np // tm, Vp // tn, Kp // tk),
            in_specs=[
                pl.BlockSpec((tm, tk), lambda i, j, k: (i, k)),
                pl.BlockSpec((tk, tn), lambda i, j, k: (k, j)),
                pl.BlockSpec((1, tn), lambda i, j, k: (0, j)),
            ],
            out_specs=pl.BlockSpec((tm, tn), lambda i, j, k: (i, j)),
            scratch_shapes=[pltpu.VMEM((tm, tn), jnp.float32)],
        ),
        compiler_params=pltpu.CompilerParams(
            dimension_semantics=("parallel", "parallel", "arbitrary"),
            vmem_limit_bytes=cfg["vmem_limit"]),
        cost_estimate=cost,
    )(x, w, b)

    if Np != N or Vp != V:
        out = out[:N, :V]
    return out


# ----------------------------------------------------------------------------
# LSTM recurrence kernel: only h_{t-1} @ W_hh + precomputed gates per step.
# Grid = (batch_blocks ["parallel"], time_chunks ["arbitrary"]).
# h/c carried in f32 VMEM scratch across time chunks; output stored bf16.
# ----------------------------------------------------------------------------
def _lstm_recurrence_kernel(gx_ref, whh_ref, h0_ref, c0_ref,
                            out_ref, hT_ref, cT_ref, h_sc, c_sc):
    t = pl.program_id(1)
    C = gx_ref.shape[0]          # chunk size (static)
    H = h_sc.shape[-1]

    @pl.when(t == 0)
    def _():
        h_sc[...] = h0_ref[...]
        c_sc[...] = c0_ref[...]

    w_hh = whh_ref[...]          # bf16 (H, 4H), VMEM-resident, hoisted load

    def step(c, carry):
        h, cell = carry          # f32 (tb, H) each
        gates = gx_ref[c].astype(jnp.float32) + jnp.dot(
            h.astype(w_hh.dtype), w_hh, preferred_element_type=jnp.float32)
        # PyTorch gate order: input, forget, cell(g), output. H is a multiple
        # of 128 in the demo, so these slices are lane-tile aligned.
        i_g = jax.nn.sigmoid(gates[:, 0 * H:1 * H])
        f_g = jax.nn.sigmoid(gates[:, 1 * H:2 * H])
        g_g = jnp.tanh(gates[:, 2 * H:3 * H])
        o_g = jax.nn.sigmoid(gates[:, 3 * H:4 * H])
        c_new = f_g * cell + i_g * g_g
        h_new = o_g * jnp.tanh(c_new)
        out_ref[c] = h_new.astype(out_ref.dtype)
        return h_new, c_new

    h_fin, c_fin = jax.lax.fori_loop(0, C, step, (h_sc[...], c_sc[...]),
                                     unroll=True)
    h_sc[...] = h_fin
    c_sc[...] = c_fin

    # Only the last time step's state matters; skip the store otherwise.
    @pl.when(t == pl.num_programs(1) - 1)
    def _():
        hT_ref[...] = h_fin
        cT_ref[...] = c_fin


def _pick_batch_tile(B):
    # Split the batch across TensorCores (v7x megacore) when it is big enough;
    # the per-block batch must stay a multiple of 8 (sublane tile).
    if B >= 16 and B % 16 == 0:
        return B // 2
    return B


def lstm_layer(gates_x, w_hh, h0, c0, *, chunk):
    """Recurrence over precomputed gates.

    gates_x: (T, B, 4H) bf16 — x @ W_ih + (b_ih + b_hh), precomputed.
    w_hh:    (H, 4H)    bf16
    h0, c0:  (B, H)     f32
    returns: out (T,B,H) bf16, hT (B,H) f32, cT (B,H) f32
    """
    T, B, H4 = gates_x.shape
    H = h0.shape[-1]
    assert H4 == 4 * H and T % chunk == 0
    n_chunks = T // chunk
    tb = _pick_batch_tile(B)
    nb = B // tb

    if w_hh.dtype != jnp.bfloat16:       # params are pre-cast; no-op normally
        w_hh = w_hh.astype(jnp.bfloat16)

    cfg = _tpu_defaults()

    # Single-buffer the grid-invariant recurrent weight once it is large
    # enough to matter for the VMEM budget (default double-buffering wastes
    # H*4H*2 bytes; critical on v7x's 64 MiB VMEM for big H).
    whh_kwargs = {}
    if H * 4 * H * 2 >= (2 << 20):
        whh_kwargs["pipeline_mode"] = pl.Buffered(1)

    cost = pl.CostEstimate(
        flops=2 * T * B * H * 4 * H + 12 * T * B * H,
        transcendentals=5 * T * B * H,
        bytes_accessed=(2 * T * B * 4 * H + 2 * H * 4 * H
                        + 2 * T * B * H + 4 * 4 * B * H))

    out_shapes = (jax.ShapeDtypeStruct((T, B, H), jnp.bfloat16),
                  jax.ShapeDtypeStruct((B, H), jnp.float32),
                  jax.ShapeDtypeStruct((B, H), jnp.float32))

    return pl.pallas_call(
        _lstm_recurrence_kernel,
        out_shape=out_shapes,
        grid_spec=pltpu.PrefetchScalarGridSpec(
            num_scalar_prefetch=0,
            grid=(nb, n_chunks),
            in_specs=[
                pl.BlockSpec((chunk, tb, 4 * H), lambda b, t: (t, b, 0)),
                pl.BlockSpec((H, 4 * H), lambda b, t: (0, 0), **whh_kwargs),
                pl.BlockSpec((tb, H), lambda b, t: (b, 0)),
                pl.BlockSpec((tb, H), lambda b, t: (b, 0)),
            ],
            out_specs=(
                pl.BlockSpec((chunk, tb, H), lambda b, t: (t, b, 0)),
                pl.BlockSpec((tb, H), lambda b, t: (b, 0)),
                pl.BlockSpec((tb, H), lambda b, t: (b, 0)),
            ),
            scratch_shapes=[pltpu.VMEM((tb, H), jnp.float32),
                            pltpu.VMEM((tb, H), jnp.float32)],
        ),
        compiler_params=pltpu.CompilerParams(
            dimension_semantics=("parallel", "arbitrary"),
            vmem_limit_bytes=cfg["vmem_limit"]),
        cost_estimate=cost,
    )(gates_x, w_hh, h0, c0)


# ----------------------------------------------------------------------------
# LMModel: parameters + forward
# ----------------------------------------------------------------------------
def init_lm_params(key, nvoc, ninput, nhid, nlayers):
    init_uniform = 0.1
    ks = jax.random.split(key, 2 + 4 * nlayers)
    params = {
        "encoder": jax.random.uniform(ks[0], (nvoc, ninput),
                                      minval=-init_uniform,
                                      maxval=init_uniform, dtype=jnp.float32),
        # MXU weights pre-cast to bf16 ONCE (no per-forward cast pass).
        "decoder_w": jax.random.uniform(ks[1], (nhid, nvoc),
                                        minval=-init_uniform,
                                        maxval=init_uniform,
                                        dtype=jnp.float32).astype(jnp.bfloat16),
        "decoder_b": jnp.zeros((1, nvoc), jnp.float32),
        "lstm": [],
    }
    stdv = 1.0 / (nhid ** 0.5)       # PyTorch LSTM default init
    for l in range(nlayers):
        in_dim = ninput if l == 0 else nhid
        k0, k1, k2, k3 = ks[2 + 4 * l: 2 + 4 * (l + 1)]
        w_ih = jax.random.uniform(k0, (in_dim, 4 * nhid),
                                  minval=-stdv, maxval=stdv, dtype=jnp.float32)
        w_hh = jax.random.uniform(k1, (nhid, 4 * nhid),
                                  minval=-stdv, maxval=stdv, dtype=jnp.float32)
        b_ih = jax.random.uniform(k2, (4 * nhid,),
                                  minval=-stdv, maxval=stdv, dtype=jnp.float32)
        b_hh = jax.random.uniform(k3, (4 * nhid,),
                                  minval=-stdv, maxval=stdv, dtype=jnp.float32)
        params["lstm"].append(
            {"w_ih": w_ih.astype(jnp.bfloat16),
             "w_hh": w_hh.astype(jnp.bfloat16),
             "bias": (b_ih + b_hh).reshape(1, 4 * nhid)})
    return params


def init_hidden(nlayers, bsz, nhid):
    return (jnp.zeros((nlayers, bsz, nhid), jnp.float32),
            jnp.zeros((nlayers, bsz, nhid), jnp.float32))


def _pick_chunk(T, target=32):
    c = min(T, target)
    while T % c:
        c -= 1
    return c


@jax.jit
def lm_forward(params, tokens, hidden):
    """tokens: (T, B) int32;  hidden: (h0, c0) each (nlayers, B, nhid)."""
    h0_all, c0_all = hidden
    nlayers = h0_all.shape[0]

    # Embedding lookup (glue) + eval-mode dropout (identity).
    x = jnp.take(params["encoder"], tokens, axis=0)          # (T, B, ninput) f32
    T, B, _ = x.shape
    chunk = _pick_chunk(T)

    h_finals, c_finals = [], []
    for l in range(nlayers):
        lp = params["lstm"][l]
        in_dim = x.shape[-1]
        # Hoisted, time-invariant input projection: one big MXU matmul
        # (M = T*B). gates_x is emitted bf16 to halve its HBM round-trip.
        gates_x = matmul_bias(x.reshape(T * B, in_dim), lp["w_ih"], lp["bias"],
                              out_dtype=jnp.bfloat16)
        gates_x = gates_x.reshape(T, B, -1)
        x, hT, cT = lstm_layer(gates_x, lp["w_hh"], h0_all[l], c0_all[l],
                               chunk=chunk)                   # x: (T,B,H) bf16
        h_finals.append(hT)
        c_finals.append(cT)

    H = x.shape[-1]
    decoded = matmul_bias(x.reshape(T * B, H),
                          params["decoder_w"], params["decoder_b"],
                          out_dtype=jnp.float32)
    decoded = decoded.reshape(T, B, -1)                       # (T, B, nvoc) f32
    return decoded, (jnp.stack(h_finals, 0), jnp.stack(c_finals, 0))


if __name__ == "__main__":
    # Small but TPU-friendly demo dims: H multiple of 128, B multiple of 8,
    # so gate slices / stores are lane- and sublane-aligned.
    nvoc, ninput, nhid, nlayers = 256, 128, 128, 2
    T, B = 16, 8

    key = jax.random.PRNGKey(0)
    kp, kt = jax.random.split(key)
    params = init_lm_params(kp, nvoc, ninput, nhid, nlayers)
    tokens = jax.random.randint(kt, (T, B), 0, nvoc, dtype=jnp.int32)
    hidden = init_hidden(nlayers, B, nhid)

    decoded, (hT, cT) = lm_forward(params, tokens, hidden)
    jax.block_until_ready((decoded, hT, cT))

    assert decoded.shape == (T, B, nvoc)
    assert hT.shape == (nlayers, B, nhid) and cT.shape == (nlayers, B, nhid)
    assert bool(jnp.all(jnp.isfinite(decoded)))
    print("KERNEL_OK")
</pallas_src>

<mosaic_0001>
module attributes {stable_mosaic.version = 11 : i64} {
  func.func @_matmul_bias_kernel(%arg0: i32, %arg1: i32, %arg2: i32, %arg3: memref<128x128xbf16, #tpu.memory_space<vmem>>, %arg4: memref<128x512xbf16, #tpu.memory_space<vmem>>, %arg5: memref<1x512xf32, #tpu.memory_space<vmem>>, %arg6: memref<128x512xbf16, #tpu.memory_space<vmem>>, %arg7: memref<128x512xf32, #tpu.memory_space<vmem>>) attributes {dimension_semantics = [#tpu.dimension_semantics<parallel>, #tpu.dimension_semantics<parallel>, #tpu.dimension_semantics<arbitrary>], iteration_bounds = array<i64: 1, 1, 1>, scalar_prefetch = 0 : i64, scratch_operands = 1 : i64, tpu.core_type = #tpu.core_type<tc>, window_params = [{transform_indices = @transform_0, window_bounds = array<i64: 128, 128>}, {transform_indices = @transform_1, window_bounds = array<i64: 128, 512>}, {transform_indices = @transform_2, window_bounds = array<i64: 1, 512>}, {transform_indices = @transform_3, window_bounds = array<i64: 128, 512>}]} {
    %c0_i32 = arith.constant 0 : i32
    %0 = arith.cmpi eq, %arg2, %c0_i32 : i32
    %1 = arith.extui %0 : i1 to i32
    %c0_i32_0 = arith.constant 0 : i32
    %2 = arith.cmpi ne, %1, %c0_i32_0 : i32
    scf.if %2 {
      %cst_10 = arith.constant 0.000000e+00 : f32
      %12 = vector.broadcast %cst_10 : f32 to vector<128x512xf32>
      %c0_11 = arith.constant 0 : index
      %c0_12 = arith.constant 0 : index
      %13 = vector.load %arg7[%c0_11, %c0_12] : memref<128x512xf32, #tpu.memory_space<vmem>>, vector<128x512xf32>
      tpu.vector_store %arg7[%c0_11, %c0_12], %12 {strides = array<i32>} : memref<128x512xf32, #tpu.memory_space<vmem>>, vector<128x512xf32>,
    } else {
    }
    %c0 = arith.constant 0 : index
    %c0_1 = arith.constant 0 : index
    %3 = vector.load %arg7[%c0, %c0_1] : memref<128x512xf32, #tpu.memory_space<vmem>>, vector<128x512xf32>
    %c0_2 = arith.constant 0 : index
    %c0_3 = arith.constant 0 : index
    %4 = vector.load %arg3[%c0_2, %c0_3] : memref<128x128xbf16, #tpu.memory_space<vmem>>, vector<128x128xbf16>
    %c0_4 = arith.constant 0 : index
    %c0_5 = arith.constant 0 : index
    %5 = vector.load %arg4[%c0_4, %c0_5] : memref<128x512xbf16, #tpu.memory_space<vmem>>, vector<128x512xbf16>
    %cst = arith.constant dense<0.000000e+00> : vector<128x512xf32>
    %6 = tpu.matmul %4, %5, %cst {dimension_numbers = #tpu.dot_dimension_numbers<[1], [0], [0], [1], [0, 0, 1, 1], [], []>} : vector<128x128xbf16>, vector<128x512xbf16>, vector<128x512xf32> -> vector<128x512xf32>
    %7 = arith.addf %3, %6 : vector<128x512xf32>
    %c0_6 = arith.constant 0 : index
    %c0_7 = arith.constant 0 : index
    %8 = vector.load %arg7[%c0_6, %c0_7] : memref<128x512xf32, #tpu.memory_space<vmem>>, vector<128x512xf32>
    tpu.vector_store %arg7[%c0_6, %c0_7], %7 {strides = array<i32>} : memref<128x512xf32, #tpu.memory_space<vmem>>, vector<128x512xf32>,
    %c0_i32_8 = arith.constant 0 : i32
    %9 = arith.cmpi eq, %arg2, %c0_i32_8 : i32
    %10 = arith.extui %9 : i1 to i32
    %c0_i32_9 = arith.constant 0 : i32
    %11 = arith.cmpi ne, %10, %c0_i32_9 : i32
    scf.if %11 {
      %c0_10 = arith.constant 0 : index
      %c0_11 = arith.constant 0 : index
      %12 = vector.load %arg7[%c0_10, %c0_11] : memref<128x512xf32, #tpu.memory_space<vmem>>, vector<128x512xf32>
      %c0_12 = arith.constant 0 : index
      %c0_13 = arith.constant 0 : index
      %13 = vector.load %arg5[%c0_12, %c0_13] : memref<1x512xf32, #tpu.memory_space<vmem>>, vector<1x512xf32>
      %14 = vector.broadcast %13 : vector<1x512xf32> to vector<128x512xf32>
      %15 = arith.addf %12, %14 : vector<128x512xf32>
      %16 = arith.truncf %15 : vector<128x512xf32> to vector<128x512xbf16>
      %c0_14 = arith.constant 0 : index
      %c0_15 = arith.constant 0 : index
      %17 = vector.load %arg6[%c0_14, %c0_15] : memref<128x512xbf16, #tpu.memory_space<vmem>>, vector<128x512xbf16>
      tpu.vector_store %arg6[%c0_14, %c0_15], %16 {strides = array<i32>} : memref<128x512xbf16, #tpu.memory_space<vmem>>, vector<128x512xbf16>,
    } else {
    }
    return
  }
  func.func @transform_0(%arg0: i32, %arg1: i32, %arg2: i32) -> (i32, i32) {
    %c0_i32 = arith.constant 0 : i32
    return %arg0, %arg2 : i32, i32
  }
  func.func @transform_1(%arg0: i32, %arg1: i32, %arg2: i32) -> (i32, i32) {
    %c0_i32 = arith.constant 0 : i32
    return %arg2, %arg1 : i32, i32
  }
  func.func @transform_2(%arg0: i32, %arg1: i32, %arg2: i32) -> (i32, i32) {
    %c0_i32 = arith.constant 0 : i32
    %c0_i32_0 = arith.constant 0 : i32
    return %c0_i32, %arg1 : i32, i32
  }
  func.func @transform_3(%arg0: i32, %arg1: i32, %arg2: i32) -> (i32, i32) {
    %c0_i32 = arith.constant 0 : i32
    return %arg0, %arg1 : i32, i32
  }
}

module attributes {stable_mosaic.version = 11 : i64} {
  func.func @_matmul_bias_kernel(%arg0: i32, %arg1: i32, %arg2: i32, %arg3: memref<128x128xf32, #tpu.memory_space<vmem>>, %arg4: memref<128x512xbf16, #tpu.memory_space<vmem>>, %arg5: memref<1x512xf32, #tpu.memory_space<vmem>>, %arg6: memref<128x512xbf16, #tpu.memory_space<vmem>>, %arg7: memref<128x512xf32, #tpu.memory_space<vmem>>) attributes {dimension_semantics = [#tpu.dimension_semantics<parallel>, #tpu.dimension_semantics<parallel>, #tpu.dimension_semantics<arbitrary>], iteration_bounds = array<i64: 1, 1, 1>, scalar_prefetch = 0 : i64, scratch_operands = 1 : i64, tpu.core_type = #tpu.core_type<tc>, window_params = [{transform_indices = @transform_0, window_bounds = array<i64: 128, 128>}, {transform_indices = @transform_1, window_bounds = array<i64: 128, 512>}, {transform_indices = @transform_2, window_bounds = array<i64: 1, 512>}, {transform_indices = @transform_3, window_bounds = array<i64: 128, 512>}]} {
    %c0_i32 = arith.constant 0 : i32
    %0 = arith.cmpi eq, %arg2, %c0_i32 : i32
    %1 = arith.extui %0 : i1 to i32
    %c0_i32_0 = arith.constant 0 : i32
    %2 = arith.cmpi ne, %1, %c0_i32_0 : i32
    scf.if %2 {
      %cst_10 = arith.constant 0.000000e+00 : f32
      %13 = vector.broadcast %cst_10 : f32 to vector<128x512xf32>
      %c0_11 = arith.constant 0 : index
      %c0_12 = arith.constant 0 : index
      %14 = vector.load %arg7[%c0_11, %c0_12] : memref<128x512xf32, #tpu.memory_space<vmem>>, vector<128x512xf32>
      tpu.vector_store %arg7[%c0_11, %c0_12], %13 {strides = array<i32>} : memref<128x512xf32, #tpu.memory_space<vmem>>, vector<128x512xf32>,
    } else {
    }
    %c0 = arith.constant 0 : index
    %c0_1 = arith.constant 0 : index
    %3 = vector.load %arg7[%c0, %c0_1] : memref<128x512xf32, #tpu.memory_space<vmem>>, vector<128x512xf32>
    %c0_2 = arith.constant 0 : index
    %c0_3 = arith.constant 0 : index
    %4 = vector.load %arg3[%c0_2, %c0_3] : memref<128x128xf32, #tpu.memory_space<vmem>>, vector<128x128xf32>
    %5 = arith.truncf %4 : vector<128x128xf32> to vector<128x128xbf16>
    %c0_4 = arith.constant 0 : index
    %c0_5 = arith.constant 0 : index
    %6 = vector.load %arg4[%c0_4, %c0_5] : memref<128x512xbf16, #tpu.memory_space<vmem>>, vector<128x512xbf16>
    %cst = arith.constant dense<0.000000e+00> : vector<128x512xf32>
    %7 = tpu.matmul %5, %6, %cst {dimension_numbers = #tpu.dot_dimension_numbers<[1], [0], [0], [1], [0, 0, 1, 1], [], []>} : vector<128x128xbf16>, vector<128x512xbf16>, vector<128x512xf32> -> vector<128x512xf32>
    %8 = arith.addf %3, %7 : vector<128x512xf32>
    %c0_6 = arith.constant 0 : index
    %c0_7 = arith.constant 0 : index
    %9 = vector.load %arg7[%c0_6, %c0_7] : memref<128x512xf32, #tpu.memory_space<vmem>>, vector<128x512xf32>
    tpu.vector_store %arg7[%c0_6, %c0_7], %8 {strides = array<i32>} : memref<128x512xf32, #tpu.memory_space<vmem>>, vector<128x512xf32>,
    %c0_i32_8 = arith.constant 0 : i32
    %10 = arith.cmpi eq, %arg2, %c0_i32_8 : i32
    %11 = arith.extui %10 : i1 to i32
    %c0_i32_9 = arith.constant 0 : i32
    %12 = arith.cmpi ne, %11, %c0_i32_9 : i32
    scf.if %12 {
      %c0_10 = arith.constant 0 : index
      %c0_11 = arith.constant 0 : index
      %13 = vector.load %arg7[%c0_10, %c0_11] : memref<128x512xf32, #tpu.memory_space<vmem>>, vector<128x512xf32>
      %c0_12 = arith.constant 0 : index
      %c0_13 = arith.constant 0 : index
      %14 = vector.load %arg5[%c0_12, %c0_13] : memref<1x512xf32, #tpu.memory_space<vmem>>, vector<1x512xf32>
      %15 = vector.broadcast %14 : vector<1x512xf32> to vector<128x512xf32>
      %16 = arith.addf %13, %15 : vector<128x512xf32>
      %17 = arith.truncf %16 : vector<128x512xf32> to vector<128x512xbf16>
      %c0_14 = arith.constant 0 : index
      %c0_15 = arith.constant 0 : index
      %18 = vector.load %arg6[%c0_14, %c0_15] : memref<128x512xbf16, #tpu.memory_space<vmem>>, vector<128x512xbf16>
      tpu.vector_store %arg6[%c0_14, %c0_15], %17 {strides = array<i32>} : memref<128x512xbf16, #tpu.memory_space<vmem>>, vector<128x512xbf16>,
    } else {
    }
    return
  }
  func.func @transform_0(%arg0: i32, %arg1: i32, %arg2: i32) -> (i32, i32) {
    %c0_i32 = arith.constant 0 : i32
    return %arg0, %arg2 : i32, i32
  }
  func.func @transform_1(%arg0: i32, %arg1: i32, %arg2: i32) -> (i32, i32) {
    %c0_i32 = arith.constant 0 : i32
    return %arg2, %arg1 : i32, i32
  }
  func.func @transform_2(%arg0: i32, %arg1: i32, %arg2: i32) -> (i32, i32) {
    %c0_i32 = arith.constant 0 : i32
    %c0_i32_0 = arith.constant 0 : i32
    return %c0_i32, %arg1 : i32, i32
  }
  func.func @transform_3(%arg0: i32, %arg1: i32, %arg2: i32) -> (i32, i32) {
    %c0_i32 = arith.constant 0 : i32
    return %arg0, %arg1 : i32, i32
  }
}

module attributes {stable_mosaic.version = 11 : i64} {
  func.func @_matmul_bias_kernel(%arg0: i32, %arg1: i32, %arg2: i32, %arg3: memref<128x128xbf16, #tpu.memory_space<vmem>>, %arg4: memref<128x256xbf16, #tpu.memory_space<vmem>>, %arg5: memref<1x256xf32, #tpu.memory_space<vmem>>, %arg6: memref<128x256xf32, #tpu.memory_space<vmem>>, %arg7: memref<128x256xf32, #tpu.memory_space<vmem>>) attributes {dimension_semantics = [#tpu.dimension_semantics<parallel>, #tpu.dimension_semantics<parallel>, #tpu.dimension_semantics<arbitrary>], iteration_bounds = array<i64: 1, 1, 1>, scalar_prefetch = 0 : i64, scratch_operands = 1 : i64, tpu.core_type = #tpu.core_type<tc>, window_params = [{transform_indices = @transform_0, window_bounds = array<i64: 128, 128>}, {transform_indices = @transform_1, window_bounds = array<i64: 128, 256>}, {transform_indices = @transform_2, window_bounds = array<i64: 1, 256>}, {transform_indices = @transform_3, window_bounds = array<i64: 128, 256>}]} {
    %c0_i32 = arith.constant 0 : i32
    %0 = arith.cmpi eq, %arg2, %c0_i32 : i32
    %1 = arith.extui %0 : i1 to i32
    %c0_i32_0 = arith.constant 0 : i32
    %2 = arith.cmpi ne, %1, %c0_i32_0 : i32
    scf.if %2 {
      %cst_10 = arith.constant 0.000000e+00 : f32
      %12 = vector.broadcast %cst_10 : f32 to vector<128x256xf32>
      %c0_11 = arith.constant 0 : index
      %c0_12 = arith.constant 0 : index
      %13 = vector.load %arg7[%c0_11, %c0_12] : memref<128x256xf32, #tpu.memory_space<vmem>>, vector<128x256xf32>
      tpu.vector_store %arg7[%c0_11, %c0_12], %12 {strides = array<i32>} : memref<128x256xf32, #tpu.memory_space<vmem>>, vector<128x256xf32>,
    } else {
    }
    %c0 = arith.constant 0 : index
    %c0_1 = arith.constant 0 : index
    %3 = vector.load %arg7[%c0, %c0_1] : memref<128x256xf32, #tpu.memory_space<vmem>>, vector<128x256xf32>
    %c0_2 = arith.constant 0 : index
    %c0_3 = arith.constant 0 : index
    %4 = vector.load %arg3[%c0_2, %c0_3] : memref<128x128xbf16, #tpu.memory_space<vmem>>, vector<128x128xbf16>
    %c0_4 = arith.constant 0 : index
    %c0_5 = arith.constant 0 : index
    %5 = vector.load %arg4[%c0_4, %c0_5] : memref<128x256xbf16, #tpu.memory_space<vmem>>, vector<128x256xbf16>
    %cst = arith.constant dense<0.000000e+00> : vector<128x256xf32>
    %6 = tpu.matmul %4, %5, %cst {dimension_numbers = #tpu.dot_dimension_numbers<[1], [0], [0], [1], [0, 0, 1, 1], [], []>} : vector<128x128xbf16>, vector<128x256xbf16>, vector<128x256xf32> -> vector<128x256xf32>
    %7 = arith.addf %3, %6 : vector<128x256xf32>
    %c0_6 = arith.constant 0 : index
    %c0_7 = arith.constant 0 : index
    %8 = vector.load %arg7[%c0_6, %c0_7] : memref<128x256xf32, #tpu.memory_space<vmem>>, vector<128x256xf32>
    tpu.vector_store %arg7[%c0_6, %c0_7], %7 {strides = array<i32>} : memref<128x256xf32, #tpu.memory_space<vmem>>, vector<128x256xf32>,
    %c0_i32_8 = arith.constant 0 : i32
    %9 = arith.cmpi eq, %arg2, %c0_i32_8 : i32
    %10 = arith.extui %9 : i1 to i32
    %c0_i32_9 = arith.constant 0 : i32
    %11 = arith.cmpi ne, %10, %c0_i32_9 : i32
    scf.if %11 {
      %c0_10 = arith.constant 0 : index
      %c0_11 = arith.constant 0 : index
      %12 = vector.load %arg7[%c0_10, %c0_11] : memref<128x256xf32, #tpu.memory_space<vmem>>, vector<128x256xf32>
      %c0_12 = arith.constant 0 : index
      %c0_13 = arith.constant 0 : index
      %13 = vector.load %arg5[%c0_12, %c0_13] : memref<1x256xf32, #tpu.memory_space<vmem>>, vector<1x256xf32>
      %14 = vector.broadcast %13 : vector<1x256xf32> to vector<128x256xf32>
      %15 = arith.addf %12, %14 : vector<128x256xf32>
      %c0_14 = arith.constant 0 : index
      %c0_15 = arith.constant 0 : index
      %16 = vector.load %arg6[%c0_14, %c0_15] : memref<128x256xf32, #tpu.memory_space<vmem>>, vector<128x256xf32>
      tpu.vector_store %arg6[%c0_14, %c0_15], %15 {strides = array<i32>} : memref<128x256xf32, #tpu.memory_space<vmem>>, vector<128x256xf32>,
    } else {
    }
    return
  }
  func.func @transform_0(%arg0: i32, %arg1: i32, %arg2: i32) -> (i32, i32) {
    %c0_i32 = arith.constant 0 : i32
    return %arg0, %arg2 : i32, i32
  }
  func.func @transform_1(%arg0: i32, %arg1: i32, %arg2: i32) -> (i32, i32) {
    %c0_i32 = arith.constant 0 : i32
    return %arg2, %arg1 : i32, i32
  }
  func.func @transform_2(%arg0: i32, %arg1: i32, %arg2: i32) -> (i32, i32) {
    %c0_i32 = arith.constant 0 : i32
    %c0_i32_0 = arith.constant 0 : i32
    return %c0_i32, %arg1 : i32, i32
  }
  func.func @transform_3(%arg0: i32, %arg1: i32, %arg2: i32) -> (i32, i32) {
    %c0_i32 = arith.constant 0 : i32
    return %arg0, %arg1 : i32, i32
  }
}

module attributes {stable_mosaic.version = 11 : i64} {
  func.func @_lstm_recurrence_kernel(%arg0: i32, %arg1: i32, %arg2: memref<16x8x512xbf16, #tpu.memory_space<vmem>>, %arg3: memref<128x512xbf16, #tpu.memory_space<vmem>>, %arg4: memref<8x128xf32, #tpu.memory_space<vmem>>, %arg5: memref<8x128xf32, #tpu.memory_space<vmem>>, %arg6: memref<16x8x128xbf16, #tpu.memory_space<vmem>>, %arg7: memref<8x128xf32, #tpu.memory_space<vmem>>, %arg8: memref<8x128xf32, #tpu.memory_space<vmem>>, %arg9: memref<8x128xf32, #tpu.memory_space<vmem>>, %arg10: memref<8x128xf32, #tpu.memory_space<vmem>>) attributes {dimension_semantics = [#tpu.dimension_semantics<parallel>, #tpu.dimension_semantics<arbitrary>], iteration_bounds = array<i64: 1, 1>, scalar_prefetch = 0 : i64, scratch_operands = 2 : i64, tpu.core_type = #tpu.core_type<tc>, window_params = [{transform_indices = @transform_0, window_bounds = array<i64: 16, 8, 512>}, {pipeline_mode = #tpu.pipeline_mode<synchronous>, transform_indices = @transform_1, window_bounds = array<i64: 128, 512>}, {transform_indices = @transform_2, window_bounds = array<i64: 8, 128>}, {transform_indices = @transform_3, window_bounds = array<i64: 8, 128>}, {transform_indices = @transform_4, window_bounds = array<i64: 16, 8, 128>}, {transform_indices = @transform_5, window_bounds = array<i64: 8, 128>}, {transform_indices = @transform_6, window_bounds = array<i64: 8, 128>}]} {
    %c0_i32 = arith.constant 0 : i32
    %0 = arith.cmpi eq, %arg1, %c0_i32 : i32
    %1 = arith.extui %0 : i1 to i32
    %c0_i32_0 = arith.constant 0 : i32
    %2 = arith.cmpi ne, %1, %c0_i32_0 : i32
    scf.if %2 {
      %c0_140 = arith.constant 0 : index
      %c0_141 = arith.constant 0 : index
      %603 = vector.load %arg4[%c0_140, %c0_141] : memref<8x128xf32, #tpu.memory_space<vmem>>, vector<8x128xf32>
      %c0_142 = arith.constant 0 : index
      %c0_143 = arith.constant 0 : index
      %604 = vector.load %arg9[%c0_142, %c0_143] : memref<8x128xf32, #tpu.memory_space<vmem>>, vector<8x128xf32>
      tpu.vector_store %arg9[%c0_142, %c0_143], %603 {strides = array<i32>} : memref<8x128xf32, #tpu.memory_space<vmem>>, vector<8x128xf32>,
      %c0_144 = arith.constant 0 : index
      %c0_145 = arith.constant 0 : index
      %605 = vector.load %arg5[%c0_144, %c0_145] : memref<8x128xf32, #tpu.memory_space<vmem>>, vector<8x128xf32>
      %c0_146 = arith.constant 0 : index
      %c0_147 = arith.constant 0 : index
      %606 = vector.load %arg10[%c0_146, %c0_147] : memref<8x128xf32, #tpu.memory_space<vmem>>, vector<8x128xf32>
      tpu.vector_store %arg10[%c0_146, %c0_147], %605 {strides = array<i32>} : memref<8x128xf32, #tpu.memory_space<vmem>>, vector<8x128xf32>,
    } else {
    }
    %c0 = arith.constant 0 : index
    %c0_1 = arith.constant 0 : index
    %3 = vector.load %arg3[%c0, %c0_1] : memref<128x512xbf16, #tpu.memory_space<vmem>>, vector<128x512xbf16>
    %c0_2 = arith.constant 0 : index
    %c0_3 = arith.constant 0 : index
    %4 = vector.load %arg9[%c0_2, %c0_3] : memref<8x128xf32, #tpu.memory_space<vmem>>, vector<8x128xf32>
    %c0_4 = arith.constant 0 : index
    %c0_5 = arith.constant 0 : index
    %5 = vector.load %arg10[%c0_4, %c0_5] : memref<8x128xf32, #tpu.memory_space<vmem>>, vector<8x128xf32>
    %c0_i32_6 = arith.constant 0 : i32
    %6 = arith.index_cast %c0_i32_6 : i32 to index
    %c0_7 = arith.constant 0 : index
    %c0_8 = arith.constant 0 : index
    %7 = vector.load %arg2[%6, %c0_7, %c0_8] : memref<16x8x512xbf16, #tpu.memory_space<vmem>>, vector<1x8x512xbf16>
    %8 = vector.shape_cast %7 : vector<1x8x512xbf16> to vector<8x512xbf16>
    %9 = arith.extf %8 : vector<8x512xbf16> to vector<8x512xf32>
    %10 = arith.truncf %4 : vector<8x128xf32> to vector<8x128xbf16>
    %cst = arith.constant dense<0.000000e+00> : vector<8x512xf32>
    %11 = tpu.matmul %10, %3, %cst {dimension_numbers = #tpu.dot_dimension_numbers<[1], [0], [0], [1], [0, 0, 1, 1], [], []>} : vector<8x128xbf16>, vector<128x512xbf16>, vector<8x512xf32> -> vector<8x512xf32>
    %12 = arith.addf %9, %11 : vector<8x512xf32>
    %13 = vector.extract_strided_slice %12 {offsets = [0, 0], sizes = [8, 128], strides = [1, 1]} : vector<8x512xf32> to vector<8x128xf32>
    %14 = arith.negf %13 : vector<8x128xf32>
    %15 = math.exp %14 : vector<8x128xf32>
    %cst_9 = arith.constant 1.000000e+00 : f32
    %16 = vector.broadcast %cst_9 : f32 to vector<8x128xf32>
    %17 = arith.addf %16, %15 : vector<8x128xf32>
    %18 = arith.divf %16, %17 : vector<8x128xf32>
    %19 = vector.extract_strided_slice %12 {offsets = [0, 128], sizes = [8, 128], strides = [1, 1]} : vector<8x512xf32> to vector<8x128xf32>
    %20 = arith.negf %19 : vector<8x128xf32>
    %21 = math.exp %20 : vector<8x128xf32>
    %cst_10 = arith.constant 1.000000e+00 : f32
    %22 = vector.broadcast %cst_10 : f32 to vector<8x128xf32>
    %23 = arith.addf %22, %21 : vector<8x128xf32>
    %24 = arith.divf %22, %23 : vector<8x128xf32>
    %25 = vector.extract_strided_slice %12 {offsets = [0, 256], sizes = [8, 128], strides = [1, 1]} : vector<8x512xf32> to vector<8x128xf32>
    %26 = math.tanh %25 : vector<8x128xf32>
    %27 = vector.extract_strided_slice %12 {offsets = [0, 384], sizes = [8, 128], strides = [1, 1]} : vector<8x512xf32> to vector<8x128xf32>
    %28 = arith.negf %27 : vector<8x128xf32>
    %29 = math.exp %28 : vector<8x128xf32>
    %cst_11 = arith.constant 1.000000e+00 : f32
    %30 = vector.broadcast %cst_11 : f32 to vector<8x128xf32>
    %31 = arith.addf %30, %29 : vector<8x128xf32>
    %32 = arith.divf %30, %31 : vector<8x128xf32>
    %33 = arith.mulf %24, %5 : vector<8x128xf32>
    %34 = arith.mulf %18, %26 : vector<8x128xf32>
    %35 = arith.addf %33, %34 : vector<8x128xf32>
    %36 = math.tanh %35 : vector<8x128xf32>
    %37 = arith.mulf %32, %36 : vector<8x128xf32>
    %38 = arith.truncf %37 : vector<8x128xf32> to vector<8x128xbf16>
    %39 = arith.index_cast %c0_i32_6 : i32 to index
    %c0_12 = arith.constant 0 : index
    %c0_13 = arith.constant 0 : index
    %40 = vector.load %arg6[%39, %c0_12, %c0_13] : memref<16x8x128xbf16, #tpu.memory_space<vmem>>, vector<1x8x128xbf16>
    %41 = vector.shape_cast %40 : vector<1x8x128xbf16> to vector<8x128xbf16>
    %42 = vector.shape_cast %38 : vector<8x128xbf16> to vector<1x8x128xbf16>
    tpu.vector_store %arg6[%39, %c0_12, %c0_13], %42 {strides = array<i32>} : memref<16x8x128xbf16, #tpu.memory_space<vmem>>, vector<1x8x128xbf16>,
    %c1_i32 = arith.constant 1 : i32
    %43 = arith.index_cast %c1_i32 : i32 to index
    %c0_14 = arith.constant 0 : index
    %c0_15 = arith.constant 0 : index
    %44 = vector.load %arg2[%43, %c0_14, %c0_15] : memref<16x8x512xbf16, #tpu.memory_space<vmem>>, vector<1x8x512xbf16>
    %45 = vector.shape_cast %44 : vector<1x8x512xbf16> to vector<8x512xbf16>
    %46 = arith.extf %45 : vector<8x512xbf16> to vector<8x512xf32>
    %47 = arith.truncf %37 : vector<8x128xf32> to vector<8x128xbf16>
    %cst_16 = arith.constant dense<0.000000e+00> : vector<8x512xf32>
    %48 = tpu.matmul %47, %3, %cst_16 {dimension_numbers = #tpu.dot_dimension_numbers<[1], [0], [0], [1], [0, 0, 1, 1], [], []>} : vector<8x128xbf16>, vector<128x512xbf16>, vector<8x512xf32> -> vector<8x512xf32>
    %49 = arith.addf %46, %48 : vector<8x512xf32>
    %50 = vector.extract_strided_slice %49 {offsets = [0, 0], sizes = [8, 128], strides = [1, 1]} : vector<8x512xf32> to vector<8x128xf32>
    %51 = arith.negf %50 : vector<8x128xf32>
    %52 = math.exp %51 : vector<8x128xf32>
    %cst_17 = arith.constant 1.000000e+00 : f32
    %53 = vector.broadcast %cst_17 : f32 to vector<8x128xf32>
    %54 = arith.addf %53, %52 : vector<8x128xf32>
    %55 = arith.divf %53, %54 : vector<8x128xf32>
    %56 = vector.extract_strided_slice %49 {offsets = [0, 128], sizes = [8, 128], strides = [1, 1]} : vector<8x512xf32> to vector<8x128xf32>
    %57 = arith.negf %56 : vector<8x128xf32>
    %58 = math.exp %57 : vector<8x128xf32>
    %cst_18 = arith.constant 1.000000e+00 : f32
    %59 = vector.broadcast %cst_18 : f32 to vector<8x128xf32>
    %60 = arith.addf %59, %58 : vector<8x128xf32>
    %61 = arith.divf %59, %60 : vector<8x128xf32>
    %62 = vector.extract_strided_slice %49 {offsets = [0, 256], sizes = [8, 128], strides = [1, 1]} : vector<8x512xf32> to vector<8x128xf32>
    %63 = math.tanh %62 : vector<8x128xf32>
    %64 = vector.extract_strided_slice %49 {offsets = [0, 384], sizes = [8, 128], strides = [1, 1]} : vector<8x512xf32> to vector<8x128xf32>
    %65 = arith.negf %64 : vector<8x128xf32>
    %66 = math.exp %65 : vector<8x128xf32>
    %cst_19 = arith.constant 1.000000e+00 : f32
    %67 = vector.broadcast %cst_19 : f32 to vector<8x128xf32>
    %68 = arith.addf %67, %66 : vector<8x128xf32>
    %69 = arith.divf %67, %68 : vector<8x128xf32>
    %70 = arith.mulf %61, %35 : vector<8x128xf32>
    %71 = arith.mulf %55, %63 : vector<8x128xf32>
    %72 = arith.addf %70, %71 : vector<8x128xf32>
    %73 = math.tanh %72 : vector<8x128xf32>
    %74 = arith.mulf %69, %73 : vector<8x128xf32>
    %75 = arith.truncf %74 : vector<8x128xf32> to vector<8x128xbf16>
    %76 = arith.index_cast %c1_i32 : i32 to index
    %c0_20 = arith.constant 0 : index
    %c0_21 = arith.constant 0 : index
    %77 = vector.load %arg6[%76, %c0_20, %c0_21] : memref<16x8x128xbf16, #tpu.memory_space<vmem>>, vector<1x8x128xbf16>
    %78 = vector.shape_cast %77 : vector<1x8x128xbf16> to vector<8x128xbf16>
    %79 = vector.shape_cast %75 : vector<8x128xbf16> to vector<1x8x128xbf16>
    tpu.vector_store %arg6[%76, %c0_20, %c0_21], %79 {strides = array<i32>} : memref<16x8x128xbf16, #tpu.memory_space<vmem>>, vector<1x8x128xbf16>,
    %c2_i32 = arith.constant 2 : i32
    %80 = arith.index_cast %c2_i32 : i32 to index
    %c0_22 = arith.constant 0 : index
    %c0_23 = arith.constant 0 : index
    %81 = vector.load %arg2[%80, %c0_22, %c0_23] : memref<16x8x512xbf16, #tpu.memory_space<vmem>>, vector<1x8x512xbf16>
    %82 = vector.shape_cast %81 : vector<1x8x512xbf16> to vector<8x512xbf16>
    %83 = arith.extf %82 : vector<8x512xbf16> to vector<8x512xf32>
    %84 = arith.truncf %74 : vector<8x128xf32> to vector<8x128xbf16>
    %cst_24 = arith.constant dense<0.000000e+00> : vector<8x512xf32>
    %85 = tpu.matmul %84, %3, %cst_24 {dimension_numbers = #tpu.dot_dimension_numbers<[1], [0], [0], [1], [0, 0, 1, 1], [], []>} : vector<8x128xbf16>, vector<128x512xbf16>, vector<8x512xf32> -> vector<8x512xf32>
    %86 = arith.addf %83, %85 : vector<8x512xf32>
    %87 = vector.extract_strided_slice %86 {offsets = [0, 0], sizes = [8, 128], strides = [1, 1]} : vector<8x512xf32> to vector<8x128xf32>
    %88 = arith.negf %87 : vector<8x128xf32>
    %89 = math.exp %88 : vector<8x128xf32>
    %cst_25 = arith.constant 1.000000e+00 : f32
    %90 = vector.broadcast %cst_25 : f32 to vector<8x128xf32>
    %91 = arith.addf %90, %89 : vector<8x128xf32>
    %92 = arith.divf %90, %91 : vector<8x128xf32>
    %93 = vector.extract_strided_slice %86 {offsets = [0, 128], sizes = [8, 128], strides = [1, 1]} : vector<8x512xf32> to vector<8x128xf32>
    %94 = arith.negf %93 : vector<8x128xf32>
    %95 = math.exp %94 : vector<8x128xf32>
    %cst_26 = arith.constant 1.000000e+00 : f32
    %96 = vector.broadcast %cst_26 : f32 to vector<8x128xf32>
    %97 = arith.addf %96, %95 : vector<8x128xf32>
    %98 = arith.divf %96, %97 : vector<8x128xf32>
    %99 = vector.extract_strided_slice %86 {offsets = [0, 256], sizes = [8, 128], strides = [1, 1]} : vector<8x512xf32> to vector<8x128xf32>
    %100 = math.tanh %99 : vector<8x128xf32>
    %101 = vector.extract_strided_slice %86 {offsets = [0, 384], sizes = [8, 128], strides = [1, 1]} : vector<8x512xf32> to vector<8x128xf32>
    %102 = arith.negf %101 : vector<8x128xf32>
    %103 = math.exp %102 : vector<8x128xf32>
    %cst_27 = arith.constant 1.000000e+00 : f32
    %104 = vector.broadcast %cst_27 : f32 to vector<8x128xf32>
    %105 = arith.addf %104, %103 : vector<8x128xf32>
    %106 = arith.divf %104, %105 : vector<8x128xf32>
    %107 = arith.mulf %98, %72 : vector<8x128xf32>
    %108 = arith.mulf %92, %100 : vector<8x128xf32>
    %109 = arith.addf %107, %108 : vector<8x128xf32>
    %110 = math.tanh %109 : vector<8x128xf32>
    %111 = arith.mulf %106, %110 : vector<8x128xf32>
    %112 = arith.truncf %111 : vector<8x128xf32> to vector<8x128xbf16>
    %113 = arith.index_cast %c2_i32 : i32 to index
    %c0_28 = arith.constant 0 : index
    %c0_29 = arith.constant 0 : index
    %114 = vector.load %arg6[%113, %c0_28, %c0_29] : memref<16x8x128xbf16, #tpu.memory_space<vmem>>, vector<1x8x128xbf16>
    %115 = vector.shape_cast %114 : vector<1x8x128xbf16> to vector<8x128xbf16>
    %116 = vector.shape_cast %112 : vector<8x128xbf16> to vector<1x8x128xbf16>
    tpu.vector_store %arg6[%113, %c0_28, %c0_29], %116 {strides = array<i32>} : memref<16x8x128xbf16, #tpu.memory_space<vmem>>, vector<1x8x128xbf16>,
    %c3_i32 = arith.constant 3 : i32
    %117 = arith.index_cast %c3_i32 : i32 to index
    %c0_30 = arith.constant 0 : index
    %c0_31 = arith.constant 0 : index
    %118 = vector.load %arg2[%117, %c0_30, %c0_31] : memref<16x8x512xbf16, #tpu.memory_space<vmem>>, vector<1x8x512xbf16>
    %119 = vector.shape_cast %118 : vector<1x8x512xbf16> to vector<8x512xbf16>
    %120 = arith.extf %119 : vector<8x512xbf16> to vector<8x512xf32>
    %121 = arith.truncf %111 : vector<8x128xf32> to vector<8x128xbf16>
    %cst_32 = arith.constant dense<0.000000e+00> : vector<8x512xf32>
    %122 = tpu.matmul %121, %3, %cst_32 {dimension_numbers = #tpu.dot_dimension_numbers<[1], [0], [0], [1], [0, 0, 1, 1], [], []>} : vector<8x128xbf16>, vector<128x512xbf16>, vector<8x512xf32> -> vector<8x512xf32>
    %123 = arith.addf %120, %122 : vector<8x512xf32>
    %124 = vector.extract_strided_slice %123 {offsets = [0, 0], sizes = [8, 128], strides = [1, 1]} : vector<8x512xf32> to vector<8x128xf32>
    %125 = arith.negf %124 : vector<8x128xf32>
    %126 = math.exp %125 : vector<8x128xf32>
    %cst_33 = arith.constant 1.000000e+00 : f32
    %127 = vector.broadcast %cst_33 : f32 to vector<8x128xf32>
    %128 = arith.addf %127, %126 : vector<8x128xf32>
    %129 = arith.divf %127, %128 : vector<8x128xf32>
    %130 = vector.extract_strided_slice %123 {offsets = [0, 128], sizes = [8, 128], strides = [1, 1]} : vector<8x512xf32> to vector<8x128xf32>
    %131 = arith.negf %130 : vector<8x128xf32>
    %132 = math.exp %131 : vector<8x128xf32>
    %cst_34 = arith.constant 1.000000e+00 : f32
    %133 = vector.broadcast %cst_34 : f32 to vector<8x128xf32>
    %134 = arith.addf %133, %132 : vector<8x128xf32>
    %135 = arith.divf %133, %134 : vector<8x128xf32>
    %136 = vector.extract_strided_slice %123 {offsets = [0, 256], sizes = [8, 128], strides = [1, 1]} : vector<8x512xf32> to vector<8x128xf32>
    %137 = math.tanh %136 : vector<8x128xf32>
    %138 = vector.extract_strided_slice %123 {offsets = [0, 384], sizes = [8, 128], strides = [1, 1]} : vector<8x512xf32> to vector<8x128xf32>
    %139 = arith.negf %138 : vector<8x128xf32>
    %140 = math.exp %139 : vector<8x128xf32>
    %cst_35 = arith.constant 1.000000e+00 : f32
    %141 = vector.broadcast %cst_35 : f32 to vector<8x128xf32>
    %142 = arith.addf %141, %140 : vector<8x128xf32>
    %143 = arith.divf %141, %142 : vector<8x128xf32>
    %144 = arith.mulf %135, %109 : vector<8x128xf32>
    %145 = arith.mulf %129, %137 : vector<8x128xf32>
    %146 = arith.addf %144, %145 : vector<8x128xf32>
    %147 = math.tanh %146 : vector<8x128xf32>
    %148 = arith.mulf %143, %147 : vector<8x128xf32>
    %149 = arith.truncf %148 : vector<8x128xf32> to vector<8x128xbf16>
    %150 = arith.index_cast %c3_i32 : i32 to index
    %c0_36 = arith.constant 0 : index
    %c0_37 = arith.constant 0 : index
    %151 = vector.load %arg6[%150, %c0_36, %c0_37] : memref<16x8x128xbf16, #tpu.memory_space<vmem>>, vector<1x8x128xbf16>
    %152 = vector.shape_cast %151 : vector<1x8x128xbf16> to vector<8x128xbf16>
    %153 = vector.shape_cast %149 : vector<8x128xbf16> to vector<1x8x128xbf16>
    tpu.vector_store %arg6[%150, %c0_36, %c0_37], %153 {strides = array<i32>} : memref<16x8x128xbf16, #tpu.memory_space<vmem>>, vector<1x8x128xbf16>,
    %c4_i32 = arith.constant 4 : i32
    %154 = arith.index_cast %c4_i32 : i32 to index
    %c0_38 = arith.constant 0 : index
    %c0_39 = arith.constant 0 : index
    %155 = vector.load %arg2[%154, %c0_38, %c0_39] : memref<16x8x512xbf16, #tpu.memory_space<vmem>>, vector<1x8x512xbf16>
    %156 = vector.shape_cast %155 : vector<1x8x512xbf16> to vector<8x512xbf16>
    %157 = arith.extf %156 : vector<8x512xbf16> to vector<8x512xf32>
    %158 = arith.truncf %148 : vector<8x128xf32> to vector<8x128xbf16>
    %cst_40 = arith.constant dense<0.000000e+00> : vector<8x512xf32>
    %159 = tpu.matmul %158, %3, %cst_40 {dimension_numbers = #tpu.dot_dimension_numbers<[1], [0], [0], [1], [0, 0, 1, 1], [], []>} : vector<8x128xbf16>, vector<128x512xbf16>, vector<8x512xf32> -> vector<8x512xf32>
    %160 = arith.addf %157, %159 : vector<8x512xf32>
    %161 = vector.extract_strided_slice %160 {offsets = [0, 0], sizes = [8, 128], strides = [1, 1]} : vector<8x512xf32> to vector<8x128xf32>
    %162 = arith.negf %161 : vector<8x128xf32>
    %163 = math.exp %162 : vector<8x128xf32>
    %cst_41 = arith.constant 1.000000e+00 : f32
    %164 = vector.broadcast %cst_41 : f32 to vector<8x128xf32>
    %165 = arith.addf %164, %163 : vector<8x128xf32>
    %166 = arith.divf %164, %165 : vector<8x128xf32>
    %167 = vector.extract_strided_slice %160 {offsets = [0, 128], sizes = [8, 128], strides = [1, 1]} : vector<8x512xf32> to vector<8x128xf32>
    %168 = arith.negf %167 : vector<8x128xf32>
    %169 = math.exp %168 : vector<8x128xf32>
    %cst_42 = arith.constant 1.000000e+00 : f32
    %170 = vector.broadcast %cst_42 : f32 to vector<8x128xf32>
    %171 = arith.addf %170, %169 : vector<8x128xf32>
    %172 = arith.divf %170, %171 : vector<8x128xf32>
    %173 = vector.extract_strided_slice %160 {offsets = [0, 256], sizes = [8, 128], strides = [1, 1]} : vector<8x512xf32> to vector<8x128xf32>
    %174 = math.tanh %173 : vector<8x128xf32>
    %175 = vector.extract_strided_slice %160 {offsets = [0, 384], sizes = [8, 128], strides = [1, 1]} : vector<8x512xf32> to vector<8x128xf32>
    %176 = arith.negf %175 : vector<8x128xf32>
    %177 = math.exp %176 : vector<8x128xf32>
    %cst_43 = arith.constant 1.000000e+00 : f32
    %178 = vector.broadcast %cst_43 : f32 to vector<8x128xf32>
    %179 = arith.addf %178, %177 : vector<8x128xf32>
    %180 = arith.divf %178, %179 : vector<8x128xf32>
    %181 = arith.mulf %172, %146 : vector<8x128xf32>
    %182 = arith.mulf %166, %174 : vector<8x128xf32>
    %183 = arith.addf %181, %182 : vector<8x128xf32>
    %184 = math.tanh %183 : vector<8x128xf32>
    %185 = arith.mulf %180, %184 : vector<8x128xf32>
    %186 = arith.truncf %185 : vector<8x128xf32> to vector<8x128xbf16>
    %187 = arith.index_cast %c4_i32 : i32 to index
    %c0_44 = arith.constant 0 : index
    %c0_45 = arith.constant 0 : index
    %188 = vector.load %arg6[%187, %c0_44, %c0_45] : memref<16x8x128xbf16, #tpu.memory_space<vmem>>, vector<1x8x128xbf16>
    %189 = vector.shape_cast %188 : vector<1x8x128xbf16> to vector<8x128xbf16>
    %190 = vector.shape_cast %186 : vector<8x128xbf16> to vector<1x8x128xbf16>
    tpu.vector_store %arg6[%187, %c0_44, %c0_45], %190 {strides = array<i32>} : memref<16x8x128xbf16, #tpu.memory_space<vmem>>, vector<1x8x128xbf16>,
    %c5_i32 = arith.constant 5 : i32
    %191 = arith.index_cast %c5_i32 : i32 to index
    %c0_46 = arith.constant 0 : index
    %c0_47 = arith.constant 0 : index
    %192 = vector.load %arg2[%191, %c0_46, %c0_47] : memref<16x8x512xbf16, #tpu.memory_space<vmem>>, vector<1x8x512xbf16>
    %193 = vector.shape_cast %192 : vector<1x8x512xbf16> to vector<8x512xbf16>
    %194 = arith.extf %193 : vector<8x512xbf16> to vector<8x512xf32>
    %195 = arith.truncf %185 : vector<8x128xf32> to vector<8x128xbf16>
    %cst_48 = arith.constant dense<0.000000e+00> : vector<8x512xf32>
    %196 = tpu.matmul %195, %3, %cst_48 {dimension_numbers = #tpu.dot_dimension_numbers<[1], [0], [0], [1], [0, 0, 1, 1], [], []>} : vector<8x128xbf16>, vector<128x512xbf16>, vector<8x512xf32> -> vector<8x512xf32>
    %197 = arith.addf %194, %196 : vector<8x512xf32>
    %198 = vector.extract_strided_slice %197 {offsets = [0, 0], sizes = [8, 128], strides = [1, 1]} : vector<8x512xf32> to vector<8x128xf32>
    %199 = arith.negf %198 : vector<8x128xf32>
    %200 = math.exp %199 : vector<8x128xf32>
    %cst_49 = arith.constant 1.000000e+00 : f32
    %201 = vector.broadcast %cst_49 : f32 to vector<8x128xf32>
    %202 = arith.addf %201, %200 : vector<8x128xf32>
    %203 = arith.divf %201, %202 : vector<8x128xf32>
    %204 = vector.extract_strided_slice %197 {offsets = [0, 128], sizes = [8, 128], strides = [1, 1]} : vector<8x512xf32> to vector<8x128xf32>
    %205 = arith.negf %204 : vector<8x128xf32>
    %206 = math.exp %205 : vector<8x128xf32>
    %cst_50 = arith.constant 1.000000e+00 : f32
    %207 = vector.broadcast %cst_50 : f32 to vector<8x128xf32>
    %208 = arith.addf %207, %206 : vector<8x128xf32>
    %209 = arith.divf %207, %208 : vector<8x128xf32>
    %210 = vector.extract_strided_slice %197 {offsets = [0, 256], sizes = [8, 128], strides = [1, 1]} : vector<8x512xf32> to vector<8x128xf32>
    %211 = math.tanh %210 : vector<8x128xf32>
    %212 = vector.extract_strided_slice %197 {offsets = [0, 384], sizes = [8, 128], strides = [1, 1]} : vector<8x512xf32> to vector<8x128xf32>
    %213 = arith.negf %212 : vector<8x128xf32>
    %214 = math.exp %213 : vector<8x128xf32>
    %cst_51 = arith.constant 1.000000e+00 : f32
    %215 = vector.broadcast %cst_51 : f32 to vector<8x128xf32>
    %216 = arith.addf %215, %214 : vector<8x128xf32>
    %217 = arith.divf %215, %216 : vector<8x128xf32>
    %218 = arith.mulf %209, %183 : vector<8x128xf32>
    %219 = arith.mulf %203, %211 : vector<8x128xf32>
    %220 = arith.addf %218, %219 : vector<8x128xf32>
    %221 = math.tanh %220 : vector<8x128xf32>
    %222 = arith.mulf %217, %221 : vector<8x128xf32>
    %223 = arith.truncf %222 : vector<8x128xf32> to vector<8x128xbf16>
    %224 = arith.index_cast %c5_i32 : i32 to index
    %c0_52 = arith.constant 0 : index
    %c0_53 = arith.constant 0 : index
    %225 = vector.load %arg6[%224, %c0_52, %c0_53] : memref<16x8x128xbf16, #tpu.memory_space<vmem>>, vector<1x8x128xbf16>
    %226 = vector.shape_cast %225 : vector<1x8x128xbf16> to vector<8x128xbf16>
    %227 = vector.shape_cast %223 : vector<8x128xbf16> to vector<1x8x128xbf16>
    tpu.vector_store %arg6[%224, %c0_52, %c0_53], %227 {strides = array<i32>} : memref<16x8x128xbf16, #tpu.memory_space<vmem>>, vector<1x8x128xbf16>,
    %c6_i32 = arith.constant 6 : i32
    %228 = arith.index_cast %c6_i32 : i32 to index
    %c0_54 = arith.constant 0 : index
    %c0_55 = arith.constant 0 : index
    %229 = vector.load %arg2[%228, %c0_54, %c0_55] : memref<16x8x512xbf16, #tpu.memory_space<vmem>>, vector<1x8x512xbf16>
    %230 = vector.shape_cast %229 : vector<1x8x512xbf16> to vector<8x512xbf16>
    %231 = arith.extf %230 : vector<8x512xbf16> to vector<8x512xf32>
    %232 = arith.truncf %222 : vector<8x128xf32> to vector<8x128xbf16>
    %cst_56 = arith.constant dense<0.000000e+00> : vector<8x512xf32>
    %233 = tpu.matmul %232, %3, %cst_56 {dimension_numbers = #tpu.dot_dimension_numbers<[1], [0], [0], [1], [0, 0, 1, 1], [], []>} : vector<8x128xbf16>, vector<128x512xbf16>, vector<8x512xf32> -> vector<8x512xf32>
    %234 = arith.addf %231, %233 : vector<8x512xf32>
    %235 = vector.extract_strided_slice %234 {offsets = [0, 0], sizes = [8, 128], strides = [1, 1]} : vector<8x512xf32> to vector<8x128xf32>
    %236 = arith.negf %235 : vector<8x128xf32>
    %237 = math.exp %236 : vector<8x128xf32>
    %cst_57 = arith.constant 1.000000e+00 : f32
    %238 = vector.broadcast %cst_57 : f32 to vector<8x128xf32>
    %239 = arith.addf %238, %237 : vector<8x128xf32>
    %240 = arith.divf %238, %239 : vector<8x128xf32>
    %241 = vector.extract_strided_slice %234 {offsets = [0, 128], sizes = [8, 128], strides = [1, 1]} : vector<8x512xf32> to vector<8x128xf32>
    %242 = arith.negf %241 : vector<8x128xf32>
    %243 = math.exp %242 : vector<8x128xf32>
    %cst_58 = arith.constant 1.000000e+00 : f32
    %244 = vector.broadcast %cst_58 : f32 to vector<8x128xf32>
    %245 = arith.addf %244, %243 : vector<8x128xf32>
    %246 = arith.divf %244, %245 : vector<8x128xf32>
    %247 = vector.extract_strided_slice %234 {offsets = [0, 256], sizes = [8, 128], strides = [1, 1]} : vector<8x512xf32> to vector<8x128xf32>
    %248 = math.tanh %247 : vector<8x128xf32>
    %249 = vector.extract_strided_slice %234 {offsets = [0, 384], sizes = [8, 128], strides = [1, 1]} : vector<8x512xf32> to vector<8x128xf32>
    %250 = arith.negf %249 : vector<8x128xf32>
    %251 = math.exp %250 : vector<8x128xf32>
    %cst_59 = arith.constant 1.000000e+00 : f32
    %252 = vector.broadcast %cst_59 : f32 to vector<8x128xf32>
    %253 = arith.addf %252, %251 : vector<8x128xf32>
    %254 = arith.divf %252, %253 : vector<8x128xf32>
    %255 = arith.mulf %246, %220 : vector<8x128xf32>
    %256 = arith.mulf %240, %248 : vector<8x128xf32>
    %257 = arith.addf %255, %256 : vector<8x128xf32>
    %258 = math.tanh %257 : vector<8x128xf32>
    %259 = arith.mulf %254, %258 : vector<8x128xf32>
    %260 = arith.truncf %259 : vector<8x128xf32> to vector<8x128xbf16>
    %261 = arith.index_cast %c6_i32 : i32 to index
    %c0_60 = arith.constant 0 : index
    %c0_61 = arith.constant 0 : index
    %262 = vector.load %arg6[%261, %c0_60, %c0_61] : memref<16x8x128xbf16, #tpu.memory_space<vmem>>, vector<1x8x128xbf16>
    %263 = vector.shape_cast %262 : vector<1x8x128xbf16> to vector<8x128xbf16>
    %264 = vector.shape_cast %260 : vector<8x128xbf16> to vector<1x8x128xbf16>
    tpu.vector_store %arg6[%261, %c0_60, %c0_61], %264 {strides = array<i32>} : memref<16x8x128xbf16, #tpu.memory_space<vmem>>, vector<1x8x128xbf16>,
    %c7_i32 = arith.constant 7 : i32
    %265 = arith.index_cast %c7_i32 : i32 to index
    %c0_62 = arith.constant 0 : index
    %c0_63 = arith.constant 0 : index
    %266 = vector.load %arg2[%265, %c0_62, %c0_63] : memref<16x8x512xbf16, #tpu.memory_space<vmem>>, vector<1x8x512xbf16>
    %267 = vector.shape_cast %266 : vector<1x8x512xbf16> to vector<8x512xbf16>
    %268 = arith.extf %267 : vector<8x512xbf16> to vector<8x512xf32>
    %269 = arith.truncf %259 : vector<8x128xf32> to vector<8x128xbf16>
    %cst_64 = arith.constant dense<0.000000e+00> : vector<8x512xf32>
    %270 = tpu.matmul %269, %3, %cst_64 {dimension_numbers = #tpu.dot_dimension_numbers<[1], [0], [0], [1], [0, 0, 1, 1], [], []>} : vector<8x128xbf16>, vector<128x512xbf16>, vector<8x512xf32> -> vector<8x512xf32>
    %271 = arith.addf %268, %270 : vector<8x512xf32>
    %272 = vector.extract_strided_slice %271 {offsets = [0, 0], sizes = [8, 128], strides = [1, 1]} : vector<8x512xf32> to vector<8x128xf32>
    %273 = arith.negf %272 : vector<8x128xf32>
    %274 = math.exp %273 : vector<8x128xf32>
    %cst_65 = arith.constant 1.000000e+00 : f32
    %275 = vector.broadcast %cst_65 : f32 to vector<8x128xf32>
    %276 = arith.addf %275, %274 : vector<8x128xf32>
    %277 = arith.divf %275, %276 : vector<8x128xf32>
    %278 = vector.extract_strided_slice %271 {offsets = [0, 128], sizes = [8, 128], strides = [1, 1]} : vector<8x512xf32> to vector<8x128xf32>
    %279 = arith.negf %278 : vector<8x128xf32>
    %280 = math.exp %279 : vector<8x128xf32>
    %cst_66 = arith.constant 1.000000e+00 : f32
    %281 = vector.broadcast %cst_66 : f32 to vector<8x128xf32>
    %282 = arith.addf %281, %280 : vector<8x128xf32>
    %283 = arith.divf %281, %282 : vector<8x128xf32>
    %284 = vector.extract_strided_slice %271 {offsets = [0, 256], sizes = [8, 128], strides = [1, 1]} : vector<8x512xf32> to vector<8x128xf32>
    %285 = math.tanh %284 : vector<8x128xf32>
    %286 = vector.extract_strided_slice %271 {offsets = [0, 384], sizes = [8, 128], strides = [1, 1]} : vector<8x512xf32> to vector<8x128xf32>
    %287 = arith.negf %286 : vector<8x128xf32>
    %288 = math.exp %287 : vector<8x128xf32>
    %cst_67 = arith.constant 1.000000e+00 : f32
    %289 = vector.broadcast %cst_67 : f32 to vector<8x128xf32>
    %290 = arith.addf %289, %288 : vector<8x128xf32>
    %291 = arith.divf %289, %290 : vector<8x128xf32>
    %292 = arith.mulf %283, %257 : vector<8x128xf32>
    %293 = arith.mulf %277, %285 : vector<8x128xf32>
    %294 = arith.addf %292, %293 : vector<8x128xf32>
    %295 = math.tanh %294 : vector<8x128xf32>
    %296 = arith.mulf %291, %295 : vector<8x128xf32>
    %297 = arith.truncf %296 : vector<8x128xf32> to vector<8x128xbf16>
    %298 = arith.index_cast %c7_i32 : i32 to index
    %c0_68 = arith.constant 0 : index
    %c0_69 = arith.constant 0 : index
    %299 = vector.load %arg6[%298, %c0_68, %c0_69] : memref<16x8x128xbf16, #tpu.memory_space<vmem>>, vector<1x8x128xbf16>
    %300 = vector.shape_cast %299 : vector<1x8x128xbf16> to vector<8x128xbf16>
    %301 = vector.shape_cast %297 : vector<8x128xbf16> to vector<1x8x128xbf16>
    tpu.vector_store %arg6[%298, %c0_68, %c0_69], %301 {strides = array<i32>} : memref<16x8x128xbf16, #tpu.memory_space<vmem>>, vector<1x8x128xbf16>,
    %c8_i32 = arith.constant 8 : i32
    %302 = arith.index_cast %c8_i32 : i32 to index
    %c0_70 = arith.constant 0 : index
    %c0_71 = arith.constant 0 : index
    %303 = vector.load %arg2[%302, %c0_70, %c0_71] : memref<16x8x512xbf16, #tpu.memory_space<vmem>>, vector<1x8x512xbf16>
    %304 = vector.shape_cast %303 : vector<1x8x512xbf16> to vector<8x512xbf16>
    %305 = arith.extf %304 : vector<8x512xbf16> to vector<8x512xf32>
    %306 = arith.truncf %296 : vector<8x128xf32> to vector<8x128xbf16>
    %cst_72 = arith.constant dense<0.000000e+00> : vector<8x512xf32>
    %307 = tpu.matmul %306, %3, %cst_72 {dimension_numbers = #tpu.dot_dimension_numbers<[1], [0], [0], [1], [0, 0, 1, 1], [], []>} : vector<8x128xbf16>, vector<128x512xbf16>, vector<8x512xf32> -> vector<8x512xf32>
    %308 = arith.addf %305, %307 : vector<8x512xf32>
    %309 = vector.extract_strided_slice %308 {offsets = [0, 0], sizes = [8, 128], strides = [1, 1]} : vector<8x512xf32> to vector<8x128xf32>
    %310 = arith.negf %309 : vector<8x128xf32>
    %311 = math.exp %310 : vector<8x128xf32>
    %cst_73 = arith.constant 1.000000e+00 : f32
    %312 = vector.broadcast %cst_73 : f32 to vector<8x128xf32>
    %313 = arith.addf %312, %311 : vector<8x128xf32>
    %314 = arith.divf %312, %313 : vector<8x128xf32>
    %315 = vector.extract_strided_slice %308 {offsets = [0, 128], sizes = [8, 128], strides = [1, 1]} : vector<8x512xf32> to vector<8x128xf32>
    %316 = arith.negf %315 : vector<8x128xf32>
    %317 = math.exp %316 : vector<8x128xf32>
    %cst_74 = arith.constant 1.000000e+00 : f32
    %318 = vector.broadcast %cst_74 : f32 to vector<8x128xf32>
    %319 = arith.addf %318, %317 : vector<8x128xf32>
    %320 = arith.divf %318, %319 : vector<8x128xf32>
    %321 = vector.extract_strided_slice %308 {offsets = [0, 256], sizes = [8, 128], strides = [1, 1]} : vector<8x512xf32> to vector<8x128xf32>
    %322 = math.tanh %321 : vector<8x128xf32>
    %323 = vector.extract_strided_slice %308 {offsets = [0, 384], sizes = [8, 128], strides = [1, 1]} : vector<8x512xf32> to vector<8x128xf32>
    %324 = arith.negf %323 : vector<8x128xf32>
    %325 = math.exp %324 : vector<8x128xf32>
    %cst_75 = arith.constant 1.000000e+00 : f32
    %326 = vector.broadcast %cst_75 : f32 to vector<8x128xf32>
    %327 = arith.addf %326, %325 : vector<8x128xf32>
    %328 = arith.divf %326, %327 : vector<8x128xf32>
    %329 = arith.mulf %320, %294 : vector<8x128xf32>
    %330 = arith.mulf %314, %322 : vector<8x128xf32>
    %331 = arith.addf %329, %330 : vector<8x128xf32>
    %332 = math.tanh %331 : vector<8x128xf32>
    %333 = arith.mulf %328, %332 : vector<8x128xf32>
    %334 = arith.truncf %333 : vector<8x128xf32> to vector<8x128xbf16>
    %335 = arith.index_cast %c8_i32 : i32 to index
    %c0_76 = arith.constant 0 : index
    %c0_77 = arith.constant 0 : index
    %336 = vector.load %arg6[%335, %c0_76, %c0_77] : memref<16x8x128xbf16, #tpu.memory_space<vmem>>, vector<1x8x128xbf16>
    %337 = vector.shape_cast %336 : vector<1x8x128xbf16> to vector<8x128xbf16>
    %338 = vector.shape_cast %334 : vector<8x128xbf16> to vector<1x8x128xbf16>
    tpu.vector_store %arg6[%335, %c0_76, %c0_77], %338 {strides = array<i32>} : memref<16x8x128xbf16, #tpu.memory_space<vmem>>, vector<1x8x128xbf16>,
    %c9_i32 = arith.constant 9 : i32
    %339 = arith.index_cast %c9_i32 : i32 to index
    %c0_78 = arith.constant 0 : index
    %c0_79 = arith.constant 0 : index
    %340 = vector.load %arg2[%339, %c0_78, %c0_79] : memref<16x8x512xbf16, #tpu.memory_space<vmem>>, vector<1x8x512xbf16>
    %341 = vector.shape_cast %340 : vector<1x8x512xbf16> to vector<8x512xbf16>
    %342 = arith.extf %341 : vector<8x512xbf16> to vector<8x512xf32>
    %343 = arith.truncf %333 : vector<8x128xf32> to vector<8x128xbf16>
    %cst_80 = arith.constant dense<0.000000e+00> : vector<8x512xf32>
    %344 = tpu.matmul %343, %3, %cst_80 {dimension_numbers = #tpu.dot_dimension_numbers<[1], [0], [0], [1], [0, 0, 1, 1], [], []>} : vector<8x128xbf16>, vector<128x512xbf16>, vector<8x512xf32> -> vector<8x512xf32>
    %345 = arith.addf %342, %344 : vector<8x512xf32>
    %346 = vector.extract_strided_slice %345 {offsets = [0, 0], sizes = [8, 128], strides = [1, 1]} : vector<8x512xf32> to vector<8x128xf32>
    %347 = arith.negf %346 : vector<8x128xf32>
    %348 = math.exp %347 : vector<8x128xf32>
    %cst_81 = arith.constant 1.000000e+00 : f32
    %349 = vector.broadcast %cst_81 : f32 to vector<8x128xf32>
    %350 = arith.addf %349, %348 : vector<8x128xf32>
    %351 = arith.divf %349, %350 : vector<8x128xf32>
    %352 = vector.extract_strided_slice %345 {offsets = [0, 128], sizes = [8, 128], strides = [1, 1]} : vector<8x512xf32> to vector<8x128xf32>
    %353 = arith.negf %352 : vector<8x128xf32>
    %354 = math.exp %353 : vector<8x128xf32>
    %cst_82 = arith.constant 1.000000e+00 : f32
    %355 = vector.broadcast %cst_82 : f32 to vector<8x128xf32>
    %356 = arith.addf %355, %354 : vector<8x128xf32>
    %357 = arith.divf %355, %356 : vector<8x128xf32>
    %358 = vector.extract_strided_slice %345 {offsets = [0, 256], sizes = [8, 128], strides = [1, 1]} : vector<8x512xf32> to vector<8x128xf32>
    %359 = math.tanh %358 : vector<8x128xf32>
    %360 = vector.extract_strided_slice %345 {offsets = [0, 384], sizes = [8, 128], strides = [1, 1]} : vector<8x512xf32> to vector<8x128xf32>
    %361 = arith.negf %360 : vector<8x128xf32>
    %362 = math.exp %361 : vector<8x128xf32>
    %cst_83 = arith.constant 1.000000e+00 : f32
    %363 = vector.broadcast %cst_83 : f32 to vector<8x128xf32>
    %364 = arith.addf %363, %362 : vector<8x128xf32>
    %365 = arith.divf %363, %364 : vector<8x128xf32>
    %366 = arith.mulf %357, %331 : vector<8x128xf32>
    %367 = arith.mulf %351, %359 : vector<8x128xf32>
    %368 = arith.addf %366, %367 : vector<8x128xf32>
    %369 = math.tanh %368 : vector<8x128xf32>
    %370 = arith.mulf %365, %369 : vector<8x128xf32>
    %371 = arith.truncf %370 : vector<8x128xf32> to vector<8x128xbf16>
    %372 = arith.index_cast %c9_i32 : i32 to index
    %c0_84 = arith.constant 0 : index
    %c0_85 = arith.constant 0 : index
    %373 = vector.load %arg6[%372, %c0_84, %c0_85] : memref<16x8x128xbf16, #tpu.memory_space<vmem>>, vector<1x8x128xbf16>
    %374 = vector.shape_cast %373 : vector<1x8x128xbf16> to vector<8x128xbf16>
    %375 = vector.shape_cast %371 : vector<8x128xbf16> to vector<1x8x128xbf16>
    tpu.vector_store %arg6[%372, %c0_84, %c0_85], %375 {strides = array<i32>} : memref<16x8x128xbf16, #tpu.memory_space<vmem>>, vector<1x8x128xbf16>,
    %c10_i32 = arith.constant 10 : i32
    %376 = arith.index_cast %c10_i32 : i32 to index
    %c0_86 = arith.constant 0 : index
    %c0_87 = arith.constant 0 : index
    %377 = vector.load %arg2[%376, %c0_86, %c0_87] : memref<16x8x512xbf16, #tpu.memory_space<vmem>>, vector<1x8x512xbf16>
    %378 = vector.shape_cast %377 : vector<1x8x512xbf16> to vector<8x512xbf16>
    %379 = arith.extf %378 : vector<8x512xbf16> to vector<8x512xf32>
    %380 = arith.truncf %370 : vector<8x128xf32> to vector<8x128xbf16>
    %cst_88 = arith.constant dense<0.000000e+00> : vector<8x512xf32>
    %381 = tpu.matmul %380, %3, %cst_88 {dimension_numbers = #tpu.dot_dimension_numbers<[1], [0], [0], [1], [0, 0, 1, 1], [], []>} : vector<8x128xbf16>, vector<128x512xbf16>, vector<8x512xf32> -> vector<8x512xf32>
    %382 = arith.addf %379, %381 : vector<8x512xf32>
    %383 = vector.extract_strided_slice %382 {offsets = [0, 0], sizes = [8, 128], strides = [1, 1]} : vector<8x512xf32> to vector<8x128xf32>
    %384 = arith.negf %383 : vector<8x128xf32>
    %385 = math.exp %384 : vector<8x128xf32>
    %cst_89 = arith.constant 1.000000e+00 : f32
    %386 = vector.broadcast %cst_89 : f32 to vector<8x128xf32>
    %387 = arith.addf %386, %385 : vector<8x128xf32>
    %388 = arith.divf %386, %387 : vector<8x128xf32>
    %389 = vector.extract_strided_slice %382 {offsets = [0, 128], sizes = [8, 128], strides = [1, 1]} : vector<8x512xf32> to vector<8x128xf32>
    %390 = arith.negf %389 : vector<8x128xf32>
    %391 = math.exp %390 : vector<8x128xf32>
    %cst_90 = arith.constant 1.000000e+00 : f32
    %392 = vector.broadcast %cst_90 : f32 to vector<8x128xf32>
    %393 = arith.addf %392, %391 : vector<8x128xf32>
    %394 = arith.divf %392, %393 : vector<8x128xf32>
    %395 = vector.extract_strided_slice %382 {offsets = [0, 256], sizes = [8, 128], strides = [1, 1]} : vector<8x512xf32> to vector<8x128xf32>
    %396 = math.tanh %395 : vector<8x128xf32>
    %397 = vector.extract_strided_slice %382 {offsets = [0, 384], sizes = [8, 128], strides = [1, 1]} : vector<8x512xf32> to vector<8x128xf32>
    %398 = arith.negf %397 : vector<8x128xf32>
    %399 = math.exp %398 : vector<8x128xf32>
    %cst_91 = arith.constant 1.000000e+00 : f32
    %400 = vector.broadcast %cst_91 : f32 to vector<8x128xf32>
    %401 = arith.addf %400, %399 : vector<8x128xf32>
    %402 = arith.divf %400, %401 : vector<8x128xf32>
    %403 = arith.mulf %394, %368 : vector<8x128xf32>
    %404 = arith.mulf %388, %396 : vector<8x128xf32>
    %405 = arith.addf %403, %404 : vector<8x128xf32>
    %406 = math.tanh %405 : vector<8x128xf32>
    %407 = arith.mulf %402, %406 : vector<8x128xf32>
    %408 = arith.truncf %407 : vector<8x128xf32> to vector<8x128xbf16>
    %409 = arith.index_cast %c10_i32 : i32 to index
    %c0_92 = arith.constant 0 : index
    %c0_93 = arith.constant 0 : index
    %410 = vector.load %arg6[%409, %c0_92, %c0_93] : memref<16x8x128xbf16, #tpu.memory_space<vmem>>, vector<1x8x128xbf16>
    %411 = vector.shape_cast %410 : vector<1x8x128xbf16> to vector<8x128xbf16>
    %412 = vector.shape_cast %408 : vector<8x128xbf16> to vector<1x8x128xbf16>
    tpu.vector_store %arg6[%409, %c0_92, %c0_93], %412 {strides = array<i32>} : memref<16x8x128xbf16, #tpu.memory_space<vmem>>, vector<1x8x128xbf16>,
    %c11_i32 = arith.constant 11 : i32
    %413 = arith.index_cast %c11_i32 : i32 to index
    %c0_94 = arith.constant 0 : index
    %c0_95 = arith.constant 0 : index
    %414 = vector.load %arg2[%413, %c0_94, %c0_95] : memref<16x8x512xbf16, #tpu.memory_space<vmem>>, vector<1x8x512xbf16>
    %415 = vector.shape_cast %414 : vector<1x8x512xbf16> to vector<8x512xbf16>
    %416 = arith.extf %415 : vector<8x512xbf16> to vector<8x512xf32>
    %417 = arith.truncf %407 : vector<8x128xf32> to vector<8x128xbf16>
    %cst_96 = arith.constant dense<0.000000e+00> : vector<8x512xf32>
    %418 = tpu.matmul %417, %3, %cst_96 {dimension_numbers = #tpu.dot_dimension_numbers<[1], [0], [0], [1], [0, 0, 1, 1], [], []>} : vector<8x128xbf16>, vector<128x512xbf16>, vector<8x512xf32> -> vector<8x512xf32>
    %419 = arith.addf %416, %418 : vector<8x512xf32>
    %420 = vector.extract_strided_slice %419 {offsets = [0, 0], sizes = [8, 128], strides = [1, 1]} : vector<8x512xf32> to vector<8x128xf32>
    %421 = arith.negf %420 : vector<8x128xf32>
    %422 = math.exp %421 : vector<8x128xf32>
    %cst_97 = arith.constant 1.000000e+00 : f32
    %423 = vector.broadcast %cst_97 : f32 to vector<8x128xf32>
    %424 = arith.addf %423, %422 : vector<8x128xf32>
    %425 = arith.divf %423, %424 : vector<8x128xf32>
    %426 = vector.extract_strided_slice %419 {offsets = [0, 128], sizes = [8, 128], strides = [1, 1]} : vector<8x512xf32> to vector<8x128xf32>
    %427 = arith.negf %426 : vector<8x128xf32>
    %428 = math.exp %427 : vector<8x128xf32>
    %cst_98 = arith.constant 1.000000e+00 : f32
    %429 = vector.broadcast %cst_98 : f32 to vector<8x128xf32>
    %430 = arith.addf %429, %428 : vector<8x128xf32>
    %431 = arith.divf %429, %430 : vector<8x128xf32>
    %432 = vector.extract_strided_slice %419 {offsets = [0, 256], sizes = [8, 128], strides = [1, 1]} : vector<8x512xf32> to vector<8x128xf32>
    %433 = math.tanh %432 : vector<8x128xf32>
    %434 = vector.extract_strided_slice %419 {offsets = [0, 384], sizes = [8, 128], strides = [1, 1]} : vector<8x512xf32> to vector<8x128xf32>
    %435 = arith.negf %434 : vector<8x128xf32>
    %436 = math.exp %435 : vector<8x128xf32>
    %cst_99 = arith.constant 1.000000e+00 : f32
    %437 = vector.broadcast %cst_99 : f32 to vector<8x128xf32>
    %438 = arith.addf %437, %436 : vector<8x128xf32>
    %439 = arith.divf %437, %438 : vector<8x128xf32>
    %440 = arith.mulf %431, %405 : vector<8x128xf32>
    %441 = arith.mulf %425, %433 : vector<8x128xf32>
    %442 = arith.addf %440, %441 : vector<8x128xf32>
    %443 = math.tanh %442 : vector<8x128xf32>
    %444 = arith.mulf %439, %443 : vector<8x128xf32>
    %445 = arith.truncf %444 : vector<8x128xf32> to vector<8x128xbf16>
    %446 = arith.index_cast %c11_i32 : i32 to index
    %c0_100 = arith.constant 0 : index
    %c0_101 = arith.constant 0 : index
    %447 = vector.load %arg6[%446, %c0_100, %c0_101] : memref<16x8x128xbf16, #tpu.memory_space<vmem>>, vector<1x8x128xbf16>
    %448 = vector.shape_cast %447 : vector<1x8x128xbf16> to vector<8x128xbf16>
    %449 = vector.shape_cast %445 : vector<8x128xbf16> to vector<1x8x128xbf16>
    tpu.vector_store %arg6[%446, %c0_100, %c0_101], %449 {strides = array<i32>} : memref<16x8x128xbf16, #tpu.memory_space<vmem>>, vector<1x8x128xbf16>,
    %c12_i32 = arith.constant 12 : i32
    %450 = arith.index_cast %c12_i32 : i32 to index
    %c0_102 = arith.constant 0 : index
    %c0_103 = arith.constant 0 : index
    %451 = vector.load %arg2[%450, %c0_102, %c0_103] : memref<16x8x512xbf16, #tpu.memory_space<vmem>>, vector<1x8x512xbf16>
    %452 = vector.shape_cast %451 : vector<1x8x512xbf16> to vector<8x512xbf16>
    %453 = arith.extf %452 : vector<8x512xbf16> to vector<8x512xf32>
    %454 = arith.truncf %444 : vector<8x128xf32> to vector<8x128xbf16>
    %cst_104 = arith.constant dense<0.000000e+00> : vector<8x512xf32>
    %455 = tpu.matmul %454, %3, %cst_104 {dimension_numbers = #tpu.dot_dimension_numbers<[1], [0], [0], [1], [0, 0, 1, 1], [], []>} : vector<8x128xbf16>, vector<128x512xbf16>, vector<8x512xf32> -> vector<8x512xf32>
    %456 = arith.addf %453, %455 : vector<8x512xf32>
    %457 = vector.extract_strided_slice %456 {offsets = [0, 0], sizes = [8, 128], strides = [1, 1]} : vector<8x512xf32> to vector<8x128xf32>
    %458 = arith.negf %457 : vector<8x128xf32>
    %459 = math.exp %458 : vector<8x128xf32>
    %cst_105 = arith.constant 1.000000e+00 : f32
    %460 = vector.broadcast %cst_105 : f32 to vector<8x128xf32>
    %461 = arith.addf %460, %459 : vector<8x128xf32>
    %462 = arith.divf %460, %461 : vector<8x128xf32>
    %463 = vector.extract_strided_slice %456 {offsets = [0, 128], sizes = [8, 128], strides = [1, 1]} : vector<8x512xf32> to vector<8x128xf32>
    %464 = arith.negf %463 : vector<8x128xf32>
    %465 = math.exp %464 : vector<8x128xf32>
    %cst_106 = arith.constant 1.000000e+00 : f32
    %466 = vector.broadcast %cst_106 : f32 to vector<8x128xf32>
    %467 = arith.addf %466, %465 : vector<8x128xf32>
    %468 = arith.divf %466, %467 : vector<8x128xf32>
    %469 = vector.extract_strided_slice %456 {offsets = [0, 256], sizes = [8, 128], strides = [1, 1]} : vector<8x512xf32> to vector<8x128xf32>
    %470 = math.tanh %469 : vector<8x128xf32>
    %471 = vector.extract_strided_slice %456 {offsets = [0, 384], sizes = [8, 128], strides = [1, 1]} : vector<8x512xf32> to vector<8x128xf32>
    %472 = arith.negf %471 : vector<8x128xf32>
    %473 = math.exp %472 : vector<8x128xf32>
    %cst_107 = arith.constant 1.000000e+00 : f32
    %474 = vector.broadcast %cst_107 : f32 to vector<8x128xf32>
    %475 = arith.addf %474, %473 : vector<8x128xf32>
    %476 = arith.divf %474, %475 : vector<8x128xf32>
    %477 = arith.mulf %468, %442 : vector<8x128xf32>
    %478 = arith.mulf %462, %470 : vector<8x128xf32>
    %479 = arith.addf %477, %478 : vector<8x128xf32>
    %480 = math.tanh %479 : vector<8x128xf32>
    %481 = arith.mulf %476, %480 : vector<8x128xf32>
    %482 = arith.truncf %481 : vector<8x128xf32> to vector<8x128xbf16>
    %483 = arith.index_cast %c12_i32 : i32 to index
    %c0_108 = arith.constant 0 : index
    %c0_109 = arith.constant 0 : index
    %484 = vector.load %arg6[%483, %c0_108, %c0_109] : memref<16x8x128xbf16, #tpu.memory_space<vmem>>, vector<1x8x128xbf16>
    %485 = vector.shape_cast %484 : vector<1x8x128xbf16> to vector<8x128xbf16>
    %486 = vector.shape_cast %482 : vector<8x128xbf16> to vector<1x8x128xbf16>
    tpu.vector_store %arg6[%483, %c0_108, %c0_109], %486 {strides = array<i32>} : memref<16x8x128xbf16, #tpu.memory_space<vmem>>, vector<1x8x128xbf16>,
    %c13_i32 = arith.constant 13 : i32
    %487 = arith.index_cast %c13_i32 : i32 to index
    %c0_110 = arith.constant 0 : index
    %c0_111 = arith.constant 0 : index
    %488 = vector.load %arg2[%487, %c0_110, %c0_111] : memref<16x8x512xbf16, #tpu.memory_space<vmem>>, vector<1x8x512xbf16>
    %489 = vector.shape_cast %488 : vector<1x8x512xbf16> to vector<8x512xbf16>
    %490 = arith.extf %489 : vector<8x512xbf16> to vector<8x512xf32>
    %491 = arith.truncf %481 : vector<8x128xf32> to vector<8x128xbf16>
    %cst_112 = arith.constant dense<0.000000e+00> : vector<8x512xf32>
    %492 = tpu.matmul %491, %3, %cst_112 {dimension_numbers = #tpu.dot_dimension_numbers<[1], [0], [0], [1], [0, 0, 1, 1], [], []>} : vector<8x128xbf16>, vector<128x512xbf16>, vector<8x512xf32> -> vector<8x512xf32>
    %493 = arith.addf %490, %492 : vector<8x512xf32>
    %494 = vector.extract_strided_slice %493 {offsets = [0, 0], sizes = [8, 128], strides = [1, 1]} : vector<8x512xf32> to vector<8x128xf32>
    %495 = arith.negf %494 : vector<8x128xf32>
    %496 = math.exp %495 : vector<8x128xf32>
    %cst_113 = arith.constant 1.000000e+00 : f32
    %497 = vector.broadcast %cst_113 : f32 to vector<8x128xf32>
    %498 = arith.addf %497, %496 : vector<8x128xf32>
    %499 = arith.divf %497, %498 : vector<8x128xf32>
    %500 = vector.extract_strided_slice %493 {offsets = [0, 128], sizes = [8, 128], strides = [1, 1]} : vector<8x512xf32> to vector<8x128xf32>
    %501 = arith.negf %500 : vector<8x128xf32>
    %502 = math.exp %501 : vector<8x128xf32>
    %cst_114 = arith.constant 1.000000e+00 : f32
    %503 = vector.broadcast %cst_114 : f32 to vector<8x128xf32>
    %504 = arith.addf %503, %502 : vector<8x128xf32>
    %505 = arith.divf %503, %504 : vector<8x128xf32>
    %506 = vector.extract_strided_slice %493 {offsets = [0, 256], sizes = [8, 128], strides = [1, 1]} : vector<8x512xf32> to vector<8x128xf32>
    %507 = math.tanh %506 : vector<8x128xf32>
    %508 = vector.extract_strided_slice %493 {offsets = [0, 384], sizes = [8, 128], strides = [1, 1]} : vector<8x512xf32> to vector<8x128xf32>
    %509 = arith.negf %508 : vector<8x128xf32>
    %510 = math.exp %509 : vector<8x128xf32>
    %cst_115 = arith.constant 1.000000e+00 : f32
    %511 = vector.broadcast %cst_115 : f32 to vector<8x128xf32>
    %512 = arith.addf %511, %510 : vector<8x128xf32>
    %513 = arith.divf %511, %512 : vector<8x128xf32>
    %514 = arith.mulf %505, %479 : vector<8x128xf32>
    %515 = arith.mulf %499, %507 : vector<8x128xf32>
    %516 = arith.addf %514, %515 : vector<8x128xf32>
    %517 = math.tanh %516 : vector<8x128xf32>
    %518 = arith.mulf %513, %517 : vector<8x128xf32>
    %519 = arith.truncf %518 : vector<8x128xf32> to vector<8x128xbf16>
    %520 = arith.index_cast %c13_i32 : i32 to index
    %c0_116 = arith.constant 0 : index
    %c0_117 = arith.constant 0 : index
    %521 = vector.load %arg6[%520, %c0_116, %c0_117] : memref<16x8x128xbf16, #tpu.memory_space<vmem>>, vector<1x8x128xbf16>
    %522 = vector.shape_cast %521 : vector<1x8x128xbf16> to vector<8x128xbf16>
    %523 = vector.shape_cast %519 : vector<8x128xbf16> to vector<1x8x128xbf16>
    tpu.vector_store %arg6[%520, %c0_116, %c0_117], %523 {strides = array<i32>} : memref<16x8x128xbf16, #tpu.memory_space<vmem>>, vector<1x8x128xbf16>,
    %c14_i32 = arith.constant 14 : i32
    %524 = arith.index_cast %c14_i32 : i32 to index
    %c0_118 = arith.constant 0 : index
    %c0_119 = arith.constant 0 : index
    %525 = vector.load %arg2[%524, %c0_118, %c0_119] : memref<16x8x512xbf16, #tpu.memory_space<vmem>>, vector<1x8x512xbf16>
    %526 = vector.shape_cast %525 : vector<1x8x512xbf16> to vector<8x512xbf16>
    %527 = arith.extf %526 : vector<8x512xbf16> to vector<8x512xf32>
    %528 = arith.truncf %518 : vector<8x128xf32> to vector<8x128xbf16>
    %cst_120 = arith.constant dense<0.000000e+00> : vector<8x512xf32>
    %529 = tpu.matmul %528, %3, %cst_120 {dimension_numbers = #tpu.dot_dimension_numbers<[1], [0], [0], [1], [0, 0, 1, 1], [], []>} : vector<8x128xbf16>, vector<128x512xbf16>, vector<8x512xf32> -> vector<8x512xf32>
    %530 = arith.addf %527, %529 : vector<8x512xf32>
    %531 = vector.extract_strided_slice %530 {offsets = [0, 0], sizes = [8, 128], strides = [1, 1]} : vector<8x512xf32> to vector<8x128xf32>
    %532 = arith.negf %531 : vector<8x128xf32>
    %533 = math.exp %532 : vector<8x128xf32>
    %cst_121 = arith.constant 1.000000e+00 : f32
    %534 = vector.broadcast %cst_121 : f32 to vector<8x128xf32>
    %535 = arith.addf %534, %533 : vector<8x128xf32>
    %536 = arith.divf %534, %535 : vector<8x128xf32>
    %537 = vector.extract_strided_slice %530 {offsets = [0, 128], sizes = [8, 128], strides = [1, 1]} : vector<8x512xf32> to vector<8x128xf32>
    %538 = arith.negf %537 : vector<8x128xf32>
    %539 = math.exp %538 : vector<8x128xf32>
    %cst_122 = arith.constant 1.000000e+00 : f32
    %540 = vector.broadcast %cst_122 : f32 to vector<8x128xf32>
    %541 = arith.addf %540, %539 : vector<8x128xf32>
    %542 = arith.divf %540, %541 : vector<8x128xf32>
    %543 = vector.extract_strided_slice %530 {offsets = [0, 256], sizes = [8, 128], strides = [1, 1]} : vector<8x512xf32> to vector<8x128xf32>
    %544 = math.tanh %543 : vector<8x128xf32>
    %545 = vector.extract_strided_slice %530 {offsets = [0, 384], sizes = [8, 128], strides = [1, 1]} : vector<8x512xf32> to vector<8x128xf32>
    %546 = arith.negf %545 : vector<8x128xf32>
    %547 = math.exp %546 : vector<8x128xf32>
    %cst_123 = arith.constant 1.000000e+00 : f32
    %548 = vector.broadcast %cst_123 : f32 to vector<8x128xf32>
    %549 = arith.addf %548, %547 : vector<8x128xf32>
    %550 = arith.divf %548, %549 : vector<8x128xf32>
    %551 = arith.mulf %542, %516 : vector<8x128xf32>
    %552 = arith.mulf %536, %544 : vector<8x128xf32>
    %553 = arith.addf %551, %552 : vector<8x128xf32>
    %554 = math.tanh %553 : vector<8x128xf32>
    %555 = arith.mulf %550, %554 : vector<8x128xf32>
    %556 = arith.truncf %555 : vector<8x128xf32> to vector<8x128xbf16>
    %557 = arith.index_cast %c14_i32 : i32 to index
    %c0_124 = arith.constant 0 : index
    %c0_125 = arith.constant 0 : index
    %558 = vector.load %arg6[%557, %c0_124, %c0_125] : memref<16x8x128xbf16, #tpu.memory_space<vmem>>, vector<1x8x128xbf16>
    %559 = vector.shape_cast %558 : vector<1x8x128xbf16> to vector<8x128xbf16>
    %560 = vector.shape_cast %556 : vector<8x128xbf16> to vector<1x8x128xbf16>
    tpu.vector_store %arg6[%557, %c0_124, %c0_125], %560 {strides = array<i32>} : memref<16x8x128xbf16, #tpu.memory_space<vmem>>, vector<1x8x128xbf16>,
    %c15_i32 = arith.constant 15 : i32
    %561 = arith.index_cast %c15_i32 : i32 to index
    %c0_126 = arith.constant 0 : index
    %c0_127 = arith.constant 0 : index
    %562 = vector.load %arg2[%561, %c0_126, %c0_127] : memref<16x8x512xbf16, #tpu.memory_space<vmem>>, vector<1x8x512xbf16>
    %563 = vector.shape_cast %562 : vector<1x8x512xbf16> to vector<8x512xbf16>
    %564 = arith.extf %563 : vector<8x512xbf16> to vector<8x512xf32>
    %565 = arith.truncf %555 : vector<8x128xf32> to vector<8x128xbf16>
    %cst_128 = arith.constant dense<0.000000e+00> : vector<8x512xf32>
    %566 = tpu.matmul %565, %3, %cst_128 {dimension_numbers = #tpu.dot_dimension_numbers<[1], [0], [0], [1], [0, 0, 1, 1], [], []>} : vector<8x128xbf16>, vector<128x512xbf16>, vector<8x512xf32> -> vector<8x512xf32>
    %567 = arith.addf %564, %566 : vector<8x512xf32>
    %568 = vector.extract_strided_slice %567 {offsets = [0, 0], sizes = [8, 128], strides = [1, 1]} : vector<8x512xf32> to vector<8x128xf32>
    %569 = arith.negf %568 : vector<8x128xf32>
    %570 = math.exp %569 : vector<8x128xf32>
    %cst_129 = arith.constant 1.000000e+00 : f32
    %571 = vector.broadcast %cst_129 : f32 to vector<8x128xf32>
    %572 = arith.addf %571, %570 : vector<8x128xf32>
    %573 = arith.divf %571, %572 : vector<8x128xf32>
    %574 = vector.extract_strided_slice %567 {offsets = [0, 128], sizes = [8, 128], strides = [1, 1]} : vector<8x512xf32> to vector<8x128xf32>
    %575 = arith.negf %574 : vector<8x128xf32>
    %576 = math.exp %575 : vector<8x128xf32>
    %cst_130 = arith.constant 1.000000e+00 : f32
    %577 = vector.broadcast %cst_130 : f32 to vector<8x128xf32>
    %578 = arith.addf %577, %576 : vector<8x128xf32>
    %579 = arith.divf %577, %578 : vector<8x128xf32>
    %580 = vector.extract_strided_slice %567 {offsets = [0, 256], sizes = [8, 128], strides = [1, 1]} : vector<8x512xf32> to vector<8x128xf32>
    %581 = math.tanh %580 : vector<8x128xf32>
    %582 = vector.extract_strided_slice %567 {offsets = [0, 384], sizes = [8, 128], strides = [1, 1]} : vector<8x512xf32> to vector<8x128xf32>
    %583 = arith.negf %582 : vector<8x128xf32>
    %584 = math.exp %583 : vector<8x128xf32>
    %cst_131 = arith.constant 1.000000e+00 : f32
    %585 = vector.broadcast %cst_131 : f32 to vector<8x128xf32>
    %586 = arith.addf %585, %584 : vector<8x128xf32>
    %587 = arith.divf %585, %586 : vector<8x128xf32>
    %588 = arith.mulf %579, %553 : vector<8x128xf32>
    %589 = arith.mulf %573, %581 : vector<8x128xf32>
    %590 = arith.addf %588, %589 : vector<8x128xf32>
    %591 = math.tanh %590 : vector<8x128xf32>
    %592 = arith.mulf %587, %591 : vector<8x128xf32>
    %593 = arith.truncf %592 : vector<8x128xf32> to vector<8x128xbf16>
    %594 = arith.index_cast %c15_i32 : i32 to index
    %c0_132 = arith.constant 0 : index
    %c0_133 = arith.constant 0 : index
    %595 = vector.load %arg6[%594, %c0_132, %c0_133] : memref<16x8x128xbf16, #tpu.memory_space<vmem>>, vector<1x8x128xbf16>
    %596 = vector.shape_cast %595 : vector<1x8x128xbf16> to vector<8x128xbf16>
    %597 = vector.shape_cast %593 : vector<8x128xbf16> to vector<1x8x128xbf16>
    tpu.vector_store %arg6[%594, %c0_132, %c0_133], %597 {strides = array<i32>} : memref<16x8x128xbf16, #tpu.memory_space<vmem>>, vector<1x8x128xbf16>,
    %c16_i32 = arith.constant 16 : i32
    %c0_134 = arith.constant 0 : index
    %c0_135 = arith.constant 0 : index
    %598 = vector.load %arg9[%c0_134, %c0_135] : memref<8x128xf32, #tpu.memory_space<vmem>>, vector<8x128xf32>
    tpu.vector_store %arg9[%c0_134, %c0_135], %592 {strides = array<i32>} : memref<8x128xf32, #tpu.memory_space<vmem>>, vector<8x128xf32>,
    %c0_136 = arith.constant 0 : index
    %c0_137 = arith.constant 0 : index
    %599 = vector.load %arg10[%c0_136, %c0_137] : memref<8x128xf32, #tpu.memory_space<vmem>>, vector<8x128xf32>
    tpu.vector_store %arg10[%c0_136, %c0_137], %590 {strides = array<i32>} : memref<8x128xf32, #tpu.memory_space<vmem>>, vector<8x128xf32>,
    %c0_i32_138 = arith.constant 0 : i32
    %600 = arith.cmpi eq, %arg1, %c0_i32_138 : i32
    %601 = arith.extui %600 : i1 to i32
    %c0_i32_139 = arith.constant 0 : i32
    %602 = arith.cmpi ne, %601, %c0_i32_139 : i32
    scf.if %602 {
      %c0_140 = arith.constant 0 : index
      %c0_141 = arith.constant 0 : index
      %603 = vector.load %arg7[%c0_140, %c0_141] : memref<8x128xf32, #tpu.memory_space<vmem>>, vector<8x128xf32>
      tpu.vector_store %arg7[%c0_140, %c0_141], %592 {strides = array<i32>} : memref<8x128xf32, #tpu.memory_space<vmem>>, vector<8x128xf32>,
      %c0_142 = arith.constant 0 : index
      %c0_143 = arith.constant 0 : index
      %604 = vector.load %arg8[%c0_142, %c0_143] : memref<8x128xf32, #tpu.memory_space<vmem>>, vector<8x128xf32>
      tpu.vector_store %arg8[%c0_142, %c0_143], %590 {strides = array<i32>} : memref<8x128xf32, #tpu.memory_space<vmem>>, vector<8x128xf32>,
    } else {
    }
    return
  }
  func.func @transform_0(%arg0: i32, %arg1: i32) -> (i32, i32, i32) {
    %c0_i32 = arith.constant 0 : i32
    %c0_i32_0 = arith.constant 0 : i32
    return %arg1, %arg0, %c0_i32 : i32, i32, i32
  }
  func.func @transform_1(%arg0: i32, %arg1: i32) -> (i32, i32) {
    %c0_i32 = arith.constant 0 : i32
    %c0_i32_0 = arith.constant 0 : i32
    %c0_i32_1 = arith.constant 0 : i32
    return %c0_i32, %c0_i32_0 : i32, i32
  }
  func.func @transform_2(%arg0: i32, %arg1: i32) -> (i32, i32) {
    %c0_i32 = arith.constant 0 : i32
    %c0_i32_0 = arith.constant 0 : i32
    return %arg0, %c0_i32 : i32, i32
  }
  func.func @transform_3(%arg0: i32, %arg1: i32) -> (i32, i32) {
    %c0_i32 = arith.constant 0 : i32
    %c0_i32_0 = arith.constant 0 : i32
    return %arg0, %c0_i32 : i32, i32
  }
  func.func @transform_4(%arg0: i32, %arg1: i32) -> (i32, i32, i32) {
    %c0_i32 = arith.constant 0 : i32
    %c0_i32_0 = arith.constant 0 : i32
    return %arg1, %arg0, %c0_i32 : i32, i32, i32
  }
  func.func @transform_5(%arg0: i32, %arg1: i32) -> (i32, i32) {
    %c0_i32 = arith.constant 0 : i32
    %c0_i32_0 = arith.constant 0 : i32
    return %arg0, %c0_i32 : i32, i32
  }
  func.func @transform_6(%arg0: i32, %arg1: i32) -> (i32, i32) {
    %c0_i32 = arith.constant 0 : i32
    %c0_i32_0 = arith.constant 0 : i32
    return %arg0, %c0_i32 : i32, i32
  }
}

</mosaic_0001>

<bundles_post_ra>
// kernel: lm_forward.9
= control target key start
LH: loop header
LB: loop body
LE: loop exit
PB: predicated region body
PF: predicated region fallthrough
CT: control target
= control target key end

     0   :  { %8 = vsyncpa [#allocation4], 0  ;;  %s889_s0 = inlined_call_operand.hbm [shape: bf16[128,128], index: 0, kind: input, shape index: {}]   ;;  %s890_s1 = inlined_call_operand.hbm [shape: bf16[128,256], index: 1, kind: input, shape index: {}]   ;;  %s891_s2 = inlined_call_operand.hbm [shape: f32[1,256], index: 2, kind: input, shape index: {}]   ;;  %s892_s3 = inlined_call_operand.hbm [shape: f32[128,256], index: 3, kind: output, shape index: {}]  }
   0x1   :  { %9 = vsyncpa [#allocation7], 0 }
   0x2   :  { %10 = vsyncpa [#allocation5], 0  ;;  %s766_s12 = smov [#allocation6]   ;;  %s672_s16 = scalar_lea.hbm %s890_s1, 2048 }
   0x3   :  { %s28_s13 = sshll.u32 %s766_s12, 4  ;;  %p673_p0 = scmp.ne.s32.totalorder %s890_s1, %s672_s16  ;;  %s29_s13 = int_to_ptr.vmem [resolvable:$true] %s28_s13 }
   0x4   :  { %p676_p1 = scmp.lt.u32.totalorder %s672_s16, %s890_s1 }
   0x6   :  { %p678_p2 = pnand %p676_p1, %p673_p0 }
   0x8   :  { %681 = shalt.err (!%p678_p2)
}
   0x9   :  { %s682_s21 = scalar_lea.vmem %s29_s13, 2048  ;;  %p687_p4 = scmp.lt.s32.totalorder %s29_s13, %s29_s13 }
   0xa   :  { %p683_p3 = scmp.ne.s32.totalorder %s29_s13, %s682_s21  ;;  %p688_p5 = scmp.lt.s32.totalorder %s682_s21, %s682_s21 }
   0xc   :  { %p689_p6 = por %p688_p5, %p687_p4 }
   0xe   :  { %p690_p7 = pnand %p689_p6, %p683_p3 }
  0x10   :  { %693 = shalt.err (!%p690_p7)
}
  0x11   :  { %s767_s22 = smov 128   ;;  %s768_s23 = smov 8  }
  0x12   :  { %34 = dma.hbm_to_vmem [thread:$0]  %s890_s1, 2048, %s29_s13, [#allocation7], %s767_s22, %s767_s22, %s768_s23  }
  0x13   :  { %s769_s26 = smov [#allocation3]   ;;  %s694_s30 = scalar_lea.hbm %s889_s0, 1024 }
  0x14   :  { %s16_s27 = sshll.u32 %s769_s26, 4  ;;  %p695_p8 = scmp.ne.s32.totalorder %s889_s0, %s694_s30  ;;  %s17_s27 = int_to_ptr.vmem [resolvable:$true] %s16_s27 }
  0x15   :  { %p698_p9 = scmp.lt.u32.totalorder %s694_s30, %s889_s0 }
  0x17   :  { %p700_p10 = pnand %p698_p9, %p695_p8 }
  0x19   :  { %703 = shalt.err (!%p700_p10)
}
  0x1a   :  { %s704_s8 = scalar_lea.vmem %s17_s27, 1024  ;;  %p709_p12 = scmp.lt.s32.totalorder %s17_s27, %s17_s27 }
  0x1b   :  { %p705_p11 = scmp.ne.s32.totalorder %s17_s27, %s704_s8  ;;  %p710_p13 = scmp.lt.s32.totalorder %s704_s8, %s704_s8 }
  0x1d   :  { %p711_p0 = por %p710_p13, %p709_p12 }
  0x1f   :  { %p712_p1 = pnand %p711_p0, %p705_p11 }
  0x21   :  { %715 = shalt.err (!%p712_p1)
}
  0x22   :  { %s770_s1 = smov 64   ;;  %s771_s9 = smov 4  }
  0x23   :  { %22 = dma.hbm_to_vmem [thread:$0]  %s889_s0, 1024, %s17_s27, [#allocation4], %s770_s1, %s770_s1, %s771_s9  }
  0x24   :  { %s772_s12 = smov [#allocation8]   ;;  %s716_s16 = scalar_lea.hbm %s891_s2, 32 }
  0x25   :  { %s41_s13 = sshll.u32 %s772_s12, 4  ;;  %p717_p2 = scmp.ne.s32.totalorder %s891_s2, %s716_s16  ;;  %s42_s13 = int_to_ptr.vmem [resolvable:$true] %s41_s13 }
  0x26   :  { %p720_p3 = scmp.lt.u32.totalorder %s716_s16, %s891_s2 }
  0x28   :  { %p722_p4 = pnand %p720_p3, %p717_p2 }
  0x2a   :  { %725 = shalt.err (!%p722_p4)
}
  0x2b   :  { %s726_s21 = scalar_lea.vmem %s42_s13, 32  ;;  %p731_p6 = scmp.lt.s32.totalorder %s42_s13, %s42_s13 }
  0x2c   :  { %p727_p5 = scmp.ne.s32.totalorder %s42_s13, %s726_s21  ;;  %p732_p7 = scmp.lt.s32.totalorder %s726_s21, %s726_s21 }
  0x2e   :  { %p733_p8 = por %p732_p7, %p731_p6 }
  0x30   :  { %p734_p9 = pnand %p733_p8, %p727_p5 }
  0x32   :  { %737 = shalt.err (!%p734_p9)
}
  0x33   :  { %44 = dma.hbm_to_vmem [thread:$0]  %s891_s2, 32, %s42_s13, [#allocation7]  }
  0x34   :  { %760 = dma.done.wait [#allocation4], 1024  }
  0x35   :  { %761 = vsyncadd [#allocation4], 4294966272 }
  0x36   :  { %762 = dma.done.wait [#allocation7], 2080  }
  0x37   :  { %763 = vsyncadd [#allocation7], 4294965216  ;;  %v773_v0 = vmov 0   ;;  %v640_v1 = vld [vmem:[#allocation6 + $0x4] ss:$8 sps:$4 sm:$0xff]   ;;  %v668_v21 = vld [vmem:[#allocation3 + $0x10] sm:$0xff]   ;;  %v497_v25 = vlaneseq }
  0x38   :  { %315 = vmatprep.mubr.bf16.mxu0 %v773_v0  ;;  %355 = vmatprep.mubr.bf16.mxu1 %v773_v0  ;;  %v642_v2 = vld [vmem:[#allocation6] ss:$8 sps:$4 sm:$0xff]   ;;  %v643_v3 = vld [vmem:[#allocation6 + $0x14] ss:$8 sps:$4 sm:$0xff]   ;;  %v645_v4 = vld [vmem:[#allocation6 + $0x10] ss:$8 sps:$4 sm:$0xff]  }
  0x39   :  { %283 = vmatprep.subr.bf16.mxu0 %v640_v1  ;;  %613 = vmatprep.subr.bf16.mxu1 %v640_v1  ;;  %v646_v5 = vld [vmem:[#allocation6 + $0x24] ss:$8 sps:$4 sm:$0xff]   ;;  %v648_v6 = vld [vmem:[#allocation6 + $0x20] ss:$8 sps:$4 sm:$0xff]   ;;  %v649_v7 = vld [vmem:[#allocation6 + $0x34] ss:$8 sps:$4 sm:$0xff]  }
  0x3a   :  { %284 = vmatpush1.bf16.msra.mxu0 %v642_v2  ;;  %621 = vmatpush1.bf16.msra.mxu1 %v642_v2  ;;  %v651_v8 = vld [vmem:[#allocation6 + $0x30] ss:$8 sps:$4 sm:$0xff]   ;;  %v652_v9 = vld [vmem:[#allocation6 + $0x44] ss:$8 sps:$4 sm:$0xff]   ;;  %v654_v10 = vld [vmem:[#allocation6 + $0x40] ss:$8 sps:$4 sm:$0xff]  }
  0x3b   :  { %285 = vmatprep.subr.bf16.mxu0 %v643_v3  ;;  %614 = vmatprep.subr.bf16.mxu1 %v643_v3  ;;  %v655_v11 = vld [vmem:[#allocation6 + $0x54] ss:$8 sps:$4 sm:$0xff]   ;;  %v657_v12 = vld [vmem:[#allocation6 + $0x50] ss:$8 sps:$4 sm:$0xff]   ;;  %v658_v13 = vld [vmem:[#allocation6 + $0x64] ss:$8 sps:$4 sm:$0xff]  }
  0x3c   :  { %v660_v14 = vld [vmem:[#allocation6 + $0x60] ss:$8 sps:$4 sm:$0xff]   ;;  %v661_v15 = vld [vmem:[#allocation6 + $0x74] ss:$8 sps:$4 sm:$0xff]   ;;  %v663_v16 = vld [vmem:[#allocation6 + $0x70] ss:$8 sps:$4 sm:$0xff]  }
  0x3d   :  { %v664_v17 = vld [vmem:[#allocation3] sm:$0xff]   ;;  %v666_v19 = vld [vmem:[#allocation3 + $0x8] sm:$0xff]   ;;  %v669_v22 = vld [vmem:[#allocation3 + $0x30] sm:$0xff]   ;;  %v498_v26 = vshrl.u32 %v497_v25, 7  ;;  %s774_s2 = smov [#allocation9]  }
  0x3e   :  { %286 = vmatpush1.bf16.msra.mxu0 %v645_v4  ;;  %622 = vmatpush1.bf16.msra.mxu1 %v645_v4  ;;  %v665_v18 = vld [vmem:[#allocation3 + $0x20] sm:$0xff]   ;;  %v667_v20 = vld [vmem:[#allocation3 + $0x28] sm:$0xff]   ;;  %v670_v23 = vld [vmem:[#allocation3 + $0x18] sm:$0xff]   ;;  %s576_s23 = sshll.u32 %s774_s2, 4  ;;  %s577_s23 = int_to_ptr.vmem [resolvable:$true] %s576_s23 }
  0x3f   :  { %287 = vmatprep.subr.bf16.mxu0 %v646_v5  ;;  %615 = vmatprep.subr.bf16.mxu1 %v646_v5  ;;  %v671_v24 = vld [vmem:[#allocation3 + $0x38] sm:$0xff]   ;;  %v499_v27 = vsub.s32 0, %v498_v26  ;;  %v495_v28 = vld [vmem:[#allocation8] sm:$0x3]  ;;  %v503_v29 = vsub.s32 1, %v498_v26  ;;  %s738_s24 = scalar_lea.vmem %s577_s23, 4096  ;;  %p743_p11 = scmp.lt.s32.totalorder %s577_s23, %s577_s23 }
  0x40   :  { %p739_p10 = scmp.ne.s32.totalorder %s577_s23, %s738_s24  ;;  %p744_p12 = scmp.lt.s32.totalorder %s738_s24, %s738_s24 }
  0x41   :  { %v841_v30 = vrot.slane %v495_v28, %v499_v27  ;;  %v843_v31 = vrot.slane %v495_v28, %v503_v29 }
  0x42   :  { %288 = vmatpush1.bf16.msra.mxu0 %v648_v6  ;;  %623 = vmatpush1.bf16.msra.mxu1 %v648_v6  ;;  %p745_p13 = por %p744_p12, %p743_p11 }
  0x43   :  { %289 = vmatprep.subr.bf16.mxu0 %v649_v7  ;;  %616 = vmatprep.subr.bf16.mxu1 %v649_v7 }
  0x44   :  { %p746_p0 = pnand %p745_p13, %p739_p10 }
  0x46   :  { %290 = vmatpush1.bf16.msra.mxu0 %v651_v8  ;;  %624 = vmatpush1.bf16.msra.mxu1 %v651_v8 }
  0x47   :  { %291 = vmatprep.subr.bf16.mxu0 %v652_v9  ;;  %617 = vmatprep.subr.bf16.mxu1 %v652_v9 }
  0x4a   :  { %292 = vmatpush1.bf16.msra.mxu0 %v654_v10  ;;  %625 = vmatpush1.bf16.msra.mxu1 %v654_v10 }
  0x4b   :  { %293 = vmatprep.subr.bf16.mxu0 %v655_v11  ;;  %618 = vmatprep.subr.bf16.mxu1 %v655_v11 }
  0x4e   :  { %294 = vmatpush1.bf16.msra.mxu0 %v657_v12  ;;  %626 = vmatpush1.bf16.msra.mxu1 %v657_v12 }
  0x4f   :  { %295 = vmatprep.subr.bf16.mxu0 %v658_v13  ;;  %619 = vmatprep.subr.bf16.mxu1 %v658_v13 }
  0x52   :  { %296 = vmatpush1.bf16.msra.mxu0 %v660_v14  ;;  %627 = vmatpush1.bf16.msra.mxu1 %v660_v14 }
  0x53   :  { %297 = vmatprep.subr.bf16.mxu0 %v661_v15  ;;  %620 = vmatprep.subr.bf16.mxu1 %v661_v15 }
  0x56   :  { %298 = vmatpush1.bf16.msra.mxu0 %v663_v16  ;;  %628 = vmatpush1.bf16.msra.mxu1 %v663_v16 }
  0x59   :  { %316 = vmatmul.mubr.bf16.vlgmr.msra.gmra.mrb[0].mxu0 %v664_v17  ;;  %356 = vmatmul.mubr.bf16.vlgmr.msra.gmra.mrb[0].mxu1 %v665_v18 }
  0x5a   :  { %325 = vmatprep.mubr.bf16.mxu0 %v773_v0  ;;  %365 = vmatprep.mubr.bf16.mxu1 %v773_v0 }
  0x61   :  { %326 = vmatmul.mubr.bf16.gmra.mrb[4].mxu0 %v666_v19  ;;  %366 = vmatmul.mubr.bf16.gmra.mrb[4].mxu1 %v667_v20 }
  0x62   :  { %335 = vmatprep.mubr.bf16.mxu0 %v773_v0  ;;  %375 = vmatprep.mubr.bf16.mxu1 %v773_v0 }
  0x69   :  { %336 = vmatmul.mubr.bf16.gmra.mrb[8].mxu0 %v668_v21  ;;  %376 = vmatmul.mubr.bf16.gmra.mrb[8].mxu1 %v669_v22 }
  0x6a   :  { %345 = vmatprep.mubr.bf16.mxu0 %v773_v0  ;;  %385 = vmatprep.mubr.bf16.mxu1 %v773_v0 }
  0x71   :  { %346 = vmatmul.mubr.bf16.gmra.mrb[12].mxu0 %v670_v23  ;;  %386 = vmatmul.mubr.bf16.gmra.mrb[12].mxu1 %v671_v24 }
 0x12c   :  { %v317_v32 = vpop.f32.mrb[0].mxu0  ;;  %v357_v33 = vpop.f32.mrb[0].mxu1 }
 0x12d   :  { %v507_v34 = vadd.f32 %v841_v30, %v317_v32  ;;  %v523_v35 = vadd.f32 %v841_v30, %v357_v33  ;;  %v319_v36 = vpop.f32.mrb[1].mxu0  ;;  %v359_v37 = vpop.f32.mrb[1].mxu1 }
 0x12e   :  { %v508_v38 = vadd.f32 %v843_v31, %v319_v36  ;;  %v524_v39 = vadd.f32 %v843_v31, %v359_v37  ;;  %v321_v40 = vpop.f32.mrb[2].mxu0  ;;  %v361_v41 = vpop.f32.mrb[2].mxu1 }
 0x12f   :  { %539 = vst [vmem:[#allocation9] sm:$0xff] %v507_v34  ;;  %555 = vst [vmem:[#allocation9 + $0x80] sm:$0xff] %v523_v35  ;;  %v509_v42 = vadd.f32 %v841_v30, %v321_v40  ;;  %v525_v43 = vadd.f32 %v841_v30, %v361_v41  ;;  %v323_v44 = vpop.f32.mrb[3].mxu0  ;;  %v363_v45 = vpop.f32.mrb[3].mxu1 }
 0x130   :  { %540 = vst [vmem:[#allocation9 + $0x8] sm:$0xff] %v508_v38  ;;  %556 = vst [vmem:[#allocation9 + $0x88] sm:$0xff] %v524_v39  ;;  %v510_v46 = vadd.f32 %v843_v31, %v323_v44  ;;  %v526_v47 = vadd.f32 %v843_v31, %v363_v45 }
 0x131   :  { %541 = vst [vmem:[#allocation9 + $0x10] sm:$0xff] %v509_v42  ;;  %557 = vst [vmem:[#allocation9 + $0x90] sm:$0xff] %v525_v43 }
 0x132   :  { %542 = vst [vmem:[#allocation9 + $0x18] sm:$0xff] %v510_v46  ;;  %558 = vst [vmem:[#allocation9 + $0x98] sm:$0xff] %v526_v47 }
 0x134   :  { %v327_v48 = vpop.f32.mrb[4].mxu0  ;;  %v367_v49 = vpop.f32.mrb[4].mxu1 }
 0x135   :  { %v511_v50 = vadd.f32 %v841_v30, %v327_v48  ;;  %v527_v51 = vadd.f32 %v841_v30, %v367_v49  ;;  %v329_v52 = vpop.f32.mrb[5].mxu0  ;;  %v369_v53 = vpop.f32.mrb[5].mxu1 }
 0x136   :  { %v512_v54 = vadd.f32 %v843_v31, %v329_v52  ;;  %v528_v55 = vadd.f32 %v843_v31, %v369_v53  ;;  %v331_v56 = vpop.f32.mrb[6].mxu0  ;;  %v371_v57 = vpop.f32.mrb[6].mxu1 }
 0x137   :  { %543 = vst [vmem:[#allocation9 + $0x20] sm:$0xff] %v511_v50  ;;  %559 = vst [vmem:[#allocation9 + $0xa0] sm:$0xff] %v527_v51  ;;  %v513_v58 = vadd.f32 %v841_v30, %v331_v56  ;;  %v529_v59 = vadd.f32 %v841_v30, %v371_v57  ;;  %v333_v60 = vpop.f32.mrb[7].mxu0  ;;  %v373_v61 = vpop.f32.mrb[7].mxu1 }
 0x138   :  { %544 = vst [vmem:[#allocation9 + $0x28] sm:$0xff] %v512_v54  ;;  %560 = vst [vmem:[#allocation9 + $0xa8] sm:$0xff] %v528_v55  ;;  %v514_v62 = vadd.f32 %v843_v31, %v333_v60  ;;  %v530_v63 = vadd.f32 %v843_v31, %v373_v61 }
 0x139   :  { %545 = vst [vmem:[#allocation9 + $0x30] sm:$0xff] %v513_v58  ;;  %561 = vst [vmem:[#allocation9 + $0xb0] sm:$0xff] %v529_v59 }
 0x13a   :  { %546 = vst [vmem:[#allocation9 + $0x38] sm:$0xff] %v514_v62  ;;  %562 = vst [vmem:[#allocation9 + $0xb8] sm:$0xff] %v530_v63 }
 0x13c   :  { %v337_v0 = vpop.f32.mrb[8].mxu0  ;;  %v377_v1 = vpop.f32.mrb[8].mxu1 }
 0x13d   :  { %v515_v2 = vadd.f32 %v841_v30, %v337_v0  ;;  %v531_v3 = vadd.f32 %v841_v30, %v377_v1  ;;  %v339_v4 = vpop.f32.mrb[9].mxu0  ;;  %v379_v5 = vpop.f32.mrb[9].mxu1 }
 0x13e   :  { %v516_v6 = vadd.f32 %v843_v31, %v339_v4  ;;  %v532_v7 = vadd.f32 %v843_v31, %v379_v5  ;;  %v341_v8 = vpop.f32.mrb[10].mxu0  ;;  %v381_v9 = vpop.f32.mrb[10].mxu1 }
 0x13f   :  { %547 = vst [vmem:[#allocation9 + $0x40] sm:$0xff] %v515_v2  ;;  %563 = vst [vmem:[#allocation9 + $0xc0] sm:$0xff] %v531_v3  ;;  %v517_v10 = vadd.f32 %v841_v30, %v341_v8  ;;  %v533_v11 = vadd.f32 %v841_v30, %v381_v9  ;;  %v343_v12 = vpop.f32.mrb[11].mxu0  ;;  %v383_v13 = vpop.f32.mrb[11].mxu1 }
 0x140   :  { %548 = vst [vmem:[#allocation9 + $0x48] sm:$0xff] %v516_v6  ;;  %564 = vst [vmem:[#allocation9 + $0xc8] sm:$0xff] %v532_v7  ;;  %v518_v14 = vadd.f32 %v843_v31, %v343_v12  ;;  %v534_v15 = vadd.f32 %v843_v31, %v383_v13 }
 0x141   :  { %549 = vst [vmem:[#allocation9 + $0x50] sm:$0xff] %v517_v10  ;;  %565 = vst [vmem:[#allocation9 + $0xd0] sm:$0xff] %v533_v11 }
 0x142   :  { %550 = vst [vmem:[#allocation9 + $0x58] sm:$0xff] %v518_v14  ;;  %566 = vst [vmem:[#allocation9 + $0xd8] sm:$0xff] %v534_v15 }
 0x144   :  { %v347_v16 = vpop.f32.mrb[12].mxu0  ;;  %v387_v17 = vpop.f32.mrb[12].mxu1 }
 0x145   :  { %v519_v18 = vadd.f32 %v841_v30, %v347_v16  ;;  %v535_v19 = vadd.f32 %v841_v30, %v387_v17  ;;  %v349_v20 = vpop.f32.mrb[13].mxu0  ;;  %v389_v21 = vpop.f32.mrb[13].mxu1 }
 0x146   :  { %v520_v22 = vadd.f32 %v843_v31, %v349_v20  ;;  %v536_v23 = vadd.f32 %v843_v31, %v389_v21  ;;  %v351_v24 = vpop.f32.mrb[14].mxu0  ;;  %v391_v25 = vpop.f32.mrb[14].mxu1 }
 0x147   :  { %551 = vst [vmem:[#allocation9 + $0x60] sm:$0xff] %v519_v18  ;;  %567 = vst [vmem:[#allocation9 + $0xe0] sm:$0xff] %v535_v19  ;;  %v521_v26 = vadd.f32 %v841_v30, %v351_v24  ;;  %v537_v27 = vadd.f32 %v841_v30, %v391_v25  ;;  %v353_v28 = vpop.f32.mrb[15].mxu0  ;;  %v393_v29 = vpop.f32.mrb[15].mxu1 }
 0x148   :  { %552 = vst [vmem:[#allocation9 + $0x68] sm:$0xff] %v520_v22  ;;  %568 = vst [vmem:[#allocation9 + $0xe8] sm:$0xff] %v536_v23  ;;  %v522_v32 = vadd.f32 %v843_v31, %v353_v28  ;;  %v538_v33 = vadd.f32 %v843_v31, %v393_v29 }
 0x149   :  { %553 = vst [vmem:[#allocation9 + $0x70] sm:$0xff] %v521_v26  ;;  %569 = vst [vmem:[#allocation9 + $0xf0] sm:$0xff] %v537_v27 }
 0x14a   :  { %554 = vst [vmem:[#allocation9 + $0x78] sm:$0xff] %v522_v32  ;;  %570 = vst [vmem:[#allocation9 + $0xf8] sm:$0xff] %v538_v33 }
 0x14b   :  { %749 = shalt.err (!%p746_p0)
}
 0x14c   :  { %s750_s27 = scalar_lea.hbm %s892_s3, 4096 }
 0x14d   :  { %p751_p1 = scmp.ne.s32.totalorder %s892_s3, %s750_s27  ;;  %p754_p2 = scmp.lt.u32.totalorder %s750_s27, %s892_s3 }
 0x14f   :  { %p756_p3 = pnand %p754_p2, %p751_p1 }
 0x151   :  { %759 = shalt.err (!%p756_p3)
}
 0x152   :  { %s775_s5 = smov 256   ;;  %s776_s6 = smov 16  }
 0x153   :  { %582 = dma.vmem_to_hbm [thread:$0]  %s577_s23, 4096, %s892_s3, [#allocation5], %s775_s5, %s775_s5, %s776_s6  }
 0x154   :  { %764 = dma.done.wait [#allocation5], 4096  }
 0x155   :  { %765 = vsyncadd [#allocation5], 4294963200 }
 0x156   :  { %586 = vsyncpa [#allocation4], 1 }
 0x157   :  { %587 = vsyncpa [#allocation7], 1 }
 0x158   :  { %588 = vsyncpa [#allocation5], 1 }

// kernel: lm_forward.5
= control target key start
LH: loop header
LB: loop body
LE: loop exit
PB: predicated region body
PF: predicated region fallthrough
CT: control target
= control target key end

     0   :  { %8 = vsyncpa [#allocation4], 0  ;;  %s1570_s0 = inlined_call_operand.hbm [shape: f32[128,128], index: 0, kind: input, shape index: {}]   ;;  %s1571_s1 = inlined_call_operand.hbm [shape: bf16[128,512], index: 1, kind: input, shape index: {}]   ;;  %s1572_s2 = inlined_call_operand.hbm [shape: f32[1,512], index: 2, kind: input, shape index: {}]   ;;  %s1573_s3 = inlined_call_operand.hbm [shape: bf16[128,512], index: 3, kind: output, shape index: {}]  }
   0x1   :  { %9 = vsyncpa [#allocation7], 0 }
   0x2   :  { %10 = vsyncpa [#allocation5], 0  ;;  %s1399_s12 = smov [#allocation6]   ;;  %s1305_s16 = scalar_lea.hbm %s1571_s1, 4096 }
   0x3   :  { %s28_s13 = sshll.u32 %s1399_s12, 4  ;;  %p1306_p0 = scmp.ne.s32.totalorder %s1571_s1, %s1305_s16  ;;  %s29_s13 = int_to_ptr.vmem [resolvable:$true] %s28_s13 }
   0x4   :  { %p1309_p1 = scmp.lt.u32.totalorder %s1305_s16, %s1571_s1 }
   0x6   :  { %p1311_p2 = pnand %p1309_p1, %p1306_p0 }
   0x8   :  { %1314 = shalt.err (!%p1311_p2)
}
   0x9   :  { %s1315_s21 = scalar_lea.vmem %s29_s13, 4096  ;;  %p1320_p4 = scmp.lt.s32.totalorder %s29_s13, %s29_s13 }
   0xa   :  { %p1316_p3 = scmp.ne.s32.totalorder %s29_s13, %s1315_s21  ;;  %p1321_p5 = scmp.lt.s32.totalorder %s1315_s21, %s1315_s21 }
   0xc   :  { %p1322_p6 = por %p1321_p5, %p1320_p4 }
   0xe   :  { %p1323_p7 = pnand %p1322_p6, %p1316_p3 }
  0x10   :  { %1326 = shalt.err (!%p1323_p7)
}
  0x11   :  { %s1400_s22 = smov 256   ;;  %s1401_s23 = smov 16  }
  0x12   :  { %34 = dma.hbm_to_vmem [thread:$0]  %s1571_s1, 4096, %s29_s13, [#allocation7], %s1400_s22, %s1400_s22, %s1401_s23  }
  0x13   :  { %s1402_s26 = smov [#allocation3]   ;;  %s1327_s30 = scalar_lea.hbm %s1570_s0, 2048 }
  0x14   :  { %s16_s27 = sshll.u32 %s1402_s26, 4  ;;  %p1328_p8 = scmp.ne.s32.totalorder %s1570_s0, %s1327_s30  ;;  %s17_s27 = int_to_ptr.vmem [resolvable:$true] %s16_s27 }
  0x15   :  { %p1331_p9 = scmp.lt.u32.totalorder %s1327_s30, %s1570_s0 }
  0x17   :  { %p1333_p10 = pnand %p1331_p9, %p1328_p8 }
  0x19   :  { %1336 = shalt.err (!%p1333_p10)
}
  0x1a   :  { %s1337_s8 = scalar_lea.vmem %s17_s27, 2048  ;;  %p1342_p12 = scmp.lt.s32.totalorder %s17_s27, %s17_s27 }
  0x1b   :  { %p1338_p11 = scmp.ne.s32.totalorder %s17_s27, %s1337_s8  ;;  %p1343_p13 = scmp.lt.s32.totalorder %s1337_s8, %s1337_s8 }
  0x1d   :  { %p1344_p0 = por %p1343_p13, %p1342_p12 }
  0x1f   :  { %p1345_p1 = pnand %p1344_p0, %p1338_p11 }
  0x21   :  { %1348 = shalt.err (!%p1345_p1)
}
  0x22   :  { %s1403_s1 = smov 128   ;;  %s1404_s9 = smov 8  }
  0x23   :  { %22 = dma.hbm_to_vmem [thread:$0]  %s1570_s0, 2048, %s17_s27, [#allocation4], %s1403_s1, %s1403_s1, %s1404_s9  }
  0x24   :  { %s1405_s12 = smov [#allocation8]   ;;  %s1349_s16 = scalar_lea.hbm %s1572_s2, 64 }
  0x25   :  { %s41_s13 = sshll.u32 %s1405_s12, 4  ;;  %p1350_p2 = scmp.ne.s32.totalorder %s1572_s2, %s1349_s16  ;;  %s42_s13 = int_to_ptr.vmem [resolvable:$true] %s41_s13 }
  0x26   :  { %p1353_p3 = scmp.lt.u32.totalorder %s1349_s16, %s1572_s2 }
  0x28   :  { %p1355_p4 = pnand %p1353_p3, %p1350_p2 }
  0x2a   :  { %1358 = shalt.err (!%p1355_p4)
}
  0x2b   :  { %s1359_s21 = scalar_lea.vmem %s42_s13, 64  ;;  %p1364_p6 = scmp.lt.s32.totalorder %s42_s13, %s42_s13 }
  0x2c   :  { %p1360_p5 = scmp.ne.s32.totalorder %s42_s13, %s1359_s21  ;;  %p1365_p7 = scmp.lt.s32.totalorder %s1359_s21, %s1359_s21 }
  0x2e   :  { %p1366_p8 = por %p1365_p7, %p1364_p6 }
  0x30   :  { %p1367_p9 = pnand %p1366_p8, %p1360_p5 }
  0x32   :  { %1370 = shalt.err (!%p1367_p9)
}
  0x33   :  { %44 = dma.hbm_to_vmem [thread:$0]  %s1572_s2, 64, %s42_s13, [#allocation7]  }
  0x34   :  { %1393 = dma.done.wait [#allocation4], 2048  }
  0x35   :  { %1394 = vsyncadd [#allocation4], 4294965248 }
  0x36   :  { %1395 = dma.done.wait [#allocation7], 4160  }
  0x37   :  { %1396 = vsyncadd [#allocation7], 4294963136  ;;  %v1406_v0 = vmov 0   ;;  %v1257_v1 = vld [vmem:[#allocation6 + $0x4] ss:$16 sps:$4 sm:$0xff]   ;;  %v188_v34 = vld [vmem:[#allocation3 + $0x8] sm:$0xff]  ;;  %v826_v57 = vlaneseq }
  0x38   :  { %435 = vmatprep.mubr.bf16.mxu0 %v1406_v0  ;;  %548 = vmatprep.mubr.bf16.mxu1 %v1406_v0  ;;  %v1259_v2 = vld [vmem:[#allocation6 + $0xc] ss:$16 sps:$4 sm:$0xff]   ;;  %v1261_v3 = vld [vmem:[#allocation6] ss:$16 sps:$4 sm:$0xff]   ;;  %v1262_v4 = vld [vmem:[#allocation6 + $0x8] ss:$16 sps:$4 sm:$0xff]  }
  0x39   :  { %403 = vmatprep.subr.bf16.mxu0 %v1257_v1  ;;  %516 = vmatprep.subr.bf16.mxu1 %v1259_v2  ;;  %v1263_v5 = vld [vmem:[#allocation6 + $0x24] ss:$16 sps:$4 sm:$0xff]   ;;  %v1265_v6 = vld [vmem:[#allocation6 + $0x2c] ss:$16 sps:$4 sm:$0xff]   ;;  %v1267_v7 = vld [vmem:[#allocation6 + $0x20] ss:$16 sps:$4 sm:$0xff]  }
  0x3a   :  { %404 = vmatpush1.bf16.msra.mxu0 %v1261_v3  ;;  %517 = vmatpush1.bf16.msra.mxu1 %v1262_v4  ;;  %v1268_v8 = vld [vmem:[#allocation6 + $0x28] ss:$16 sps:$4 sm:$0xff]   ;;  %v1269_v9 = vld [vmem:[#allocation6 + $0x44] ss:$16 sps:$4 sm:$0xff]   ;;  %v1271_v10 = vld [vmem:[#allocation6 + $0x4c] ss:$16 sps:$4 sm:$0xff]  }
  0x3b   :  { %405 = vmatprep.subr.bf16.mxu0 %v1263_v5  ;;  %518 = vmatprep.subr.bf16.mxu1 %v1265_v6  ;;  %v1273_v11 = vld [vmem:[#allocation6 + $0x40] ss:$16 sps:$4 sm:$0xff]   ;;  %v1274_v12 = vld [vmem:[#allocation6 + $0x48] ss:$16 sps:$4 sm:$0xff]   ;;  %v1275_v13 = vld [vmem:[#allocation6 + $0x64] ss:$16 sps:$4 sm:$0xff]  }
  0x3c   :  { %v1277_v14 = vld [vmem:[#allocation6 + $0x6c] ss:$16 sps:$4 sm:$0xff]   ;;  %v1279_v15 = vld [vmem:[#allocation6 + $0x60] ss:$16 sps:$4 sm:$0xff]   ;;  %v1280_v16 = vld [vmem:[#allocation6 + $0x68] ss:$16 sps:$4 sm:$0xff]  }
  0x3d   :  { %v1281_v17 = vld [vmem:[#allocation6 + $0x84] ss:$16 sps:$4 sm:$0xff]   ;;  %v1283_v18 = vld [vmem:[#allocation6 + $0x8c] ss:$16 sps:$4 sm:$0xff]   ;;  %v1285_v19 = vld [vmem:[#allocation6 + $0x80] ss:$16 sps:$4 sm:$0xff]  }
  0x3e   :  { %406 = vmatpush1.bf16.msra.mxu0 %v1267_v7  ;;  %519 = vmatpush1.bf16.msra.mxu1 %v1268_v8  ;;  %v1286_v20 = vld [vmem:[#allocation6 + $0x88] ss:$16 sps:$4 sm:$0xff]   ;;  %v1287_v21 = vld [vmem:[#allocation6 + $0xa4] ss:$16 sps:$4 sm:$0xff]   ;;  %v1289_v22 = vld [vmem:[#allocation6 + $0xac] ss:$16 sps:$4 sm:$0xff]  }
  0x3f   :  { %407 = vmatprep.subr.bf16.mxu0 %v1269_v9  ;;  %520 = vmatprep.subr.bf16.mxu1 %v1271_v10  ;;  %v1291_v23 = vld [vmem:[#allocation6 + $0xa0] ss:$16 sps:$4 sm:$0xff]   ;;  %v1292_v24 = vld [vmem:[#allocation6 + $0xa8] ss:$16 sps:$4 sm:$0xff]   ;;  %v1293_v25 = vld [vmem:[#allocation6 + $0xc4] ss:$16 sps:$4 sm:$0xff]  }
  0x40   :  { %v1295_v26 = vld [vmem:[#allocation6 + $0xcc] ss:$16 sps:$4 sm:$0xff]   ;;  %v1297_v27 = vld [vmem:[#allocation6 + $0xc0] ss:$16 sps:$4 sm:$0xff]   ;;  %v1298_v28 = vld [vmem:[#allocation6 + $0xc8] ss:$16 sps:$4 sm:$0xff]  }
  0x41   :  { %v1299_v29 = vld [vmem:[#allocation6 + $0xe4] ss:$16 sps:$4 sm:$0xff]   ;;  %v1301_v30 = vld [vmem:[#allocation6 + $0xec] ss:$16 sps:$4 sm:$0xff]   ;;  %v1303_v31 = vld [vmem:[#allocation6 + $0xe0] ss:$16 sps:$4 sm:$0xff]  }
  0x42   :  { %408 = vmatpush1.bf16.msra.mxu0 %v1273_v11  ;;  %521 = vmatpush1.bf16.msra.mxu1 %v1274_v12  ;;  %v1304_v32 = vld [vmem:[#allocation6 + $0xe8] ss:$16 sps:$4 sm:$0xff]   ;;  %v187_v33 = vld [vmem:[#allocation3] sm:$0xff]  ;;  %v189_v36 = vld [vmem:[#allocation3 + $0x10] sm:$0xff]  ;;  %v827_v58 = vshrl.u32 %v826_v57, 7  ;;  %s1407_s2 = smov [#allocation9]  }
  0x43   :  { %409 = vmatprep.subr.bf16.mxu0 %v1275_v13  ;;  %522 = vmatprep.subr.bf16.mxu1 %v1277_v14  ;;  %v203_v35 = vpack.c.bf16 %v188_v34, %v187_v33  ;;  %v190_v37 = vld [vmem:[#allocation3 + $0x18] sm:$0xff]  ;;  %v191_v39 = vld [vmem:[#allocation3 + $0x20] sm:$0xff]  ;;  %v192_v40 = vld [vmem:[#allocation3 + $0x28] sm:$0xff]  ;;  %s1139_s25 = sshll.u32 %s1407_s2, 4  ;;  %s1140_s25 = int_to_ptr.vmem [resolvable:$true] %s1139_s25 }
  0x44   :  { %v204_v38 = vpack.c.bf16 %v190_v37, %v189_v36  ;;  %v205_v41 = vpack.c.bf16 %v192_v40, %v191_v39  ;;  %v193_v42 = vld [vmem:[#allocation3 + $0x30] sm:$0xff]  ;;  %v194_v43 = vld [vmem:[#allocation3 + $0x38] sm:$0xff]  ;;  %v195_v45 = vld [vmem:[#allocation3 + $0x40] sm:$0xff]  ;;  %v828_v59 = vsub.s32 0, %v827_v58  ;;  %v836_v60 = vsub.s32 2, %v827_v58  ;;  %s1371_s26 = scalar_lea.vmem %s1140_s25, 4096  ;;  %p1376_p11 = scmp.lt.s32.totalorder %s1140_s25, %s1140_s25 }
  0x45   :  { %v206_v44 = vpack.c.bf16 %v194_v43, %v193_v42  ;;  %v196_v46 = vld [vmem:[#allocation3 + $0x48] sm:$0xff]  ;;  %v197_v48 = vld [vmem:[#allocation3 + $0x50] sm:$0xff]  ;;  %v198_v49 = vld [vmem:[#allocation3 + $0x58] sm:$0xff]  ;;  %v832_v62 = vsub.s32 1, %v827_v58  ;;  %v840_v63 = vsub.s32 3, %v827_v58  ;;  %p1372_p10 = scmp.ne.s32.totalorder %s1140_s25, %s1371_s26  ;;  %p1377_p12 = scmp.lt.s32.totalorder %s1371_s26, %s1371_s26 }
  0x46   :  { %410 = vmatpush1.bf16.msra.mxu0 %v1279_v15  ;;  %523 = vmatpush1.bf16.msra.mxu1 %v1280_v16  ;;  %v207_v47 = vpack.c.bf16 %v196_v46, %v195_v45  ;;  %v208_v50 = vpack.c.bf16 %v198_v49, %v197_v48  ;;  %v199_v51 = vld [vmem:[#allocation3 + $0x60] sm:$0xff]  ;;  %v200_v52 = vld [vmem:[#allocation3 + $0x68] sm:$0xff]  ;;  %v201_v54 = vld [vmem:[#allocation3 + $0x70] sm:$0xff] }
  0x47   :  { %411 = vmatprep.subr.bf16.mxu0 %v1281_v17  ;;  %524 = vmatprep.subr.bf16.mxu1 %v1283_v18  ;;  %v209_v53 = vpack.c.bf16 %v200_v52, %v199_v51  ;;  %v202_v55 = vld [vmem:[#allocation3 + $0x78] sm:$0xff]  ;;  %v824_v61 = vld [vmem:[#allocation8] sm:$0xf]  ;;  %p1378_p13 = por %p1377_p12, %p1376_p11 }
  0x48   :  { %v210_v56 = vpack.c.bf16 %v202_v55, %v201_v54  ;;  %v1483_v1 = vrot.slane %v824_v61, %v828_v59  ;;  %v1485_v2 = vrot.slane %v824_v61, %v836_v60  ;;  %v1487_v3 = vrot.slane %v824_v61, %v832_v62 }
  0x49   :  { %v1489_v4 = vrot.slane %v824_v61, %v840_v63  ;;  %p1379_p0 = pnand %p1378_p13, %p1372_p10 }
  0x4a   :  { %412 = vmatpush1.bf16.msra.mxu0 %v1285_v19  ;;  %525 = vmatpush1.bf16.msra.mxu1 %v1286_v20 }
  0x4b   :  { %413 = vmatprep.subr.bf16.mxu0 %v1287_v21  ;;  %526 = vmatprep.subr.bf16.mxu1 %v1289_v22 }
  0x4e   :  { %414 = vmatpush1.bf16.msra.mxu0 %v1291_v23  ;;  %527 = vmatpush1.bf16.msra.mxu1 %v1292_v24 }
  0x4f   :  { %415 = vmatprep.subr.bf16.mxu0 %v1293_v25  ;;  %528 = vmatprep.subr.bf16.mxu1 %v1295_v26 }
  0x52   :  { %416 = vmatpush1.bf16.msra.mxu0 %v1297_v27  ;;  %529 = vmatpush1.bf16.msra.mxu1 %v1298_v28 }
  0x53   :  { %417 = vmatprep.subr.bf16.mxu0 %v1299_v29  ;;  %530 = vmatprep.subr.bf16.mxu1 %v1301_v30 }
  0x56   :  { %418 = vmatpush1.bf16.msra.mxu0 %v1303_v31  ;;  %531 = vmatpush1.bf16.msra.mxu1 %v1304_v32 }
  0x59   :  { %436 = vmatmul.mubr.bf16.vlgmr.msra.gmra.mrb[0].mxu0 %v203_v35  ;;  %549 = vmatmul.mubr.bf16.vlgmr.msra.gmra.mrb[0].mxu1 %v203_v35 }
  0x5a   :  { %445 = vmatprep.mubr.bf16.mxu0 %v1406_v0  ;;  %558 = vmatprep.mubr.bf16.mxu1 %v1406_v0 }
  0x61   :  { %446 = vmatmul.mubr.bf16.gmra.mrb[4].mxu0 %v204_v38  ;;  %559 = vmatmul.mubr.bf16.gmra.mrb[4].mxu1 %v204_v38 }
  0x62   :  { %455 = vmatprep.mubr.bf16.mxu0 %v1406_v0  ;;  %568 = vmatprep.mubr.bf16.mxu1 %v1406_v0 }
  0x69   :  { %456 = vmatmul.mubr.bf16.gmra.mrb[8].mxu0 %v205_v41  ;;  %569 = vmatmul.mubr.bf16.gmra.mrb[8].mxu1 %v205_v41 }
  0x6a   :  { %465 = vmatprep.mubr.bf16.mxu0 %v1406_v0  ;;  %578 = vmatprep.mubr.bf16.mxu1 %v1406_v0 }
  0x71   :  { %466 = vmatmul.mubr.bf16.gmra.mrb[12].mxu0 %v206_v44  ;;  %579 = vmatmul.mubr.bf16.gmra.mrb[12].mxu1 %v206_v44 }
  0x72   :  { %475 = vmatprep.mubr.bf16.mxu0 %v1406_v0  ;;  %588 = vmatprep.mubr.bf16.mxu1 %v1406_v0 }
  0x79   :  { %476 = vmatmul.mubr.bf16.gmra.mrb[16].mxu0 %v207_v47  ;;  %589 = vmatmul.mubr.bf16.gmra.mrb[16].mxu1 %v207_v47 }
  0x7a   :  { %485 = vmatprep.mubr.bf16.mxu0 %v1406_v0  ;;  %598 = vmatprep.mubr.bf16.mxu1 %v1406_v0 }
  0x81   :  { %486 = vmatmul.mubr.bf16.gmra.mrb[20].mxu0 %v208_v50  ;;  %599 = vmatmul.mubr.bf16.gmra.mrb[20].mxu1 %v208_v50 }
  0x82   :  { %495 = vmatprep.mubr.bf16.mxu0 %v1406_v0  ;;  %608 = vmatprep.mubr.bf16.mxu1 %v1406_v0 }
  0x89   :  { %496 = vmatmul.mubr.bf16.gmra.mrb[24].mxu0 %v209_v53  ;;  %609 = vmatmul.mubr.bf16.gmra.mrb[24].mxu1 %v209_v53 }
  0x8a   :  { %505 = vmatprep.mubr.bf16.mxu0 %v1406_v0  ;;  %618 = vmatprep.mubr.bf16.mxu1 %v1406_v0 }
  0x91   :  { %506 = vmatmul.mubr.bf16.gmra.mrb[28].mxu0 %v210_v56  ;;  %619 = vmatmul.mubr.bf16.gmra.mrb[28].mxu1 %v210_v56 }
 0x12c   :  { %v437_v0 = vpop.f32.mrb[0].mxu0  ;;  %v550_v5 = vpop.f32.mrb[0].mxu1 }
 0x12d   :  { %v846_v6 = vadd.f32 %v1483_v1, %v437_v0  ;;  %v848_v7 = vadd.f32 %v1485_v2, %v550_v5  ;;  %v439_v8 = vpop.f32.mrb[1].mxu0  ;;  %v552_v9 = vpop.f32.mrb[1].mxu1 }
 0x12e   :  { %v847_v10 = vadd.f32 %v1487_v3, %v439_v8  ;;  %v849_v11 = vadd.f32 %v1489_v4, %v552_v9  ;;  %v441_v12 = vpop.f32.mrb[2].mxu0  ;;  %v554_v13 = vpop.f32.mrb[2].mxu1 }
 0x12f   :  { %v850_v14 = vadd.f32 %v1483_v1, %v441_v12  ;;  %v852_v15 = vadd.f32 %v1485_v2, %v554_v13  ;;  %v443_v16 = vpop.f32.mrb[3].mxu0  ;;  %v556_v17 = vpop.f32.mrb[3].mxu1 }
 0x130   :  { %v1216_v18 = vpack.c.bf16 %v847_v10, %v846_v6  ;;  %v1217_v19 = vpack.c.bf16 %v849_v11, %v848_v7  ;;  %v851_v20 = vadd.f32 %v1487_v3, %v443_v16  ;;  %v853_v21 = vadd.f32 %v1489_v4, %v556_v17 }
 0x132   :  { %1102 = vst [vmem:[#allocation9] sm:$0xff] %v1216_v18  ;;  %1103 = vst [vmem:[#allocation9 + $0x8] sm:$0xff] %v1217_v19  ;;  %v1218_v22 = vpack.c.bf16 %v851_v20, %v850_v14  ;;  %v1219_v23 = vpack.c.bf16 %v853_v21, %v852_v15 }
 0x134   :  { %1104 = vst [vmem:[#allocation9 + $0x10] sm:$0xff] %v1218_v22  ;;  %1105 = vst [vmem:[#allocation9 + $0x18] sm:$0xff] %v1219_v23  ;;  %v447_v24 = vpop.f32.mrb[4].mxu0  ;;  %v560_v25 = vpop.f32.mrb[4].mxu1 }
 0x135   :  { %v854_v26 = vadd.f32 %v1483_v1, %v447_v24  ;;  %v856_v27 = vadd.f32 %v1485_v2, %v560_v25  ;;  %v449_v28 = vpop.f32.mrb[5].mxu0  ;;  %v562_v29 = vpop.f32.mrb[5].mxu1 }
 0x136   :  { %v855_v30 = vadd.f32 %v1487_v3, %v449_v28  ;;  %v857_v31 = vadd.f32 %v1489_v4, %v562_v29  ;;  %v451_v32 = vpop.f32.mrb[6].mxu0  ;;  %v564_v33 = vpop.f32.mrb[6].mxu1 }
 0x137   :  { %v858_v34 = vadd.f32 %v1483_v1, %v451_v32  ;;  %v860_v35 = vadd.f32 %v1485_v2, %v564_v33  ;;  %v453_v36 = vpop.f32.mrb[7].mxu0  ;;  %v566_v37 = vpop.f32.mrb[7].mxu1 }
 0x138   :  { %v1220_v38 = vpack.c.bf16 %v855_v30, %v854_v26  ;;  %v1221_v39 = vpack.c.bf16 %v857_v31, %v856_v27  ;;  %v859_v40 = vadd.f32 %v1487_v3, %v453_v36  ;;  %v861_v41 = vadd.f32 %v1489_v4, %v566_v37 }
 0x13a   :  { %1106 = vst [vmem:[#allocation9 + $0x20] sm:$0xff] %v1220_v38  ;;  %1107 = vst [vmem:[#allocation9 + $0x28] sm:$0xff] %v1221_v39  ;;  %v1222_v42 = vpack.c.bf16 %v859_v40, %v858_v34  ;;  %v1223_v43 = vpack.c.bf16 %v861_v41, %v860_v35 }
 0x13c   :  { %1108 = vst [vmem:[#allocation9 + $0x30] sm:$0xff] %v1222_v42  ;;  %1109 = vst [vmem:[#allocation9 + $0x38] sm:$0xff] %v1223_v43  ;;  %v457_v44 = vpop.f32.mrb[8].mxu0  ;;  %v570_v45 = vpop.f32.mrb[8].mxu1 }
 0x13d   :  { %v862_v46 = vadd.f32 %v1483_v1, %v457_v44  ;;  %v864_v47 = vadd.f32 %v1485_v2, %v570_v45  ;;  %v459_v48 = vpop.f32.mrb[9].mxu0  ;;  %v572_v49 = vpop.f32.mrb[9].mxu1 }
 0x13e   :  { %v863_v50 = vadd.f32 %v1487_v3, %v459_v48  ;;  %v865_v51 = vadd.f32 %v1489_v4, %v572_v49  ;;  %v461_v52 = vpop.f32.mrb[10].mxu0  ;;  %v574_v53 = vpop.f32.mrb[10].mxu1 }
 0x13f   :  { %v866_v54 = vadd.f32 %v1483_v1, %v461_v52  ;;  %v868_v55 = vadd.f32 %v1485_v2, %v574_v53  ;;  %v463_v56 = vpop.f32.mrb[11].mxu0  ;;  %v576_v57 = vpop.f32.mrb[11].mxu1 }
 0x140   :  { %v1224_v58 = vpack.c.bf16 %v863_v50, %v862_v46  ;;  %v1225_v59 = vpack.c.bf16 %v865_v51, %v864_v47  ;;  %v867_v60 = vadd.f32 %v1487_v3, %v463_v56  ;;  %v869_v61 = vadd.f32 %v1489_v4, %v576_v57 }
 0x142   :  { %1110 = vst [vmem:[#allocation9 + $0x40] sm:$0xff] %v1224_v58  ;;  %1111 = vst [vmem:[#allocation9 + $0x48] sm:$0xff] %v1225_v59  ;;  %v1226_v62 = vpack.c.bf16 %v867_v60, %v866_v54  ;;  %v1227_v63 = vpack.c.bf16 %v869_v61, %v868_v55 }
 0x144   :  { %1112 = vst [vmem:[#allocation9 + $0x50] sm:$0xff] %v1226_v62  ;;  %1113 = vst [vmem:[#allocation9 + $0x58] sm:$0xff] %v1227_v63  ;;  %v467_v0 = vpop.f32.mrb[12].mxu0  ;;  %v580_v5 = vpop.f32.mrb[12].mxu1 }
 0x145   :  { %v870_v6 = vadd.f32 %v1483_v1, %v467_v0  ;;  %v872_v7 = vadd.f32 %v1485_v2, %v580_v5  ;;  %v469_v8 = vpop.f32.mrb[13].mxu0  ;;  %v582_v9 = vpop.f32.mrb[13].mxu1 }
 0x146   :  { %v871_v10 = vadd.f32 %v1487_v3, %v469_v8  ;;  %v873_v11 = vadd.f32 %v1489_v4, %v582_v9  ;;  %v471_v12 = vpop.f32.mrb[14].mxu0  ;;  %v584_v13 = vpop.f32.mrb[14].mxu1 }
 0x147   :  { %v874_v14 = vadd.f32 %v1483_v1, %v471_v12  ;;  %v876_v15 = vadd.f32 %v1485_v2, %v584_v13  ;;  %v473_v16 = vpop.f32.mrb[15].mxu0  ;;  %v586_v17 = vpop.f32.mrb[15].mxu1 }
 0x148   :  { %v1228_v18 = vpack.c.bf16 %v871_v10, %v870_v6  ;;  %v1229_v19 = vpack.c.bf16 %v873_v11, %v872_v7  ;;  %v875_v20 = vadd.f32 %v1487_v3, %v473_v16  ;;  %v877_v21 = vadd.f32 %v1489_v4, %v586_v17 }
 0x14a   :  { %1114 = vst [vmem:[#allocation9 + $0x60] sm:$0xff] %v1228_v18  ;;  %1115 = vst [vmem:[#allocation9 + $0x68] sm:$0xff] %v1229_v19  ;;  %v1230_v22 = vpack.c.bf16 %v875_v20, %v874_v14  ;;  %v1231_v23 = vpack.c.bf16 %v877_v21, %v876_v15 }
 0x14c   :  { %1116 = vst [vmem:[#allocation9 + $0x70] sm:$0xff] %v1230_v22  ;;  %1117 = vst [vmem:[#allocation9 + $0x78] sm:$0xff] %v1231_v23  ;;  %v477_v24 = vpop.f32.mrb[16].mxu0  ;;  %v590_v25 = vpop.f32.mrb[16].mxu1 }
 0x14d   :  { %v878_v26 = vadd.f32 %v1483_v1, %v477_v24  ;;  %v880_v27 = vadd.f32 %v1485_v2, %v590_v25  ;;  %v479_v28 = vpop.f32.mrb[17].mxu0  ;;  %v592_v29 = vpop.f32.mrb[17].mxu1 }
 0x14e   :  { %v879_v30 = vadd.f32 %v1487_v3, %v479_v28  ;;  %v881_v31 = vadd.f32 %v1489_v4, %v592_v29  ;;  %v481_v32 = vpop.f32.mrb[18].mxu0  ;;  %v594_v33 = vpop.f32.mrb[18].mxu1 }
 0x14f   :  { %v882_v34 = vadd.f32 %v1483_v1, %v481_v32  ;;  %v884_v35 = vadd.f32 %v1485_v2, %v594_v33  ;;  %v483_v36 = vpop.f32.mrb[19].mxu0  ;;  %v596_v37 = vpop.f32.mrb[19].mxu1 }
 0x150   :  { %v1232_v38 = vpack.c.bf16 %v879_v30, %v878_v26  ;;  %v1233_v39 = vpack.c.bf16 %v881_v31, %v880_v27  ;;  %v883_v40 = vadd.f32 %v1487_v3, %v483_v36  ;;  %v885_v41 = vadd.f32 %v1489_v4, %v596_v37 }
 0x152   :  { %1118 = vst [vmem:[#allocation9 + $0x80] sm:$0xff] %v1232_v38  ;;  %1119 = vst [vmem:[#allocation9 + $0x88] sm:$0xff] %v1233_v39  ;;  %v1234_v42 = vpack.c.bf16 %v883_v40, %v882_v34  ;;  %v1235_v43 = vpack.c.bf16 %v885_v41, %v884_v35 }
 0x154   :  { %1120 = vst [vmem:[#allocation9 + $0x90] sm:$0xff] %v1234_v42  ;;  %1121 = vst [vmem:[#allocation9 + $0x98] sm:$0xff] %v1235_v43  ;;  %v487_v44 = vpop.f32.mrb[20].mxu0  ;;  %v600_v45 = vpop.f32.mrb[20].mxu1 }
 0x155   :  { %v886_v46 = vadd.f32 %v1483_v1, %v487_v44  ;;  %v888_v47 = vadd.f32 %v1485_v2, %v600_v45  ;;  %v489_v48 = vpop.f32.mrb[21].mxu0  ;;  %v602_v49 = vpop.f32.mrb[21].mxu1 }
 0x156   :  { %v887_v50 = vadd.f32 %v1487_v3, %v489_v48  ;;  %v889_v51 = vadd.f32 %v1489_v4, %v602_v49  ;;  %v491_v52 = vpop.f32.mrb[22].mxu0  ;;  %v604_v53 = vpop.f32.mrb[22].mxu1 }
 0x157   :  { %v890_v54 = vadd.f32 %v1483_v1, %v491_v52  ;;  %v892_v55 = vadd.f32 %v1485_v2, %v604_v53  ;;  %v493_v56 = vpop.f32.mrb[23].mxu0  ;;  %v606_v57 = vpop.f32.mrb[23].mxu1 }
 0x158   :  { %v1236_v58 = vpack.c.bf16 %v887_v50, %v886_v46  ;;  %v1237_v59 = vpack.c.bf16 %v889_v51, %v888_v47  ;;  %v891_v60 = vadd.f32 %v1487_v3, %v493_v56  ;;  %v893_v61 = vadd.f32 %v1489_v4, %v606_v57 }
 0x15a   :  { %1122 = vst [vmem:[#allocation9 + $0xa0] sm:$0xff] %v1236_v58  ;;  %1123 = vst [vmem:[#allocation9 + $0xa8] sm:$0xff] %v1237_v59  ;;  %v1238_v62 = vpack.c.bf16 %v891_v60, %v890_v54  ;;  %v1239_v63 = vpack.c.bf16 %v893_v61, %v892_v55 }
 0x15c   :  { %1124 = vst [vmem:[#allocation9 + $0xb0] sm:$0xff] %v1238_v62  ;;  %1125 = vst [vmem:[#allocation9 + $0xb8] sm:$0xff] %v1239_v63  ;;  %v497_v0 = vpop.f32.mrb[24].mxu0  ;;  %v610_v5 = vpop.f32.mrb[24].mxu1 }
 0x15d   :  { %v894_v6 = vadd.f32 %v1483_v1, %v497_v0  ;;  %v896_v7 = vadd.f32 %v1485_v2, %v610_v5  ;;  %v499_v8 = vpop.f32.mrb[25].mxu0  ;;  %v612_v9 = vpop.f32.mrb[25].mxu1 }
 0x15e   :  { %v895_v10 = vadd.f32 %v1487_v3, %v499_v8  ;;  %v897_v11 = vadd.f32 %v1489_v4, %v612_v9  ;;  %v501_v12 = vpop.f32.mrb[26].mxu0  ;;  %v614_v13 = vpop.f32.mrb[26].mxu1 }
 0x15f   :  { %v898_v14 = vadd.f32 %v1483_v1, %v501_v12  ;;  %v900_v15 = vadd.f32 %v1485_v2, %v614_v13  ;;  %v503_v16 = vpop.f32.mrb[27].mxu0  ;;  %v616_v17 = vpop.f32.mrb[27].mxu1 }
 0x160   :  { %v1240_v18 = vpack.c.bf16 %v895_v10, %v894_v6  ;;  %v1241_v19 = vpack.c.bf16 %v897_v11, %v896_v7  ;;  %v899_v20 = vadd.f32 %v1487_v3, %v503_v16  ;;  %v901_v21 = vadd.f32 %v1489_v4, %v616_v17 }
 0x162   :  { %1126 = vst [vmem:[#allocation9 + $0xc0] sm:$0xff] %v1240_v18  ;;  %1127 = vst [vmem:[#allocation9 + $0xc8] sm:$0xff] %v1241_v19  ;;  %v1242_v22 = vpack.c.bf16 %v899_v20, %v898_v14  ;;  %v1243_v23 = vpack.c.bf16 %v901_v21, %v900_v15 }
 0x164   :  { %1128 = vst [vmem:[#allocation9 + $0xd0] sm:$0xff] %v1242_v22  ;;  %1129 = vst [vmem:[#allocation9 + $0xd8] sm:$0xff] %v1243_v23  ;;  %v507_v24 = vpop.f32.mrb[28].mxu0  ;;  %v620_v25 = vpop.f32.mrb[28].mxu1 }
 0x165   :  { %v902_v26 = vadd.f32 %v1483_v1, %v507_v24  ;;  %v904_v27 = vadd.f32 %v1485_v2, %v620_v25  ;;  %v509_v28 = vpop.f32.mrb[29].mxu0  ;;  %v622_v29 = vpop.f32.mrb[29].mxu1 }
 0x166   :  { %v903_v30 = vadd.f32 %v1487_v3, %v509_v28  ;;  %v905_v31 = vadd.f32 %v1489_v4, %v622_v29  ;;  %v511_v32 = vpop.f32.mrb[30].mxu0  ;;  %v624_v33 = vpop.f32.mrb[30].mxu1 }
 0x167   :  { %v906_v34 = vadd.f32 %v1483_v1, %v511_v32  ;;  %v908_v35 = vadd.f32 %v1485_v2, %v624_v33  ;;  %v513_v36 = vpop.f32.mrb[31].mxu0  ;;  %v626_v37 = vpop.f32.mrb[31].mxu1 }
 0x168   :  { %v1244_v38 = vpack.c.bf16 %v903_v30, %v902_v26  ;;  %v1245_v39 = vpack.c.bf16 %v905_v31, %v904_v27  ;;  %v907_v40 = vadd.f32 %v1487_v3, %v513_v36  ;;  %v909_v41 = vadd.f32 %v1489_v4, %v626_v37 }
 0x16a   :  { %1130 = vst [vmem:[#allocation9 + $0xe0] sm:$0xff] %v1244_v38  ;;  %1131 = vst [vmem:[#allocation9 + $0xe8] sm:$0xff] %v1245_v39  ;;  %v1246_v42 = vpack.c.bf16 %v907_v40, %v906_v34  ;;  %v1247_v43 = vpack.c.bf16 %v909_v41, %v908_v35 }
 0x16c   :  { %1132 = vst [vmem:[#allocation9 + $0xf0] sm:$0xff] %v1246_v42  ;;  %1133 = vst [vmem:[#allocation9 + $0xf8] sm:$0xff] %v1247_v43 }
 0x16d   :  { %1382 = shalt.err (!%p1379_p0)
}
 0x16e   :  { %s1383_s29 = scalar_lea.hbm %s1573_s3, 4096 }
 0x16f   :  { %p1384_p1 = scmp.ne.s32.totalorder %s1573_s3, %s1383_s29  ;;  %p1387_p2 = scmp.lt.u32.totalorder %s1383_s29, %s1573_s3 }
 0x171   :  { %p1389_p3 = pnand %p1387_p2, %p1384_p1 }
 0x173   :  { %1392 = shalt.err (!%p1389_p3)
}
 0x174   :  { %1145 = dma.vmem_to_hbm [thread:$0]  %s1140_s25, 4096, %s1573_s3, [#allocation5], %s1400_s22, %s1400_s22, %s1401_s23  }
 0x175   :  { %1397 = dma.done.wait [#allocation5], 4096  }
 0x176   :  { %1398 = vsyncadd [#allocation5], 4294963200 }
 0x177   :  { %1149 = vsyncpa [#allocation4], 1 }
 0x178   :  { %1150 = vsyncpa [#allocation7], 1 }
 0x179   :  { %1151 = vsyncpa [#allocation5], 1 }

// kernel: lm_forward.7
= control target key start
LH: loop header
LB: loop body
LE: loop exit
PB: predicated region body
PF: predicated region fallthrough
CT: control target
= control target key end

     0   :  { %8 = vsyncpa [#allocation4], 0  ;;  %s1626_s0 = inlined_call_operand.hbm [shape: bf16[128,128], index: 0, kind: input, shape index: {}]   ;;  %s1627_s1 = inlined_call_operand.hbm [shape: bf16[128,512], index: 1, kind: input, shape index: {}]   ;;  %s1628_s2 = inlined_call_operand.hbm [shape: f32[1,512], index: 2, kind: input, shape index: {}]   ;;  %s1629_s3 = inlined_call_operand.hbm [shape: bf16[128,512], index: 3, kind: output, shape index: {}]  }
   0x1   :  { %9 = vsyncpa [#allocation7], 0 }
   0x2   :  { %10 = vsyncpa [#allocation5], 0  ;;  %s1455_s12 = smov [#allocation6]   ;;  %s1361_s16 = scalar_lea.hbm %s1627_s1, 4096 }
   0x3   :  { %s28_s13 = sshll.u32 %s1455_s12, 4  ;;  %p1362_p0 = scmp.ne.s32.totalorder %s1627_s1, %s1361_s16  ;;  %s29_s13 = int_to_ptr.vmem [resolvable:$true] %s28_s13 }
   0x4   :  { %p1365_p1 = scmp.lt.u32.totalorder %s1361_s16, %s1627_s1 }
   0x6   :  { %p1367_p2 = pnand %p1365_p1, %p1362_p0 }
   0x8   :  { %1370 = shalt.err (!%p1367_p2)
}
   0x9   :  { %s1371_s21 = scalar_lea.vmem %s29_s13, 4096  ;;  %p1376_p4 = scmp.lt.s32.totalorder %s29_s13, %s29_s13 }
   0xa   :  { %p1372_p3 = scmp.ne.s32.totalorder %s29_s13, %s1371_s21  ;;  %p1377_p5 = scmp.lt.s32.totalorder %s1371_s21, %s1371_s21 }
   0xc   :  { %p1378_p6 = por %p1377_p5, %p1376_p4 }
   0xe   :  { %p1379_p7 = pnand %p1378_p6, %p1372_p3 }
  0x10   :  { %1382 = shalt.err (!%p1379_p7)
}
  0x11   :  { %s1456_s22 = smov 256   ;;  %s1457_s23 = smov 16  }
  0x12   :  { %34 = dma.hbm_to_vmem [thread:$0]  %s1627_s1, 4096, %s29_s13, [#allocation7], %s1456_s22, %s1456_s22, %s1457_s23  }
  0x13   :  { %s1458_s26 = smov [#allocation3]   ;;  %s1383_s30 = scalar_lea.hbm %s1626_s0, 1024 }
  0x14   :  { %s16_s27 = sshll.u32 %s1458_s26, 4  ;;  %p1384_p8 = scmp.ne.s32.totalorder %s1626_s0, %s1383_s30  ;;  %s17_s27 = int_to_ptr.vmem [resolvable:$true] %s16_s27 }
  0x15   :  { %p1387_p9 = scmp.lt.u32.totalorder %s1383_s30, %s1626_s0 }
  0x17   :  { %p1389_p10 = pnand %p1387_p9, %p1384_p8 }
  0x19   :  { %1392 = shalt.err (!%p1389_p10)
}
  0x1a   :  { %s1393_s8 = scalar_lea.vmem %s17_s27, 1024  ;;  %p1398_p12 = scmp.lt.s32.totalorder %s17_s27, %s17_s27 }
  0x1b   :  { %p1394_p11 = scmp.ne.s32.totalorder %s17_s27, %s1393_s8  ;;  %p1399_p13 = scmp.lt.s32.totalorder %s1393_s8, %s1393_s8 }
  0x1d   :  { %p1400_p0 = por %p1399_p13, %p1398_p12 }
  0x1f   :  { %p1401_p1 = pnand %p1400_p0, %p1394_p11 }
  0x21   :  { %1404 = shalt.err (!%p1401_p1)
}
  0x22   :  { %s1459_s1 = smov 64   ;;  %s1460_s9 = smov 4  }
  0x23   :  { %22 = dma.hbm_to_vmem [thread:$0]  %s1626_s0, 1024, %s17_s27, [#allocation4], %s1459_s1, %s1459_s1, %s1460_s9  }
  0x24   :  { %s1461_s12 = smov [#allocation8]   ;;  %s1405_s16 = scalar_lea.hbm %s1628_s2, 64 }
  0x25   :  { %s41_s13 = sshll.u32 %s1461_s12, 4  ;;  %p1406_p2 = scmp.ne.s32.totalorder %s1628_s2, %s1405_s16  ;;  %s42_s13 = int_to_ptr.vmem [resolvable:$true] %s41_s13 }
  0x26   :  { %p1409_p3 = scmp.lt.u32.totalorder %s1405_s16, %s1628_s2 }
  0x28   :  { %p1411_p4 = pnand %p1409_p3, %p1406_p2 }
  0x2a   :  { %1414 = shalt.err (!%p1411_p4)
}
  0x2b   :  { %s1415_s21 = scalar_lea.vmem %s42_s13, 64  ;;  %p1420_p6 = scmp.lt.s32.totalorder %s42_s13, %s42_s13 }
  0x2c   :  { %p1416_p5 = scmp.ne.s32.totalorder %s42_s13, %s1415_s21  ;;  %p1421_p7 = scmp.lt.s32.totalorder %s1415_s21, %s1415_s21 }
  0x2e   :  { %p1422_p8 = por %p1421_p7, %p1420_p6 }
  0x30   :  { %p1423_p9 = pnand %p1422_p8, %p1416_p5 }
  0x32   :  { %1426 = shalt.err (!%p1423_p9)
}
  0x33   :  { %44 = dma.hbm_to_vmem [thread:$0]  %s1628_s2, 64, %s42_s13, [#allocation7]  }
  0x34   :  { %1449 = dma.done.wait [#allocation4], 1024  }
  0x35   :  { %1450 = vsyncadd [#allocation4], 4294966272 }
  0x36   :  { %1451 = dma.done.wait [#allocation7], 4160  }
  0x37   :  { %1452 = vsyncadd [#allocation7], 4294963136  ;;  %v1462_v0 = vmov 0   ;;  %v1305_v1 = vld [vmem:[#allocation6 + $0x4] ss:$16 sps:$4 sm:$0xff]   ;;  %v1354_v34 = vld [vmem:[#allocation3 + $0x8] sm:$0xff]   ;;  %v866_v41 = vlaneseq }
  0x38   :  { %475 = vmatprep.mubr.bf16.mxu0 %v1462_v0  ;;  %588 = vmatprep.mubr.bf16.mxu1 %v1462_v0  ;;  %v1307_v2 = vld [vmem:[#allocation6 + $0xc] ss:$16 sps:$4 sm:$0xff]   ;;  %v1309_v3 = vld [vmem:[#allocation6] ss:$16 sps:$4 sm:$0xff]   ;;  %v1310_v4 = vld [vmem:[#allocation6 + $0x8] ss:$16 sps:$4 sm:$0xff]  }
  0x39   :  { %443 = vmatprep.subr.bf16.mxu0 %v1305_v1  ;;  %556 = vmatprep.subr.bf16.mxu1 %v1307_v2  ;;  %v1311_v5 = vld [vmem:[#allocation6 + $0x24] ss:$16 sps:$4 sm:$0xff]   ;;  %v1313_v6 = vld [vmem:[#allocation6 + $0x2c] ss:$16 sps:$4 sm:$0xff]   ;;  %v1315_v7 = vld [vmem:[#allocation6 + $0x20] ss:$16 sps:$4 sm:$0xff]  }
  0x3a   :  { %444 = vmatpush1.bf16.msra.mxu0 %v1309_v3  ;;  %557 = vmatpush1.bf16.msra.mxu1 %v1310_v4  ;;  %v1316_v8 = vld [vmem:[#allocation6 + $0x28] ss:$16 sps:$4 sm:$0xff]   ;;  %v1317_v9 = vld [vmem:[#allocation6 + $0x44] ss:$16 sps:$4 sm:$0xff]   ;;  %v1319_v10 = vld [vmem:[#allocation6 + $0x4c] ss:$16 sps:$4 sm:$0xff]  }
  0x3b   :  { %445 = vmatprep.subr.bf16.mxu0 %v1311_v5  ;;  %558 = vmatprep.subr.bf16.mxu1 %v1313_v6  ;;  %v1321_v11 = vld [vmem:[#allocation6 + $0x40] ss:$16 sps:$4 sm:$0xff]   ;;  %v1322_v12 = vld [vmem:[#allocation6 + $0x48] ss:$16 sps:$4 sm:$0xff]   ;;  %v1323_v13 = vld [vmem:[#allocation6 + $0x64] ss:$16 sps:$4 sm:$0xff]  }
  0x3c   :  { %v1325_v14 = vld [vmem:[#allocation6 + $0x6c] ss:$16 sps:$4 sm:$0xff]   ;;  %v1327_v15 = vld [vmem:[#allocation6 + $0x60] ss:$16 sps:$4 sm:$0xff]   ;;  %v1328_v16 = vld [vmem:[#allocation6 + $0x68] ss:$16 sps:$4 sm:$0xff]  }
  0x3d   :  { %v1329_v17 = vld [vmem:[#allocation6 + $0x84] ss:$16 sps:$4 sm:$0xff]   ;;  %v1331_v18 = vld [vmem:[#allocation6 + $0x8c] ss:$16 sps:$4 sm:$0xff]   ;;  %v1333_v19 = vld [vmem:[#allocation6 + $0x80] ss:$16 sps:$4 sm:$0xff]  }
  0x3e   :  { %446 = vmatpush1.bf16.msra.mxu0 %v1315_v7  ;;  %559 = vmatpush1.bf16.msra.mxu1 %v1316_v8  ;;  %v1334_v20 = vld [vmem:[#allocation6 + $0x88] ss:$16 sps:$4 sm:$0xff]   ;;  %v1335_v21 = vld [vmem:[#allocation6 + $0xa4] ss:$16 sps:$4 sm:$0xff]   ;;  %v1337_v22 = vld [vmem:[#allocation6 + $0xac] ss:$16 sps:$4 sm:$0xff]  }
  0x3f   :  { %447 = vmatprep.subr.bf16.mxu0 %v1317_v9  ;;  %560 = vmatprep.subr.bf16.mxu1 %v1319_v10  ;;  %v1339_v23 = vld [vmem:[#allocation6 + $0xa0] ss:$16 sps:$4 sm:$0xff]   ;;  %v1340_v24 = vld [vmem:[#allocation6 + $0xa8] ss:$16 sps:$4 sm:$0xff]   ;;  %v1341_v25 = vld [vmem:[#allocation6 + $0xc4] ss:$16 sps:$4 sm:$0xff]  }
  0x40   :  { %v1343_v26 = vld [vmem:[#allocation6 + $0xcc] ss:$16 sps:$4 sm:$0xff]   ;;  %v1345_v27 = vld [vmem:[#allocation6 + $0xc0] ss:$16 sps:$4 sm:$0xff]   ;;  %v1346_v28 = vld [vmem:[#allocation6 + $0xc8] ss:$16 sps:$4 sm:$0xff]  }
  0x41   :  { %v1347_v29 = vld [vmem:[#allocation6 + $0xe4] ss:$16 sps:$4 sm:$0xff]   ;;  %v1349_v30 = vld [vmem:[#allocation6 + $0xec] ss:$16 sps:$4 sm:$0xff]   ;;  %v1351_v31 = vld [vmem:[#allocation6 + $0xe0] ss:$16 sps:$4 sm:$0xff]  }
  0x42   :  { %448 = vmatpush1.bf16.msra.mxu0 %v1321_v11  ;;  %561 = vmatpush1.bf16.msra.mxu1 %v1322_v12  ;;  %v1352_v32 = vld [vmem:[#allocation6 + $0xe8] ss:$16 sps:$4 sm:$0xff]   ;;  %v1353_v33 = vld [vmem:[#allocation3] sm:$0xff]   ;;  %v1355_v35 = vld [vmem:[#allocation3 + $0x10] sm:$0xff]   ;;  %v867_v42 = vshrl.u32 %v866_v41, 7  ;;  %s1463_s2 = smov [#allocation9]  }
  0x43   :  { %449 = vmatprep.subr.bf16.mxu0 %v1323_v13  ;;  %562 = vmatprep.subr.bf16.mxu1 %v1325_v14  ;;  %v1356_v36 = vld [vmem:[#allocation3 + $0x18] sm:$0xff]   ;;  %v1357_v37 = vld [vmem:[#allocation3 + $0x20] sm:$0xff]   ;;  %v1358_v38 = vld [vmem:[#allocation3 + $0x28] sm:$0xff]   ;;  %s1179_s25 = sshll.u32 %s1463_s2, 4  ;;  %s1180_s25 = int_to_ptr.vmem [resolvable:$true] %s1179_s25 }
  0x44   :  { %v1359_v39 = vld [vmem:[#allocation3 + $0x30] sm:$0xff]   ;;  %v1360_v40 = vld [vmem:[#allocation3 + $0x38] sm:$0xff]   ;;  %v868_v43 = vsub.s32 0, %v867_v42  ;;  %v876_v44 = vsub.s32 2, %v867_v42  ;;  %v864_v45 = vld [vmem:[#allocation8] sm:$0xf]  ;;  %p1432_p11 = scmp.lt.s32.totalorder %s1180_s25, %s1180_s25 }
  0x45   :  { %v872_v46 = vsub.s32 1, %v867_v42  ;;  %v880_v47 = vsub.s32 3, %v867_v42  ;;  %s1427_s26 = scalar_lea.vmem %s1180_s25, 4096 }
  0x46   :  { %450 = vmatpush1.bf16.msra.mxu0 %v1327_v15  ;;  %563 = vmatpush1.bf16.msra.mxu1 %v1328_v16  ;;  %v1539_v48 = vrot.slane %v864_v45, %v868_v43  ;;  %v1541_v49 = vrot.slane %v864_v45, %v876_v44  ;;  %p1428_p10 = scmp.ne.s32.totalorder %s1180_s25, %s1427_s26  ;;  %p1433_p12 = scmp.lt.s32.totalorder %s1427_s26, %s1427_s26 }
  0x47   :  { %451 = vmatprep.subr.bf16.mxu0 %v1329_v17  ;;  %564 = vmatprep.subr.bf16.mxu1 %v1331_v18  ;;  %v1543_v50 = vrot.slane %v864_v45, %v872_v46  ;;  %v1545_v51 = vrot.slane %v864_v45, %v880_v47 }
  0x48   :  { %p1434_p13 = por %p1433_p12, %p1432_p11 }
  0x4a   :  { %452 = vmatpush1.bf16.msra.mxu0 %v1333_v19  ;;  %565 = vmatpush1.bf16.msra.mxu1 %v1334_v20  ;;  %p1435_p0 = pnand %p1434_p13, %p1428_p10 }
  0x4b   :  { %453 = vmatprep.subr.bf16.mxu0 %v1335_v21  ;;  %566 = vmatprep.subr.bf16.mxu1 %v1337_v22 }
  0x4e   :  { %454 = vmatpush1.bf16.msra.mxu0 %v1339_v23  ;;  %567 = vmatpush1.bf16.msra.mxu1 %v1340_v24 }
  0x4f   :  { %455 = vmatprep.subr.bf16.mxu0 %v1341_v25  ;;  %568 = vmatprep.subr.bf16.mxu1 %v1343_v26 }
  0x52   :  { %456 = vmatpush1.bf16.msra.mxu0 %v1345_v27  ;;  %569 = vmatpush1.bf16.msra.mxu1 %v1346_v28 }
  0x53   :  { %457 = vmatprep.subr.bf16.mxu0 %v1347_v29  ;;  %570 = vmatprep.subr.bf16.mxu1 %v1349_v30 }
  0x56   :  { %458 = vmatpush1.bf16.msra.mxu0 %v1351_v31  ;;  %571 = vmatpush1.bf16.msra.mxu1 %v1352_v32 }
  0x59   :  { %476 = vmatmul.mubr.bf16.vlgmr.msra.gmra.mrb[0].mxu0 %v1353_v33  ;;  %589 = vmatmul.mubr.bf16.vlgmr.msra.gmra.mrb[0].mxu1 %v1353_v33 }
  0x5a   :  { %485 = vmatprep.mubr.bf16.mxu0 %v1462_v0  ;;  %598 = vmatprep.mubr.bf16.mxu1 %v1462_v0 }
  0x61   :  { %486 = vmatmul.mubr.bf16.gmra.mrb[4].mxu0 %v1354_v34  ;;  %599 = vmatmul.mubr.bf16.gmra.mrb[4].mxu1 %v1354_v34 }
  0x62   :  { %495 = vmatprep.mubr.bf16.mxu0 %v1462_v0  ;;  %608 = vmatprep.mubr.bf16.mxu1 %v1462_v0 }
  0x69   :  { %496 = vmatmul.mubr.bf16.gmra.mrb[8].mxu0 %v1355_v35  ;;  %609 = vmatmul.mubr.bf16.gmra.mrb[8].mxu1 %v1355_v35 }
  0x6a   :  { %505 = vmatprep.mubr.bf16.mxu0 %v1462_v0  ;;  %618 = vmatprep.mubr.bf16.mxu1 %v1462_v0 }
  0x71   :  { %506 = vmatmul.mubr.bf16.gmra.mrb[12].mxu0 %v1356_v36  ;;  %619 = vmatmul.mubr.bf16.gmra.mrb[12].mxu1 %v1356_v36 }
  0x72   :  { %515 = vmatprep.mubr.bf16.mxu0 %v1462_v0  ;;  %628 = vmatprep.mubr.bf16.mxu1 %v1462_v0 }
  0x79   :  { %516 = vmatmul.mubr.bf16.gmra.mrb[16].mxu0 %v1357_v37  ;;  %629 = vmatmul.mubr.bf16.gmra.mrb[16].mxu1 %v1357_v37 }
  0x7a   :  { %525 = vmatprep.mubr.bf16.mxu0 %v1462_v0  ;;  %638 = vmatprep.mubr.bf16.mxu1 %v1462_v0 }
  0x81   :  { %526 = vmatmul.mubr.bf16.gmra.mrb[20].mxu0 %v1358_v38  ;;  %639 = vmatmul.mubr.bf16.gmra.mrb[20].mxu1 %v1358_v38 }
  0x82   :  { %535 = vmatprep.mubr.bf16.mxu0 %v1462_v0  ;;  %648 = vmatprep.mubr.bf16.mxu1 %v1462_v0 }
  0x89   :  { %536 = vmatmul.mubr.bf16.gmra.mrb[24].mxu0 %v1359_v39  ;;  %649 = vmatmul.mubr.bf16.gmra.mrb[24].mxu1 %v1359_v39 }
  0x8a   :  { %545 = vmatprep.mubr.bf16.mxu0 %v1462_v0  ;;  %658 = vmatprep.mubr.bf16.mxu1 %v1462_v0 }
  0x91   :  { %546 = vmatmul.mubr.bf16.gmra.mrb[28].mxu0 %v1360_v40  ;;  %659 = vmatmul.mubr.bf16.gmra.mrb[28].mxu1 %v1360_v40 }
 0x12c   :  { %v477_v52 = vpop.f32.mrb[0].mxu0  ;;  %v590_v53 = vpop.f32.mrb[0].mxu1 }
 0x12d   :  { %v886_v54 = vadd.f32 %v1539_v48, %v477_v52  ;;  %v888_v55 = vadd.f32 %v1541_v49, %v590_v53  ;;  %v479_v56 = vpop.f32.mrb[1].mxu0  ;;  %v592_v57 = vpop.f32.mrb[1].mxu1 }
 0x12e   :  { %v887_v58 = vadd.f32 %v1543_v50, %v479_v56  ;;  %v889_v59 = vadd.f32 %v1545_v51, %v592_v57  ;;  %v481_v60 = vpop.f32.mrb[2].mxu0  ;;  %v594_v61 = vpop.f32.mrb[2].mxu1 }
 0x12f   :  { %v890_v62 = vadd.f32 %v1539_v48, %v481_v60  ;;  %v892_v63 = vadd.f32 %v1541_v49, %v594_v61  ;;  %v483_v0 = vpop.f32.mrb[3].mxu0  ;;  %v596_v1 = vpop.f32.mrb[3].mxu1 }
 0x130   :  { %v1264_v2 = vpack.c.bf16 %v887_v58, %v886_v54  ;;  %v1265_v3 = vpack.c.bf16 %v889_v59, %v888_v55  ;;  %v891_v4 = vadd.f32 %v1543_v50, %v483_v0  ;;  %v893_v5 = vadd.f32 %v1545_v51, %v596_v1 }
 0x132   :  { %1142 = vst [vmem:[#allocation9] sm:$0xff] %v1264_v2  ;;  %1143 = vst [vmem:[#allocation9 + $0x8] sm:$0xff] %v1265_v3  ;;  %v1266_v6 = vpack.c.bf16 %v891_v4, %v890_v62  ;;  %v1267_v7 = vpack.c.bf16 %v893_v5, %v892_v63 }
 0x134   :  { %1144 = vst [vmem:[#allocation9 + $0x10] sm:$0xff] %v1266_v6  ;;  %1145 = vst [vmem:[#allocation9 + $0x18] sm:$0xff] %v1267_v7  ;;  %v487_v8 = vpop.f32.mrb[4].mxu0  ;;  %v600_v9 = vpop.f32.mrb[4].mxu1 }
 0x135   :  { %v894_v10 = vadd.f32 %v1539_v48, %v487_v8  ;;  %v896_v11 = vadd.f32 %v1541_v49, %v600_v9  ;;  %v489_v12 = vpop.f32.mrb[5].mxu0  ;;  %v602_v13 = vpop.f32.mrb[5].mxu1 }
 0x136   :  { %v895_v14 = vadd.f32 %v1543_v50, %v489_v12  ;;  %v897_v15 = vadd.f32 %v1545_v51, %v602_v13  ;;  %v491_v16 = vpop.f32.mrb[6].mxu0  ;;  %v604_v17 = vpop.f32.mrb[6].mxu1 }
 0x137   :  { %v898_v18 = vadd.f32 %v1539_v48, %v491_v16  ;;  %v900_v19 = vadd.f32 %v1541_v49, %v604_v17  ;;  %v493_v20 = vpop.f32.mrb[7].mxu0  ;;  %v606_v21 = vpop.f32.mrb[7].mxu1 }
 0x138   :  { %v1268_v22 = vpack.c.bf16 %v895_v14, %v894_v10  ;;  %v1269_v23 = vpack.c.bf16 %v897_v15, %v896_v11  ;;  %v899_v24 = vadd.f32 %v1543_v50, %v493_v20  ;;  %v901_v25 = vadd.f32 %v1545_v51, %v606_v21 }
 0x13a   :  { %1146 = vst [vmem:[#allocation9 + $0x20] sm:$0xff] %v1268_v22  ;;  %1147 = vst [vmem:[#allocation9 + $0x28] sm:$0xff] %v1269_v23  ;;  %v1270_v26 = vpack.c.bf16 %v899_v24, %v898_v18  ;;  %v1271_v27 = vpack.c.bf16 %v901_v25, %v900_v19 }
 0x13c   :  { %1148 = vst [vmem:[#allocation9 + $0x30] sm:$0xff] %v1270_v26  ;;  %1149 = vst [vmem:[#allocation9 + $0x38] sm:$0xff] %v1271_v27  ;;  %v497_v28 = vpop.f32.mrb[8].mxu0  ;;  %v610_v29 = vpop.f32.mrb[8].mxu1 }
 0x13d   :  { %v902_v30 = vadd.f32 %v1539_v48, %v497_v28  ;;  %v904_v31 = vadd.f32 %v1541_v49, %v610_v29  ;;  %v499_v32 = vpop.f32.mrb[9].mxu0  ;;  %v612_v33 = vpop.f32.mrb[9].mxu1 }
 0x13e   :  { %v903_v34 = vadd.f32 %v1543_v50, %v499_v32  ;;  %v905_v35 = vadd.f32 %v1545_v51, %v612_v33  ;;  %v501_v36 = vpop.f32.mrb[10].mxu0  ;;  %v614_v37 = vpop.f32.mrb[10].mxu1 }
 0x13f   :  { %v906_v38 = vadd.f32 %v1539_v48, %v501_v36  ;;  %v908_v39 = vadd.f32 %v1541_v49, %v614_v37  ;;  %v503_v40 = vpop.f32.mrb[11].mxu0  ;;  %v616_v41 = vpop.f32.mrb[11].mxu1 }
 0x140   :  { %v1272_v42 = vpack.c.bf16 %v903_v34, %v902_v30  ;;  %v1273_v43 = vpack.c.bf16 %v905_v35, %v904_v31  ;;  %v907_v44 = vadd.f32 %v1543_v50, %v503_v40  ;;  %v909_v45 = vadd.f32 %v1545_v51, %v616_v41 }
 0x142   :  { %1150 = vst [vmem:[#allocation9 + $0x40] sm:$0xff] %v1272_v42  ;;  %1151 = vst [vmem:[#allocation9 + $0x48] sm:$0xff] %v1273_v43  ;;  %v1274_v46 = vpack.c.bf16 %v907_v44, %v906_v38  ;;  %v1275_v47 = vpack.c.bf16 %v909_v45, %v908_v39 }
 0x144   :  { %1152 = vst [vmem:[#allocation9 + $0x50] sm:$0xff] %v1274_v46  ;;  %1153 = vst [vmem:[#allocation9 + $0x58] sm:$0xff] %v1275_v47  ;;  %v507_v52 = vpop.f32.mrb[12].mxu0  ;;  %v620_v53 = vpop.f32.mrb[12].mxu1 }
 0x145   :  { %v910_v54 = vadd.f32 %v1539_v48, %v507_v52  ;;  %v912_v55 = vadd.f32 %v1541_v49, %v620_v53  ;;  %v509_v56 = vpop.f32.mrb[13].mxu0  ;;  %v622_v57 = vpop.f32.mrb[13].mxu1 }
 0x146   :  { %v911_v58 = vadd.f32 %v1543_v50, %v509_v56  ;;  %v913_v59 = vadd.f32 %v1545_v51, %v622_v57  ;;  %v511_v60 = vpop.f32.mrb[14].mxu0  ;;  %v624_v61 = vpop.f32.mrb[14].mxu1 }
 0x147   :  { %v914_v62 = vadd.f32 %v1539_v48, %v511_v60  ;;  %v916_v63 = vadd.f32 %v1541_v49, %v624_v61  ;;  %v513_v0 = vpop.f32.mrb[15].mxu0  ;;  %v626_v1 = vpop.f32.mrb[15].mxu1 }
 0x148   :  { %v1276_v2 = vpack.c.bf16 %v911_v58, %v910_v54  ;;  %v1277_v3 = vpack.c.bf16 %v913_v59, %v912_v55  ;;  %v915_v4 = vadd.f32 %v1543_v50, %v513_v0  ;;  %v917_v5 = vadd.f32 %v1545_v51, %v626_v1 }
 0x14a   :  { %1154 = vst [vmem:[#allocation9 + $0x60] sm:$0xff] %v1276_v2  ;;  %1155 = vst [vmem:[#allocation9 + $0x68] sm:$0xff] %v1277_v3  ;;  %v1278_v6 = vpack.c.bf16 %v915_v4, %v914_v62  ;;  %v1279_v7 = vpack.c.bf16 %v917_v5, %v916_v63 }
 0x14c   :  { %1156 = vst [vmem:[#allocation9 + $0x70] sm:$0xff] %v1278_v6  ;;  %1157 = vst [vmem:[#allocation9 + $0x78] sm:$0xff] %v1279_v7  ;;  %v517_v8 = vpop.f32.mrb[16].mxu0  ;;  %v630_v9 = vpop.f32.mrb[16].mxu1 }
 0x14d   :  { %v918_v10 = vadd.f32 %v1539_v48, %v517_v8  ;;  %v920_v11 = vadd.f32 %v1541_v49, %v630_v9  ;;  %v519_v12 = vpop.f32.mrb[17].mxu0  ;;  %v632_v13 = vpop.f32.mrb[17].mxu1 }
 0x14e   :  { %v919_v14 = vadd.f32 %v1543_v50, %v519_v12  ;;  %v921_v15 = vadd.f32 %v1545_v51, %v632_v13  ;;  %v521_v16 = vpop.f32.mrb[18].mxu0  ;;  %v634_v17 = vpop.f32.mrb[18].mxu1 }
 0x14f   :  { %v922_v18 = vadd.f32 %v1539_v48, %v521_v16  ;;  %v924_v19 = vadd.f32 %v1541_v49, %v634_v17  ;;  %v523_v20 = vpop.f32.mrb[19].mxu0  ;;  %v636_v21 = vpop.f32.mrb[19].mxu1 }
 0x150   :  { %v1280_v22 = vpack.c.bf16 %v919_v14, %v918_v10  ;;  %v1281_v23 = vpack.c.bf16 %v921_v15, %v920_v11  ;;  %v923_v24 = vadd.f32 %v1543_v50, %v523_v20  ;;  %v925_v25 = vadd.f32 %v1545_v51, %v636_v21 }
 0x152   :  { %1158 = vst [vmem:[#allocation9 + $0x80] sm:$0xff] %v1280_v22  ;;  %1159 = vst [vmem:[#allocation9 + $0x88] sm:$0xff] %v1281_v23  ;;  %v1282_v26 = vpack.c.bf16 %v923_v24, %v922_v18  ;;  %v1283_v27 = vpack.c.bf16 %v925_v25, %v924_v19 }
 0x154   :  { %1160 = vst [vmem:[#allocation9 + $0x90] sm:$0xff] %v1282_v26  ;;  %1161 = vst [vmem:[#allocation9 + $0x98] sm:$0xff] %v1283_v27  ;;  %v527_v28 = vpop.f32.mrb[20].mxu0  ;;  %v640_v29 = vpop.f32.mrb[20].mxu1 }
 0x155   :  { %v926_v30 = vadd.f32 %v1539_v48, %v527_v28  ;;  %v928_v31 = vadd.f32 %v1541_v49, %v640_v29  ;;  %v529_v32 = vpop.f32.mrb[21].mxu0  ;;  %v642_v33 = vpop.f32.mrb[21].mxu1 }
 0x156   :  { %v927_v34 = vadd.f32 %v1543_v50, %v529_v32  ;;  %v929_v35 = vadd.f32 %v1545_v51, %v642_v33  ;;  %v531_v36 = vpop.f32.mrb[22].mxu0  ;;  %v644_v37 = vpop.f32.mrb[22].mxu1 }
 0x157   :  { %v930_v38 = vadd.f32 %v1539_v48, %v531_v36  ;;  %v932_v39 = vadd.f32 %v1541_v49, %v644_v37  ;;  %v533_v40 = vpop.f32.mrb[23].mxu0  ;;  %v646_v41 = vpop.f32.mrb[23].mxu1 }
 0x158   :  { %v1284_v42 = vpack.c.bf16 %v927_v34, %v926_v30  ;;  %v1285_v43 = vpack.c.bf16 %v929_v35, %v928_v31  ;;  %v931_v44 = vadd.f32 %v1543_v50, %v533_v40  ;;  %v933_v45 = vadd.f32 %v1545_v51, %v646_v41 }
 0x15a   :  { %1162 = vst [vmem:[#allocation9 + $0xa0] sm:$0xff] %v1284_v42  ;;  %1163 = vst [vmem:[#allocation9 + $0xa8] sm:$0xff] %v1285_v43  ;;  %v1286_v46 = vpack.c.bf16 %v931_v44, %v930_v38  ;;  %v1287_v47 = vpack.c.bf16 %v933_v45, %v932_v39 }
 0x15c   :  { %1164 = vst [vmem:[#allocation9 + $0xb0] sm:$0xff] %v1286_v46  ;;  %1165 = vst [vmem:[#allocation9 + $0xb8] sm:$0xff] %v1287_v47  ;;  %v537_v52 = vpop.f32.mrb[24].mxu0  ;;  %v650_v53 = vpop.f32.mrb[24].mxu1 }
 0x15d   :  { %v934_v54 = vadd.f32 %v1539_v48, %v537_v52  ;;  %v936_v55 = vadd.f32 %v1541_v49, %v650_v53  ;;  %v539_v56 = vpop.f32.mrb[25].mxu0  ;;  %v652_v57 = vpop.f32.mrb[25].mxu1 }
 0x15e   :  { %v935_v58 = vadd.f32 %v1543_v50, %v539_v56  ;;  %v937_v59 = vadd.f32 %v1545_v51, %v652_v57  ;;  %v541_v60 = vpop.f32.mrb[26].mxu0  ;;  %v654_v61 = vpop.f32.mrb[26].mxu1 }
 0x15f   :  { %v938_v62 = vadd.f32 %v1539_v48, %v541_v60  ;;  %v940_v63 = vadd.f32 %v1541_v49, %v654_v61  ;;  %v543_v0 = vpop.f32.mrb[27].mxu0  ;;  %v656_v1 = vpop.f32.mrb[27].mxu1 }
 0x160   :  { %v1288_v2 = vpack.c.bf16 %v935_v58, %v934_v54  ;;  %v1289_v3 = vpack.c.bf16 %v937_v59, %v936_v55  ;;  %v939_v4 = vadd.f32 %v1543_v50, %v543_v0  ;;  %v941_v5 = vadd.f32 %v1545_v51, %v656_v1 }
 0x162   :  { %1166 = vst [vmem:[#allocation9 + $0xc0] sm:$0xff] %v1288_v2  ;;  %1167 = vst [vmem:[#allocation9 + $0xc8] sm:$0xff] %v1289_v3  ;;  %v1290_v6 = vpack.c.bf16 %v939_v4, %v938_v62  ;;  %v1291_v7 = vpack.c.bf16 %v941_v5, %v940_v63 }
 0x164   :  { %1168 = vst [vmem:[#allocation9 + $0xd0] sm:$0xff] %v1290_v6  ;;  %1169 = vst [vmem:[#allocation9 + $0xd8] sm:$0xff] %v1291_v7  ;;  %v547_v8 = vpop.f32.mrb[28].mxu0  ;;  %v660_v9 = vpop.f32.mrb[28].mxu1 }
 0x165   :  { %v942_v10 = vadd.f32 %v1539_v48, %v547_v8  ;;  %v944_v11 = vadd.f32 %v1541_v49, %v660_v9  ;;  %v549_v12 = vpop.f32.mrb[29].mxu0  ;;  %v662_v13 = vpop.f32.mrb[29].mxu1 }
 0x166   :  { %v943_v14 = vadd.f32 %v1543_v50, %v549_v12  ;;  %v945_v15 = vadd.f32 %v1545_v51, %v662_v13  ;;  %v551_v16 = vpop.f32.mrb[30].mxu0  ;;  %v664_v17 = vpop.f32.mrb[30].mxu1 }
 0x167   :  { %v946_v18 = vadd.f32 %v1539_v48, %v551_v16  ;;  %v948_v19 = vadd.f32 %v1541_v49, %v664_v17  ;;  %v553_v20 = vpop.f32.mrb[31].mxu0  ;;  %v666_v21 = vpop.f32.mrb[31].mxu1 }
 0x168   :  { %v1292_v22 = vpack.c.bf16 %v943_v14, %v942_v10  ;;  %v1293_v23 = vpack.c.bf16 %v945_v15, %v944_v11  ;;  %v947_v24 = vadd.f32 %v1543_v50, %v553_v20  ;;  %v949_v25 = vadd.f32 %v1545_v51, %v666_v21 }
 0x16a   :  { %1170 = vst [vmem:[#allocation9 + $0xe0] sm:$0xff] %v1292_v22  ;;  %1171 = vst [vmem:[#allocation9 + $0xe8] sm:$0xff] %v1293_v23  ;;  %v1294_v26 = vpack.c.bf16 %v947_v24, %v946_v18  ;;  %v1295_v27 = vpack.c.bf16 %v949_v25, %v948_v19 }
 0x16c   :  { %1172 = vst [vmem:[#allocation9 + $0xf0] sm:$0xff] %v1294_v26  ;;  %1173 = vst [vmem:[#allocation9 + $0xf8] sm:$0xff] %v1295_v27 }
 0x16d   :  { %1438 = shalt.err (!%p1435_p0)
}
 0x16e   :  { %s1439_s29 = scalar_lea.hbm %s1629_s3, 4096 }
 0x16f   :  { %p1440_p1 = scmp.ne.s32.totalorder %s1629_s3, %s1439_s29  ;;  %p1443_p2 = scmp.lt.u32.totalorder %s1439_s29, %s1629_s3 }
 0x171   :  { %p1445_p3 = pnand %p1443_p2, %p1440_p1 }
 0x173   :  { %1448 = shalt.err (!%p1445_p3)
}
 0x174   :  { %1185 = dma.vmem_to_hbm [thread:$0]  %s1180_s25, 4096, %s1629_s3, [#allocation5], %s1456_s22, %s1456_s22, %s1457_s23  }
 0x175   :  { %1453 = dma.done.wait [#allocation5], 4096  }
 0x176   :  { %1454 = vsyncadd [#allocation5], 4294963200 }
 0x177   :  { %1189 = vsyncpa [#allocation4], 1 }
 0x178   :  { %1190 = vsyncpa [#allocation7], 1 }
 0x179   :  { %1191 = vsyncpa [#allocation5], 1 }

// kernel: lm_forward.6
= control target key start
LH: loop header
LB: loop body
LE: loop exit
PB: predicated region body
PF: predicated region fallthrough
CT: control target
= control target key end

     0   :  { %12 = vsyncpa [#allocation5], 0  ;;  %s3816_s0 = inlined_call_operand.hbm [shape: bf16[16,8,512], index: 0, kind: input, shape index: {}]   ;;  %s3817_s1 = inlined_call_operand.hbm [shape: bf16[128,512], index: 1, kind: input, shape index: {}]   ;;  %s3818_s2 = inlined_call_operand.hbm [shape: f32[8,128], index: 2, kind: input, shape index: {}]   ;;  %s3819_s3 = inlined_call_operand.hbm [shape: f32[8,128], index: 3, kind: input, shape index: {}]   ;;  %s3820_s4 = inlined_call_operand.hbm [shape: bf16[16,8,128], index: 4, kind: output, shape index: {0}]   ;;  %s3821_s5 = inlined_call_operand.hbm [shape: f32[8,128], index: 5, kind: output, shape index: {1}]   ;;  %s3822_s6 = inlined_call_operand.hbm [shape: f32[8,128], index: 6, kind: output, shape index: {2}]  }
   0x1   :  { %13 = vsyncpa [#allocation8], 0 }
   0x2   :  { %14 = vsyncpa [#allocation11], 0 }
   0x3   :  { %15 = vsyncpa [#allocation6], 0 }
   0x4   :  { %16 = vsyncpa [#allocation14], 0  ;;  %s2872_s21 = smov [#allocation7]   ;;  %s2873_s23 = smov [#allocation4]  }
   0x5   :  { %s34_s22 = sshll.u32 %s2872_s21, 4  ;;  %s22_s24 = sshll.u32 %s2873_s23, 4  ;;  %s35_s22 = int_to_ptr.vmem [resolvable:$true] %s34_s22  ;;  %s2919_s24 = int_to_ptr.vmem [resolvable:$true] %s22_s24 }
   0x6   :  { %s2708_s27 = scalar_lea.hbm %s3817_s1, 4096 }
   0x7   :  { %p2709_p0 = scmp.ne.s32.totalorder %s3817_s1, %s2708_s27  ;;  %p2712_p1 = scmp.lt.u32.totalorder %s2708_s27, %s3817_s1 }
   0x9   :  { %p2714_p2 = pnand %p2712_p1, %p2709_p0 }
   0xb   :  { %2717 = shalt.err (!%p2714_p2)
}
   0xc   :  { %s2718_s8 = scalar_lea.vmem %s35_s22, 4096  ;;  %p2723_p4 = scmp.lt.s32.totalorder %s35_s22, %s35_s22 }
   0xd   :  { %p2719_p3 = scmp.ne.s32.totalorder %s35_s22, %s2718_s8  ;;  %p2724_p5 = scmp.lt.s32.totalorder %s2718_s8, %s2718_s8 }
   0xf   :  { %p2725_p6 = por %p2724_p5, %p2723_p4 }
  0x11   :  { %p2726_p7 = pnand %p2725_p6, %p2719_p3 }
  0x13   :  { %2729 = shalt.err (!%p2726_p7)
}
  0x14   :  { %s2874_s9 = smov 256   ;;  %s2875_s10 = smov 16  }
  0x15   :  { %40 = dma.hbm_to_vmem [thread:$0]  %s3817_s1, 4096, %s35_s22, [#allocation8], %s2874_s9, %s2874_s9, %s2875_s10  }
  0x16   :  { %s2730_s15 = scalar_lea.hbm %s3816_s0, 4096 }
  0x17   :  { %p2731_p8 = scmp.ne.s32.totalorder %s3816_s0, %s2730_s15  ;;  %p2734_p9 = scmp.lt.u32.totalorder %s2730_s15, %s3816_s0 }
  0x19   :  { %p2736_p10 = pnand %p2734_p9, %p2731_p8 }
  0x1b   :  { %2739 = shalt.err (!%p2736_p10)
}
  0x1c   :  { %s2740_s20 = scalar_lea.vmem %s2919_s24, 4096  ;;  %p2745_p12 = scmp.lt.s32.totalorder %s2919_s24, %s2919_s24 }
  0x1d   :  { %p2741_p11 = scmp.ne.s32.totalorder %s2919_s24, %s2740_s20  ;;  %p2746_p13 = scmp.lt.s32.totalorder %s2740_s20, %s2740_s20 }
  0x1f   :  { %p2747_p0 = por %p2746_p13, %p2745_p12 }
  0x21   :  { %p2748_p1 = pnand %p2747_p0, %p2741_p11 }
  0x23   :  { %2751 = shalt.err (!%p2748_p1)
}
  0x24   :  { %28 = dma.hbm_to_vmem [thread:$0]  %s3816_s0, 4096, %s2919_s24, [#allocation5], %s2874_s9, %s2874_s9, %s2875_s10  }
  0x25   :  { %s2876_s22 = smov [#allocation9]   ;;  %s2877_s25 = smov [#allocation10]  }
  0x26   :  { %s47_s23 = sshll.u32 %s2876_s22, 4  ;;  %s57_s26 = sshll.u32 %s2877_s25, 4  ;;  %s48_s23 = int_to_ptr.vmem [resolvable:$true] %s47_s23  ;;  %s58_s26 = int_to_ptr.vmem [resolvable:$true] %s57_s26 }
  0x27   :  { %s2752_s29 = scalar_lea.hbm %s3818_s2, 128 }
  0x28   :  { %p2753_p2 = scmp.ne.s32.totalorder %s3818_s2, %s2752_s29  ;;  %p2756_p3 = scmp.lt.u32.totalorder %s2752_s29, %s3818_s2 }
  0x2a   :  { %p2758_p4 = pnand %p2756_p3, %p2753_p2 }
  0x2c   :  { %2761 = shalt.err (!%p2758_p4)
}
  0x2d   :  { %s2762_s0 = scalar_lea.vmem %s48_s23, 128  ;;  %p2767_p6 = scmp.lt.s32.totalorder %s48_s23, %s48_s23 }
  0x2e   :  { %p2763_p5 = scmp.ne.s32.totalorder %s48_s23, %s2762_s0  ;;  %p2768_p7 = scmp.lt.s32.totalorder %s2762_s0, %s2762_s0 }
  0x30   :  { %p2769_p8 = por %p2768_p7, %p2767_p6 }
  0x32   :  { %p2770_p9 = pnand %p2769_p8, %p2763_p5 }
  0x34   :  { %2773 = shalt.err (!%p2770_p9)
}
  0x35   :  { %50 = dma.hbm_to_vmem [thread:$0]  %s3818_s2, 128, %s48_s23, [#allocation8]  }
  0x36   :  { %s2774_s13 = scalar_lea.hbm %s3819_s3, 128 }
  0x37   :  { %p2775_p10 = scmp.ne.s32.totalorder %s3819_s3, %s2774_s13  ;;  %p2778_p11 = scmp.lt.u32.totalorder %s2774_s13, %s3819_s3 }
  0x39   :  { %p2780_p12 = pnand %p2778_p11, %p2775_p10 }
  0x3b   :  { %2783 = shalt.err (!%p2780_p12)
}
  0x3c   :  { %s2784_s18 = scalar_lea.vmem %s58_s26, 128  ;;  %p2789_p0 = scmp.lt.s32.totalorder %s58_s26, %s58_s26 }
  0x3d   :  { %p2785_p13 = scmp.ne.s32.totalorder %s58_s26, %s2784_s18  ;;  %p2790_p1 = scmp.lt.s32.totalorder %s2784_s18, %s2784_s18 }
  0x3f   :  { %p2791_p2 = por %p2790_p1, %p2789_p0 }
  0x41   :  { %p2792_p3 = pnand %p2791_p2, %p2785_p13 }
  0x43   :  { %2795 = shalt.err (!%p2792_p3)
}
  0x44   :  { %60 = dma.hbm_to_vmem [thread:$0]  %s3819_s3, 128, %s58_s26, [#allocation11]  }
  0x45   :  { %2862 = dma.done.wait [#allocation5], 4096  }
  0x46   :  { %2863 = vsyncadd [#allocation5], 4294963200 }
  0x47   :  { %2864 = dma.done.wait [#allocation8], 4224  }
  0x48   :  { %2865 = vsyncadd [#allocation8], 4294963072 }
  0x49   :  { %2866 = dma.done.wait [#allocation11], 128  }
  0x4a   :  { %2867 = vsyncadd [#allocation11], 4294967168  ;;  %v2878_v0 = vmov 0   ;;  %v2976_v1 = vld [vmem:[#allocation7 + $0x4] ss:$16 sps:$4 sm:$0xff]   ;;  %v117_v39 = vld [vmem:[#allocation4 + $0x8] sm:$0xff] }
  0x4b   :  { %315 = vmatprep.mubr.bf16.mxu0 %v2878_v0  ;;  %356 = vmatprep.mubr.bf16.mxu1 %v2878_v0  ;;  %v2978_v2 = vld [vmem:[#allocation7] ss:$16 sps:$4 sm:$0xff]   ;;  %v2981_v3 = vld [vmem:[#allocation7 + $0x24] ss:$16 sps:$4 sm:$0xff]   ;;  %v2989_v6 = vld [vmem:[#allocation7 + $0xc] ss:$16 sps:$4 sm:$0xff]   ;;  %v121_v46 = vunpack.c.h.bf16 %v117_v39  ;;  %v120_v52 = vunpack.c.l.bf16 %v117_v39 }
  0x4c   :  { %283 = vmatprep.subr.bf16.mxu0 %v2976_v1  ;;  %v2984_v4 = vld [vmem:[#allocation7 + $0x20] ss:$16 sps:$4 sm:$0xff]   ;;  %v2987_v5 = vld [vmem:[#allocation7 + $0x44] ss:$16 sps:$4 sm:$0xff]   ;;  %v2991_v7 = vld [vmem:[#allocation7 + $0x8] ss:$16 sps:$4 sm:$0xff]   ;;  %324 = vmatprep.subr.bf16.mxu1 %v2989_v6 }
  0x4d   :  { %284 = vmatpush1.bf16.msra.mxu0 %v2978_v2  ;;  %v2994_v8 = vld [vmem:[#allocation7 + $0x40] ss:$16 sps:$4 sm:$0xff]   ;;  %v2998_v9 = vld [vmem:[#allocation7 + $0x64] ss:$16 sps:$4 sm:$0xff]   ;;  %325 = vmatpush1.bf16.msra.mxu1 %v2991_v7  ;;  %v3001_v10 = vld [vmem:[#allocation7 + $0x2c] ss:$16 sps:$4 sm:$0xff]  }
  0x4e   :  { %285 = vmatprep.subr.bf16.mxu0 %v2981_v3  ;;  %v3003_v11 = vld [vmem:[#allocation7 + $0x28] ss:$16 sps:$4 sm:$0xff]   ;;  %326 = vmatprep.subr.bf16.mxu1 %v3001_v10  ;;  %v3007_v12 = vld [vmem:[#allocation7 + $0x60] ss:$16 sps:$4 sm:$0xff]   ;;  %v3009_v13 = vld [vmem:[#allocation7 + $0x84] ss:$16 sps:$4 sm:$0xff]  }
  0x4f   :  { %v3011_v14 = vld [vmem:[#allocation7 + $0x4c] ss:$16 sps:$4 sm:$0xff]   ;;  %v3015_v15 = vld [vmem:[#allocation7 + $0x48] ss:$16 sps:$4 sm:$0xff]   ;;  %v3021_v17 = vld [vmem:[#allocation7 + $0x80] ss:$16 sps:$4 sm:$0xff]  }
  0x50   :  { %v3018_v16 = vld [vmem:[#allocation7 + $0x6c] ss:$16 sps:$4 sm:$0xff]   ;;  %v3024_v18 = vld [vmem:[#allocation7 + $0xa4] ss:$16 sps:$4 sm:$0xff]   ;;  %v3027_v19 = vld [vmem:[#allocation7 + $0x68] ss:$16 sps:$4 sm:$0xff]  }
  0x51   :  { %286 = vmatpush1.bf16.msra.mxu0 %v2984_v4  ;;  %327 = vmatpush1.bf16.msra.mxu1 %v3003_v11  ;;  %v3030_v20 = vld [vmem:[#allocation7 + $0x8c] ss:$16 sps:$4 sm:$0xff]   ;;  %v3032_v21 = vld [vmem:[#allocation7 + $0xa0] ss:$16 sps:$4 sm:$0xff]   ;;  %v3035_v22 = vld [vmem:[#allocation7 + $0xc4] ss:$16 sps:$4 sm:$0xff]  }
  0x52   :  { %287 = vmatprep.subr.bf16.mxu0 %v2987_v5  ;;  %328 = vmatprep.subr.bf16.mxu1 %v3011_v14  ;;  %v3039_v23 = vld [vmem:[#allocation7 + $0x88] ss:$16 sps:$4 sm:$0xff]   ;;  %v3042_v24 = vld [vmem:[#allocation7 + $0xac] ss:$16 sps:$4 sm:$0xff]   ;;  %v3045_v25 = vld [vmem:[#allocation7 + $0xc0] ss:$16 sps:$4 sm:$0xff]  }
  0x53   :  { %v3048_v26 = vld [vmem:[#allocation7 + $0xe4] ss:$16 sps:$4 sm:$0xff]   ;;  %v3051_v27 = vld [vmem:[#allocation7 + $0xa8] ss:$16 sps:$4 sm:$0xff]   ;;  %v3054_v28 = vld [vmem:[#allocation7 + $0xcc] ss:$16 sps:$4 sm:$0xff]  }
  0x54   :  { %v3057_v29 = vld [vmem:[#allocation7 + $0xe0] ss:$16 sps:$4 sm:$0xff]   ;;  %v3061_v31 = vld [vmem:[#allocation7 + $0xc8] ss:$16 sps:$4 sm:$0xff]   ;;  %v3064_v32 = vld [vmem:[#allocation7 + $0xec] ss:$16 sps:$4 sm:$0xff]  }
  0x55   :  { %288 = vmatpush1.bf16.msra.mxu0 %v2994_v8  ;;  %329 = vmatpush1.bf16.msra.mxu1 %v3015_v15  ;;  %v78_v30 = vld [vmem:[#allocation9] sm:$0xff]  ;;  %v3068_v34 = vld [vmem:[#allocation7 + $0xe8] ss:$16 sps:$4 sm:$0xff]   ;;  %s2879_s3 = smov [#allocation13]   ;;  %s2880_s1 = smov [#allocation12]  }
  0x56   :  { %289 = vmatprep.subr.bf16.mxu0 %v2998_v9  ;;  %330 = vmatprep.subr.bf16.mxu1 %v3018_v16  ;;  %v122_v33 = vpack.c.bf16 %v78_v30, %v78_v30  ;;  %v116_v35 = vld [vmem:[#allocation4] sm:$0xff]  ;;  %v80_v62 = vld [vmem:[#allocation10] sm:$0xff]  ;;  %s2220_s20 = sshll.u32 %s2879_s3, 4  ;;  %s2207_s21 = sshll.u32 %s2880_s1, 4  ;;  %s2221_s20 = int_to_ptr.vmem [resolvable:$true] %s2220_s20  ;;  %s3766_s21 = int_to_ptr.vmem [resolvable:$true] %s2207_s21 }
  0x57   :  { %v118_v36 = vunpack.c.l.bf16 %v116_v35  ;;  %v119_v37 = vunpack.c.h.bf16 %v116_v35  ;;  %s2881_s22 = smov [#allocation15]   ;;  %s2796_s25 = scalar_lea.vmem %s2221_s20, 128 }
  0x58   :  { %s2230_s23 = sshll.u32 %s2881_s22, 4  ;;  %p2797_p4 = scmp.ne.s32.totalorder %s2221_s20, %s2796_s25  ;;  %s3768_s23 = int_to_ptr.vmem [resolvable:$true] %s2230_s23 }
  0x59   :  { %290 = vmatpush1.bf16.msra.mxu0 %v3007_v12  ;;  %331 = vmatpush1.bf16.msra.mxu1 %v3027_v19  ;;  %p2801_p5 = scmp.lt.s32.totalorder %s2221_s20, %s2221_s20  ;;  %p2802_p6 = scmp.lt.s32.totalorder %s2796_s25, %s2796_s25 }
  0x5a   :  { %291 = vmatprep.subr.bf16.mxu0 %v3009_v13  ;;  %332 = vmatprep.subr.bf16.mxu1 %v3030_v20 }
  0x5b   :  { %p2803_p7 = por %p2802_p6, %p2801_p5 }
  0x5d   :  { %292 = vmatpush1.bf16.msra.mxu0 %v3021_v17  ;;  %333 = vmatpush1.bf16.msra.mxu1 %v3039_v23  ;;  %p2804_p8 = pnand %p2803_p7, %p2797_p4 }
  0x5e   :  { %293 = vmatprep.subr.bf16.mxu0 %v3024_v18  ;;  %334 = vmatprep.subr.bf16.mxu1 %v3042_v24 }
  0x61   :  { %294 = vmatpush1.bf16.msra.mxu0 %v3032_v21  ;;  %335 = vmatpush1.bf16.msra.mxu1 %v3051_v27 }
  0x62   :  { %295 = vmatprep.subr.bf16.mxu0 %v3035_v22  ;;  %336 = vmatprep.subr.bf16.mxu1 %v3054_v28 }
  0x65   :  { %296 = vmatpush1.bf16.msra.mxu0 %v3045_v25  ;;  %337 = vmatpush1.bf16.msra.mxu1 %v3061_v31 }
  0x66   :  { %297 = vmatprep.subr.bf16.mxu0 %v3048_v26  ;;  %338 = vmatprep.subr.bf16.mxu1 %v3064_v32 }
  0x69   :  { %298 = vmatpush1.bf16.msra.mxu0 %v3057_v29  ;;  %339 = vmatpush1.bf16.msra.mxu1 %v3068_v34 }
  0x6a   :  { %402 = vmatprep.subr.bf16.mxu0 %v2976_v1  ;;  %443 = vmatprep.subr.bf16.mxu1 %v2989_v6 }
  0x6c   :  { %316 = vmatmul.mubr.bf16.vlgmr.msra.gmra.mrb[0].mxu0 %v122_v33  ;;  %357 = vmatmul.mubr.bf16.vlgmr.msra.gmra.mrb[0].mxu1 %v122_v33 }
  0x6d   :  { %403 = vmatpush1.bf16.msra.mxu0 %v2978_v2  ;;  %434 = vmatprep.mubr.bf16.mxu0 %v2878_v0 }
  0x6e   :  { %404 = vmatprep.subr.bf16.mxu0 %v2981_v3  ;;  %444 = vmatpush1.bf16.msra.mxu1 %v2991_v7 }
  0x6f   :  { %445 = vmatprep.subr.bf16.mxu1 %v3001_v10  ;;  %475 = vmatprep.mubr.bf16.mxu1 %v2878_v0 }
  0x71   :  { %405 = vmatpush1.bf16.msra.mxu0 %v2984_v4 }
  0x72   :  { %406 = vmatprep.subr.bf16.mxu0 %v2987_v5  ;;  %446 = vmatpush1.bf16.msra.mxu1 %v3003_v11 }
  0x73   :  { %447 = vmatprep.subr.bf16.mxu1 %v3011_v14 }
  0x75   :  { %407 = vmatpush1.bf16.msra.mxu0 %v2994_v8 }
  0x76   :  { %408 = vmatprep.subr.bf16.mxu0 %v2998_v9  ;;  %448 = vmatpush1.bf16.msra.mxu1 %v3015_v15 }
  0x77   :  { %449 = vmatprep.subr.bf16.mxu1 %v3018_v16 }
  0x79   :  { %409 = vmatpush1.bf16.msra.mxu0 %v3007_v12 }
  0x7a   :  { %410 = vmatprep.subr.bf16.mxu0 %v3009_v13  ;;  %450 = vmatpush1.bf16.msra.mxu1 %v3027_v19 }
  0x7b   :  { %451 = vmatprep.subr.bf16.mxu1 %v3030_v20 }
  0x7d   :  { %411 = vmatpush1.bf16.msra.mxu0 %v3021_v17 }
  0x7e   :  { %412 = vmatprep.subr.bf16.mxu0 %v3024_v18  ;;  %452 = vmatpush1.bf16.msra.mxu1 %v3039_v23 }
  0x7f   :  { %453 = vmatprep.subr.bf16.mxu1 %v3042_v24 }
  0x81   :  { %413 = vmatpush1.bf16.msra.mxu0 %v3032_v21 }
  0x82   :  { %414 = vmatprep.subr.bf16.mxu0 %v3035_v22  ;;  %454 = vmatpush1.bf16.msra.mxu1 %v3051_v27 }
  0x83   :  { %455 = vmatprep.subr.bf16.mxu1 %v3054_v28 }
  0x85   :  { %415 = vmatpush1.bf16.msra.mxu0 %v3045_v25 }
  0x86   :  { %416 = vmatprep.subr.bf16.mxu0 %v3048_v26  ;;  %456 = vmatpush1.bf16.msra.mxu1 %v3061_v31 }
  0x87   :  { %457 = vmatprep.subr.bf16.mxu1 %v3064_v32 }
  0x89   :  { %417 = vmatpush1.bf16.msra.mxu0 %v3057_v29 }
  0x8a   :  { %522 = vmatprep.subr.bf16.mxu0 %v2976_v1  ;;  %458 = vmatpush1.bf16.msra.mxu1 %v3068_v34 }
  0x8b   :  { %563 = vmatprep.subr.bf16.mxu1 %v2989_v6 }
 0x13f   :  { %v317_v38 = vpop.f32.mrb[0].mxu0  ;;  %v358_v48 = vpop.f32.mrb[0].mxu1 }
 0x140   :  { %v365_v40 = vadd.f32 %v317_v38, %v118_v36  ;;  %v319_v41 = vpop.f32.mrb[1].mxu0  ;;  %v360_v49 = vpop.f32.mrb[1].mxu1  ;;  %v367_v55 = vadd.f32 %v358_v48, %v120_v52  ;;  %v397_v48 = vld [vmem:[#allocation4 + $0x18] sm:$0xff] }
 0x141   :  { %v366_v42 = vadd.f32 %v319_v41, %v119_v37  ;;  %v321_v43 = vpop.f32.mrb[2].mxu0  ;;  %v368_v50 = vadd.f32 %v360_v49, %v121_v46  ;;  %v362_v51 = vpop.f32.mrb[2].mxu1 }
 0x142   :  { %v2280_v44 = vmul.f32 -1.442695, %v365_v40  ;;  %v322_v45 = vpop.f32.mrb[3].mxu0  ;;  %v363_v53 = vpop.f32.mrb[3].mxu1 }
 0x143   :  { %v2281_v47 = vmul.f32 -1.442695, %v366_v42  ;;  %v2282_v54 = vmul.f32 -1.442695, %v368_v50  ;;  %v396_v42 = vld [vmem:[#allocation4 + $0x10] sm:$0xff] }
 0x144   :  { %2388 = vpow2.f32 %v2280_v44  ;;  %v398_v43 = vunpack.c.l.bf16 %v396_v42  ;;  %v399_v44 = vunpack.c.h.bf16 %v396_v42 }
 0x145   :  { %2390 = vpow2.f32 %v2281_v47 }
 0x146   :  { %2392 = vpow2.f32 %v2282_v54 }
 0x147   :  { %2394 = vtanh.f32 %v367_v55 }
 0x14e   :  { %v2389_v56 = vpop.eup %2388 }
 0x14f   :  { %v2391_v57 = vpop.eup %2390  ;;  %v372_v58 = vadd.f32 1.0, %v2389_v56 }
 0x150   :  { %v378_v59 = vadd.f32 1.0, %v2391_v57  ;;  %v2393_v60 = vpop.eup %2392 }
 0x151   :  { %2396 = vrcp.f32 %v372_v58  ;;  %v2395_v61 = vpop.eup %2394  ;;  %v385_v30 = vadd.f32 1.0, %v2393_v60  ;;  %v401_v58 = vunpack.c.h.bf16 %v397_v48  ;;  %v400_v60 = vunpack.c.l.bf16 %v397_v48 }
 0x152   :  { %2398 = vrcp.f32 %v378_v59 }
 0x153   :  { %2400 = vrcp.f32 %v385_v30 }
 0x15b   :  { %v2397_v63 = vpop.eup %2396 }
 0x15c   :  { %v2399_v33 = vpop.eup %2398  ;;  %v389_v35 = vmul.f32 %v2397_v63, %v2395_v61 }
 0x15d   :  { %v388_v36 = vmul.f32 %v2399_v33, %v80_v62  ;;  %v2401_v38 = vpop.eup %2400 }
 0x15f   :  { %v3108_v37 = vadd.f32 %v389_v35, %v388_v36 }
 0x161   :  { %2402 = vtanh.f32 %v3108_v37 }
 0x16b   :  { %v2403_v39 = vpop.eup %2402 }
 0x16c   :  { %v392_v40 = vmul.f32 %v2403_v39, %v2401_v38 }
 0x16e   :  { %v393_v41 = vpack.c.bf16 %v392_v40, %v392_v40 }
 0x170   :  { %394 = vst [vmem:[#allocation12] sm:$0xf] %v393_v41  ;;  %435 = vmatmul.mubr.bf16.vlgmr.msra.gmra.mrb[4].mxu0 %v393_v41  ;;  %476 = vmatmul.mubr.bf16.vlgmr.msra.gmra.mrb[4].mxu1 %v393_v41 }
 0x171   :  { %523 = vmatpush1.bf16.msra.mxu0 %v2978_v2  ;;  %564 = vmatpush1.bf16.msra.mxu1 %v2991_v7 }
 0x172   :  { %524 = vmatprep.subr.bf16.mxu0 %v2981_v3  ;;  %565 = vmatprep.subr.bf16.mxu1 %v3001_v10 }
 0x173   :  { %554 = vmatprep.mubr.bf16.mxu0 %v2878_v0  ;;  %595 = vmatprep.mubr.bf16.mxu1 %v2878_v0 }
 0x175   :  { %525 = vmatpush1.bf16.msra.mxu0 %v2984_v4  ;;  %566 = vmatpush1.bf16.msra.mxu1 %v3003_v11 }
 0x176   :  { %526 = vmatprep.subr.bf16.mxu0 %v2987_v5  ;;  %567 = vmatprep.subr.bf16.mxu1 %v3011_v14 }
 0x179   :  { %527 = vmatpush1.bf16.msra.mxu0 %v2994_v8  ;;  %568 = vmatpush1.bf16.msra.mxu1 %v3015_v15 }
 0x17a   :  { %528 = vmatprep.subr.bf16.mxu0 %v2998_v9  ;;  %569 = vmatprep.subr.bf16.mxu1 %v3018_v16 }
 0x17d   :  { %529 = vmatpush1.bf16.msra.mxu0 %v3007_v12  ;;  %570 = vmatpush1.bf16.msra.mxu1 %v3027_v19 }
 0x17e   :  { %530 = vmatprep.subr.bf16.mxu0 %v3009_v13  ;;  %571 = vmatprep.subr.bf16.mxu1 %v3030_v20 }
 0x181   :  { %531 = vmatpush1.bf16.msra.mxu0 %v3021_v17  ;;  %572 = vmatpush1.bf16.msra.mxu1 %v3039_v23 }
 0x182   :  { %532 = vmatprep.subr.bf16.mxu0 %v3024_v18  ;;  %573 = vmatprep.subr.bf16.mxu1 %v3042_v24 }
 0x185   :  { %533 = vmatpush1.bf16.msra.mxu0 %v3032_v21  ;;  %574 = vmatpush1.bf16.msra.mxu1 %v3051_v27 }
 0x186   :  { %534 = vmatprep.subr.bf16.mxu0 %v3035_v22  ;;  %575 = vmatprep.subr.bf16.mxu1 %v3054_v28 }
 0x189   :  { %535 = vmatpush1.bf16.msra.mxu0 %v3045_v25  ;;  %576 = vmatpush1.bf16.msra.mxu1 %v3061_v31 }
 0x18a   :  { %536 = vmatprep.subr.bf16.mxu0 %v3048_v26  ;;  %577 = vmatprep.subr.bf16.mxu1 %v3064_v32 }
 0x18d   :  { %537 = vmatpush1.bf16.msra.mxu0 %v3057_v29  ;;  %578 = vmatpush1.bf16.msra.mxu1 %v3068_v34 }
 0x18e   :  { %642 = vmatprep.subr.bf16.mxu0 %v2976_v1  ;;  %683 = vmatprep.subr.bf16.mxu1 %v2989_v6 }
 0x243   :  { %v436_v45 = vpop.f32.mrb[4].mxu0  ;;  %v477_v46 = vpop.f32.mrb[4].mxu1 }
 0x244   :  { %v484_v47 = vadd.f32 %v436_v45, %v398_v43  ;;  %v438_v49 = vpop.f32.mrb[5].mxu0  ;;  %v479_v50 = vpop.f32.mrb[5].mxu1  ;;  %v486_v62 = vadd.f32 %v477_v46, %v400_v60 }
 0x245   :  { %v485_v51 = vadd.f32 %v438_v49, %v399_v44  ;;  %v440_v52 = vpop.f32.mrb[6].mxu0  ;;  %v481_v53 = vpop.f32.mrb[6].mxu1  ;;  %v487_v59 = vadd.f32 %v479_v50, %v401_v58 }
 0x246   :  { %v2283_v54 = vmul.f32 -1.442695, %v484_v47  ;;  %v441_v55 = vpop.f32.mrb[7].mxu0  ;;  %v482_v56 = vpop.f32.mrb[7].mxu1 }
 0x247   :  { %v2284_v57 = vmul.f32 -1.442695, %v485_v51  ;;  %v2285_v61 = vmul.f32 -1.442695, %v487_v59 }
 0x248   :  { %2404 = vpow2.f32 %v2283_v54  ;;  %v517_v54 = vld [vmem:[#allocation4 + $0x28] sm:$0xff] }
 0x249   :  { %2406 = vpow2.f32 %v2284_v57 }
 0x24a   :  { %2408 = vpow2.f32 %v2285_v61 }
 0x24b   :  { %2410 = vtanh.f32 %v486_v62 }
 0x252   :  { %v2405_v63 = vpop.eup %2404 }
 0x253   :  { %v2407_v30 = vpop.eup %2406  ;;  %v491_v33 = vadd.f32 1.0, %v2405_v63 }
 0x254   :  { %v497_v35 = vadd.f32 1.0, %v2407_v30  ;;  %v2409_v36 = vpop.eup %2408  ;;  %v521_v30 = vunpack.c.h.bf16 %v517_v54 }
 0x255   :  { %2412 = vrcp.f32 %v491_v33  ;;  %v2411_v38 = vpop.eup %2410  ;;  %v504_v42 = vadd.f32 1.0, %v2409_v36 }
 0x256   :  { %2414 = vrcp.f32 %v497_v35  ;;  %v520_v35 = vunpack.c.l.bf16 %v517_v54 }
 0x257   :  { %2416 = vrcp.f32 %v504_v42 }
 0x25f   :  { %v2413_v39 = vpop.eup %2412 }
 0x260   :  { %v2415_v40 = vpop.eup %2414  ;;  %v508_v41 = vmul.f32 %v2413_v39, %v2411_v38 }
 0x261   :  { %v507_v43 = vmul.f32 %v2415_v40, %v3108_v37  ;;  %v2417_v45 = vpop.eup %2416  ;;  %v516_v37 = vld [vmem:[#allocation4 + $0x20] sm:$0xff] }
 0x262   :  { %v518_v49 = vunpack.c.l.bf16 %v516_v37  ;;  %v519_v50 = vunpack.c.h.bf16 %v516_v37 }
 0x263   :  { %v3146_v44 = vadd.f32 %v508_v41, %v507_v43 }
 0x265   :  { %2418 = vtanh.f32 %v3146_v44 }
 0x26f   :  { %v2419_v46 = vpop.eup %2418 }
 0x270   :  { %v511_v47 = vmul.f32 %v2419_v46, %v2417_v45 }
 0x272   :  { %v512_v48 = vpack.c.bf16 %v511_v47, %v511_v47 }
 0x274   :  { %514 = vst [vmem:[#allocation12 + $0x4] sm:$0xf] %v512_v48  ;;  %555 = vmatmul.mubr.bf16.vlgmr.msra.gmra.mrb[8].mxu0 %v512_v48  ;;  %596 = vmatmul.mubr.bf16.vlgmr.msra.gmra.mrb[8].mxu1 %v512_v48 }
 0x275   :  { %643 = vmatpush1.bf16.msra.mxu0 %v2978_v2  ;;  %684 = vmatpush1.bf16.msra.mxu1 %v2991_v7 }
 0x276   :  { %644 = vmatprep.subr.bf16.mxu0 %v2981_v3  ;;  %685 = vmatprep.subr.bf16.mxu1 %v3001_v10 }
 0x277   :  { %674 = vmatprep.mubr.bf16.mxu0 %v2878_v0  ;;  %715 = vmatprep.mubr.bf16.mxu1 %v2878_v0 }
 0x279   :  { %645 = vmatpush1.bf16.msra.mxu0 %v2984_v4  ;;  %686 = vmatpush1.bf16.msra.mxu1 %v3003_v11 }
 0x27a   :  { %646 = vmatprep.subr.bf16.mxu0 %v2987_v5  ;;  %687 = vmatprep.subr.bf16.mxu1 %v3011_v14 }
 0x27d   :  { %647 = vmatpush1.bf16.msra.mxu0 %v2994_v8  ;;  %688 = vmatpush1.bf16.msra.mxu1 %v3015_v15 }
 0x27e   :  { %648 = vmatprep.subr.bf16.mxu0 %v2998_v9  ;;  %689 = vmatprep.subr.bf16.mxu1 %v3018_v16 }
 0x281   :  { %649 = vmatpush1.bf16.msra.mxu0 %v3007_v12  ;;  %690 = vmatpush1.bf16.msra.mxu1 %v3027_v19 }
 0x282   :  { %650 = vmatprep.subr.bf16.mxu0 %v3009_v13  ;;  %691 = vmatprep.subr.bf16.mxu1 %v3030_v20 }
 0x285   :  { %651 = vmatpush1.bf16.msra.mxu0 %v3021_v17  ;;  %692 = vmatpush1.bf16.msra.mxu1 %v3039_v23 }
 0x286   :  { %652 = vmatprep.subr.bf16.mxu0 %v3024_v18  ;;  %693 = vmatprep.subr.bf16.mxu1 %v3042_v24 }
 0x289   :  { %653 = vmatpush1.bf16.msra.mxu0 %v3032_v21  ;;  %694 = vmatpush1.bf16.msra.mxu1 %v3051_v27 }
 0x28a   :  { %654 = vmatprep.subr.bf16.mxu0 %v3035_v22  ;;  %695 = vmatprep.subr.bf16.mxu1 %v3054_v28 }
 0x28d   :  { %655 = vmatpush1.bf16.msra.mxu0 %v3045_v25  ;;  %696 = vmatpush1.bf16.msra.mxu1 %v3061_v31 }
 0x28e   :  { %656 = vmatprep.subr.bf16.mxu0 %v3048_v26  ;;  %697 = vmatprep.subr.bf16.mxu1 %v3064_v32 }
 0x291   :  { %657 = vmatpush1.bf16.msra.mxu0 %v3057_v29  ;;  %698 = vmatpush1.bf16.msra.mxu1 %v3068_v34 }
 0x292   :  { %762 = vmatprep.subr.bf16.mxu0 %v2976_v1  ;;  %803 = vmatprep.subr.bf16.mxu1 %v2989_v6 }
 0x347   :  { %v556_v51 = vpop.f32.mrb[8].mxu0  ;;  %v597_v52 = vpop.f32.mrb[8].mxu1 }
 0x348   :  { %v604_v53 = vadd.f32 %v556_v51, %v518_v49  ;;  %v558_v55 = vpop.f32.mrb[9].mxu0  ;;  %v599_v56 = vpop.f32.mrb[9].mxu1  ;;  %v606_v38 = vadd.f32 %v597_v52, %v520_v35 }
 0x349   :  { %v605_v57 = vadd.f32 %v558_v55, %v519_v50  ;;  %v560_v58 = vpop.f32.mrb[10].mxu0  ;;  %v601_v59 = vpop.f32.mrb[10].mxu1  ;;  %v607_v33 = vadd.f32 %v599_v56, %v521_v30 }
 0x34a   :  { %v2286_v60 = vmul.f32 -1.442695, %v604_v53  ;;  %v561_v61 = vpop.f32.mrb[11].mxu0  ;;  %v602_v62 = vpop.f32.mrb[11].mxu1 }
 0x34b   :  { %v2287_v63 = vmul.f32 -1.442695, %v605_v57  ;;  %v2288_v36 = vmul.f32 -1.442695, %v607_v33 }
 0x34c   :  { %2420 = vpow2.f32 %v2286_v60  ;;  %v637_v60 = vld [vmem:[#allocation4 + $0x38] sm:$0xff] }
 0x34d   :  { %2422 = vpow2.f32 %v2287_v63 }
 0x34e   :  { %2424 = vpow2.f32 %v2288_v36 }
 0x34f   :  { %2426 = vtanh.f32 %v606_v38 }
 0x356   :  { %v2421_v39 = vpop.eup %2420 }
 0x357   :  { %v2423_v40 = vpop.eup %2422  ;;  %v611_v41 = vadd.f32 1.0, %v2421_v39 }
 0x358   :  { %v617_v42 = vadd.f32 1.0, %v2423_v40  ;;  %v2425_v43 = vpop.eup %2424  ;;  %v641_v40 = vunpack.c.h.bf16 %v637_v60 }
 0x359   :  { %2428 = vrcp.f32 %v611_v41  ;;  %v2427_v45 = vpop.eup %2426  ;;  %v624_v37 = vadd.f32 1.0, %v2425_v43 }
 0x35a   :  { %2430 = vrcp.f32 %v617_v42  ;;  %v640_v42 = vunpack.c.l.bf16 %v637_v60 }
 0x35b   :  { %2432 = vrcp.f32 %v624_v37 }
 0x363   :  { %v2429_v46 = vpop.eup %2428 }
 0x364   :  { %v2431_v47 = vpop.eup %2430  ;;  %v628_v48 = vmul.f32 %v2429_v46, %v2427_v45 }
 0x365   :  { %v627_v49 = vmul.f32 %v2431_v47, %v3146_v44  ;;  %v2433_v51 = vpop.eup %2432  ;;  %v636_v44 = vld [vmem:[#allocation4 + $0x30] sm:$0xff] }
 0x366   :  { %v638_v55 = vunpack.c.l.bf16 %v636_v44  ;;  %v639_v56 = vunpack.c.h.bf16 %v636_v44 }
 0x367   :  { %v3184_v50 = vadd.f32 %v628_v48, %v627_v49 }
 0x369   :  { %2434 = vtanh.f32 %v3184_v50 }
 0x373   :  { %v2435_v52 = vpop.eup %2434 }
 0x374   :  { %v631_v53 = vmul.f32 %v2435_v52, %v2433_v51 }
 0x376   :  { %v632_v54 = vpack.c.bf16 %v631_v53, %v631_v53 }
 0x378   :  { %634 = vst [vmem:[#allocation12 + $0x8] sm:$0xf] %v632_v54  ;;  %675 = vmatmul.mubr.bf16.vlgmr.msra.gmra.mrb[12].mxu0 %v632_v54  ;;  %716 = vmatmul.mubr.bf16.vlgmr.msra.gmra.mrb[12].mxu1 %v632_v54 }
 0x379   :  { %763 = vmatpush1.bf16.msra.mxu0 %v2978_v2  ;;  %804 = vmatpush1.bf16.msra.mxu1 %v2991_v7 }
 0x37a   :  { %764 = vmatprep.subr.bf16.mxu0 %v2981_v3  ;;  %805 = vmatprep.subr.bf16.mxu1 %v3001_v10 }
 0x37b   :  { %794 = vmatprep.mubr.bf16.mxu0 %v2878_v0  ;;  %835 = vmatprep.mubr.bf16.mxu1 %v2878_v0 }
 0x37d   :  { %765 = vmatpush1.bf16.msra.mxu0 %v2984_v4  ;;  %806 = vmatpush1.bf16.msra.mxu1 %v3003_v11 }
 0x37e   :  { %766 = vmatprep.subr.bf16.mxu0 %v2987_v5  ;;  %807 = vmatprep.subr.bf16.mxu1 %v3011_v14 }
 0x381   :  { %767 = vmatpush1.bf16.msra.mxu0 %v2994_v8  ;;  %808 = vmatpush1.bf16.msra.mxu1 %v3015_v15 }
 0x382   :  { %768 = vmatprep.subr.bf16.mxu0 %v2998_v9  ;;  %809 = vmatprep.subr.bf16.mxu1 %v3018_v16 }
 0x385   :  { %769 = vmatpush1.bf16.msra.mxu0 %v3007_v12  ;;  %810 = vmatpush1.bf16.msra.mxu1 %v3027_v19 }
 0x386   :  { %770 = vmatprep.subr.bf16.mxu0 %v3009_v13  ;;  %811 = vmatprep.subr.bf16.mxu1 %v3030_v20 }
 0x389   :  { %771 = vmatpush1.bf16.msra.mxu0 %v3021_v17  ;;  %812 = vmatpush1.bf16.msra.mxu1 %v3039_v23 }
 0x38a   :  { %772 = vmatprep.subr.bf16.mxu0 %v3024_v18  ;;  %813 = vmatprep.subr.bf16.mxu1 %v3042_v24 }
 0x38d   :  { %773 = vmatpush1.bf16.msra.mxu0 %v3032_v21  ;;  %814 = vmatpush1.bf16.msra.mxu1 %v3051_v27 }
 0x38e   :  { %774 = vmatprep.subr.bf16.mxu0 %v3035_v22  ;;  %815 = vmatprep.subr.bf16.mxu1 %v3054_v28 }
 0x391   :  { %775 = vmatpush1.bf16.msra.mxu0 %v3045_v25  ;;  %816 = vmatpush1.bf16.msra.mxu1 %v3061_v31 }
 0x392   :  { %776 = vmatprep.subr.bf16.mxu0 %v3048_v26  ;;  %817 = vmatprep.subr.bf16.mxu1 %v3064_v32 }
 0x395   :  { %777 = vmatpush1.bf16.msra.mxu0 %v3057_v29  ;;  %818 = vmatpush1.bf16.msra.mxu1 %v3068_v34 }
 0x396   :  { %882 = vmatprep.subr.bf16.mxu0 %v2976_v1  ;;  %923 = vmatprep.subr.bf16.mxu1 %v2989_v6 }
 0x44b   :  { %v676_v57 = vpop.f32.mrb[12].mxu0  ;;  %v717_v58 = vpop.f32.mrb[12].mxu1 }
 0x44c   :  { %v724_v59 = vadd.f32 %v676_v57, %v638_v55  ;;  %v678_v61 = vpop.f32.mrb[13].mxu0  ;;  %v719_v62 = vpop.f32.mrb[13].mxu1  ;;  %v726_v45 = vadd.f32 %v717_v58, %v640_v42 }
 0x44d   :  { %v725_v63 = vadd.f32 %v678_v61, %v639_v56  ;;  %v680_v30 = vpop.f32.mrb[14].mxu0  ;;  %v721_v33 = vpop.f32.mrb[14].mxu1  ;;  %v727_v41 = vadd.f32 %v719_v62, %v641_v40 }
 0x44e   :  { %v2289_v35 = vmul.f32 -1.442695, %v724_v59  ;;  %v681_v36 = vpop.f32.mrb[15].mxu0  ;;  %v722_v38 = vpop.f32.mrb[15].mxu1 }
 0x44f   :  { %v2290_v39 = vmul.f32 -1.442695, %v725_v63  ;;  %v2291_v43 = vmul.f32 -1.442695, %v727_v41 }
 0x450   :  { %2436 = vpow2.f32 %v2289_v35  ;;  %v757_v35 = vld [vmem:[#allocation4 + $0x48] sm:$0xff] }
 0x451   :  { %2438 = vpow2.f32 %v2290_v39 }
 0x452   :  { %2440 = vpow2.f32 %v2291_v43 }
 0x453   :  { %2442 = vtanh.f32 %v726_v45 }
 0x45a   :  { %v2437_v46 = vpop.eup %2436 }
 0x45b   :  { %v2439_v47 = vpop.eup %2438  ;;  %v731_v48 = vadd.f32 1.0, %v2437_v46 }
 0x45c   :  { %v737_v37 = vadd.f32 1.0, %v2439_v47  ;;  %v2441_v49 = vpop.eup %2440  ;;  %v761_v47 = vunpack.c.h.bf16 %v757_v35 }
 0x45d   :  { %2444 = vrcp.f32 %v731_v48  ;;  %v2443_v51 = vpop.eup %2442  ;;  %v744_v44 = vadd.f32 1.0, %v2441_v49 }
 0x45e   :  { %2446 = vrcp.f32 %v737_v37 }
 0x45f   :  { %2448 = vrcp.f32 %v744_v44 }
 0x467   :  { %v2445_v52 = vpop.eup %2444 }
 0x468   :  { %v2447_v53 = vpop.eup %2446  ;;  %v748_v54 = vmul.f32 %v2445_v52, %v2443_v51 }
 0x469   :  { %v747_v55 = vmul.f32 %v2447_v53, %v3184_v50  ;;  %v2449_v57 = vpop.eup %2448  ;;  %v756_v50 = vld [vmem:[#allocation4 + $0x40] sm:$0xff] }
 0x46a   :  { %v758_v61 = vunpack.c.l.bf16 %v756_v50  ;;  %v759_v62 = vunpack.c.h.bf16 %v756_v50 }
 0x46b   :  { %v3222_v56 = vadd.f32 %v748_v54, %v747_v55 }
 0x46d   :  { %2450 = vtanh.f32 %v3222_v56 }
 0x477   :  { %v2451_v58 = vpop.eup %2450 }
 0x478   :  { %v751_v59 = vmul.f32 %v2451_v58, %v2449_v57 }
 0x47a   :  { %v752_v60 = vpack.c.bf16 %v751_v59, %v751_v59 }
 0x47c   :  { %754 = vst [vmem:[#allocation12 + $0xc] sm:$0xf] %v752_v60  ;;  %795 = vmatmul.mubr.bf16.vlgmr.msra.gmra.mrb[16].mxu0 %v752_v60  ;;  %836 = vmatmul.mubr.bf16.vlgmr.msra.gmra.mrb[16].mxu1 %v752_v60 }
 0x47d   :  { %883 = vmatpush1.bf16.msra.mxu0 %v2978_v2  ;;  %924 = vmatpush1.bf16.msra.mxu1 %v2991_v7 }
 0x47e   :  { %884 = vmatprep.subr.bf16.mxu0 %v2981_v3  ;;  %925 = vmatprep.subr.bf16.mxu1 %v3001_v10 }
 0x47f   :  { %914 = vmatprep.mubr.bf16.mxu0 %v2878_v0  ;;  %955 = vmatprep.mubr.bf16.mxu1 %v2878_v0 }
 0x481   :  { %885 = vmatpush1.bf16.msra.mxu0 %v2984_v4  ;;  %926 = vmatpush1.bf16.msra.mxu1 %v3003_v11 }
 0x482   :  { %886 = vmatprep.subr.bf16.mxu0 %v2987_v5  ;;  %927 = vmatprep.subr.bf16.mxu1 %v3011_v14 }
 0x485   :  { %887 = vmatpush1.bf16.msra.mxu0 %v2994_v8  ;;  %928 = vmatpush1.bf16.msra.mxu1 %v3015_v15 }
 0x486   :  { %888 = vmatprep.subr.bf16.mxu0 %v2998_v9  ;;  %929 = vmatprep.subr.bf16.mxu1 %v3018_v16 }
 0x489   :  { %889 = vmatpush1.bf16.msra.mxu0 %v3007_v12  ;;  %930 = vmatpush1.bf16.msra.mxu1 %v3027_v19 }
 0x48a   :  { %890 = vmatprep.subr.bf16.mxu0 %v3009_v13  ;;  %931 = vmatprep.subr.bf16.mxu1 %v3030_v20 }
 0x48d   :  { %891 = vmatpush1.bf16.msra.mxu0 %v3021_v17  ;;  %932 = vmatpush1.bf16.msra.mxu1 %v3039_v23 }
 0x48e   :  { %892 = vmatprep.subr.bf16.mxu0 %v3024_v18  ;;  %933 = vmatprep.subr.bf16.mxu1 %v3042_v24 }
 0x491   :  { %893 = vmatpush1.bf16.msra.mxu0 %v3032_v21  ;;  %934 = vmatpush1.bf16.msra.mxu1 %v3051_v27 }
 0x492   :  { %894 = vmatprep.subr.bf16.mxu0 %v3035_v22  ;;  %935 = vmatprep.subr.bf16.mxu1 %v3054_v28 }
 0x495   :  { %895 = vmatpush1.bf16.msra.mxu0 %v3045_v25  ;;  %936 = vmatpush1.bf16.msra.mxu1 %v3061_v31 }
 0x496   :  { %896 = vmatprep.subr.bf16.mxu0 %v3048_v26  ;;  %937 = vmatprep.subr.bf16.mxu1 %v3064_v32 }
 0x499   :  { %897 = vmatpush1.bf16.msra.mxu0 %v3057_v29  ;;  %938 = vmatpush1.bf16.msra.mxu1 %v3068_v34 }
 0x49a   :  { %1002 = vmatprep.subr.bf16.mxu0 %v2976_v1  ;;  %1043 = vmatprep.subr.bf16.mxu1 %v2989_v6  ;;  %v760_v6 = vunpack.c.l.bf16 %v757_v35 }
 0x54f   :  { %v796_v63 = vpop.f32.mrb[16].mxu0  ;;  %v837_v30 = vpop.f32.mrb[16].mxu1 }
 0x550   :  { %v844_v33 = vadd.f32 %v796_v63, %v758_v61  ;;  %v798_v36 = vpop.f32.mrb[17].mxu0  ;;  %v839_v38 = vpop.f32.mrb[17].mxu1  ;;  %v846_v37 = vadd.f32 %v837_v30, %v760_v6  ;;  %v3322_v6 = vld [vmem:[#allocation7 + $0x28] ss:$16 sps:$4 sm:$0xff]  }
 0x551   :  { %v845_v39 = vadd.f32 %v798_v36, %v759_v62  ;;  %v800_v40 = vpop.f32.mrb[18].mxu0  ;;  %v841_v41 = vpop.f32.mrb[18].mxu1  ;;  %v847_v1 = vadd.f32 %v839_v38, %v761_v47  ;;  %v3314_v47 = vld [vmem:[#allocation7 + $0x2c] ss:$16 sps:$4 sm:$0xff]  }
 0x552   :  { %v2292_v42 = vmul.f32 -1.442695, %v844_v33  ;;  %v801_v43 = vpop.f32.mrb[19].mxu0  ;;  %v842_v45 = vpop.f32.mrb[19].mxu1 }
 0x553   :  { %v2293_v46 = vmul.f32 -1.442695, %v845_v39  ;;  %v2294_v48 = vmul.f32 -1.442695, %v847_v1  ;;  %v3305_v43 = vld [vmem:[#allocation7] ss:$16 sps:$4 sm:$0xff]  }
 0x554   :  { %2452 = vpow2.f32 %v2292_v42  ;;  %v3308_v45 = vld [vmem:[#allocation7 + $0x8] ss:$16 sps:$4 sm:$0xff]   ;;  %v3319_v1 = vld [vmem:[#allocation7 + $0x20] ss:$16 sps:$4 sm:$0xff]  }
 0x555   :  { %2454 = vpow2.f32 %v2293_v46  ;;  %v3311_v46 = vld [vmem:[#allocation7 + $0x24] ss:$16 sps:$4 sm:$0xff]  }
 0x556   :  { %2456 = vpow2.f32 %v2294_v48  ;;  %v3325_v48 = vld [vmem:[#allocation7 + $0x44] ss:$16 sps:$4 sm:$0xff]  }
 0x557   :  { %2458 = vtanh.f32 %v846_v37  ;;  %v3328_v37 = vld [vmem:[#allocation7 + $0x4c] ss:$16 sps:$4 sm:$0xff]  }
 0x55e   :  { %v2453_v49 = vpop.eup %2452 }
 0x55f   :  { %v2455_v51 = vpop.eup %2454  ;;  %v851_v52 = vadd.f32 1.0, %v2453_v49  ;;  %v3331_v49 = vld [vmem:[#allocation7 + $0x40] ss:$16 sps:$4 sm:$0xff]  }
 0x560   :  { %v857_v53 = vadd.f32 1.0, %v2455_v51  ;;  %v2457_v54 = vpop.eup %2456  ;;  %v3334_v51 = vld [vmem:[#allocation7 + $0x48] ss:$16 sps:$4 sm:$0xff]  }
 0x561   :  { %2460 = vrcp.f32 %v851_v52  ;;  %v2459_v44 = vpop.eup %2458  ;;  %v864_v59 = vadd.f32 1.0, %v2457_v54  ;;  %v3337_v52 = vld [vmem:[#allocation7 + $0x64] ss:$16 sps:$4 sm:$0xff]   ;;  %v3343_v54 = vld [vmem:[#allocation7 + $0x60] ss:$16 sps:$4 sm:$0xff]  }
 0x562   :  { %2462 = vrcp.f32 %v857_v53  ;;  %v3340_v53 = vld [vmem:[#allocation7 + $0x6c] ss:$16 sps:$4 sm:$0xff]  }
 0x563   :  { %2464 = vrcp.f32 %v864_v59  ;;  %v3358_v59 = vld [vmem:[#allocation7 + $0x88] ss:$16 sps:$4 sm:$0xff]  }
 0x56b   :  { %v2461_v55 = vpop.eup %2460 }
 0x56c   :  { %v2463_v57 = vpop.eup %2462  ;;  %v868_v58 = vmul.f32 %v2461_v55, %v2459_v44  ;;  %v3346_v44 = vld [vmem:[#allocation7 + $0x68] ss:$16 sps:$4 sm:$0xff]   ;;  %v3349_v55 = vld [vmem:[#allocation7 + $0x84] ss:$16 sps:$4 sm:$0xff]  }
 0x56d   :  { %v867_v60 = vmul.f32 %v2463_v57, %v3222_v56  ;;  %v2465_v61 = vpop.eup %2464  ;;  %v3352_v57 = vld [vmem:[#allocation7 + $0x8c] ss:$16 sps:$4 sm:$0xff]  }
 0x56f   :  { %v3260_v50 = vadd.f32 %v868_v58, %v867_v60  ;;  %v3355_v58 = vld [vmem:[#allocation7 + $0x80] ss:$16 sps:$4 sm:$0xff]   ;;  %v3361_v60 = vld [vmem:[#allocation7 + $0xa4] ss:$16 sps:$4 sm:$0xff]  }
 0x571   :  { %2466 = vtanh.f32 %v3260_v50 }
 0x57b   :  { %v2467_v62 = vpop.eup %2466 }
 0x57c   :  { %v871_v63 = vmul.f32 %v2467_v62, %v2465_v61  ;;  %v3367_v61 = vld [vmem:[#allocation7 + $0xa0] ss:$16 sps:$4 sm:$0xff]   ;;  %v3370_v62 = vld [vmem:[#allocation7 + $0xa8] ss:$16 sps:$4 sm:$0xff]  }
 0x57e   :  { %v872_v30 = vpack.c.bf16 %v871_v63, %v871_v63  ;;  %v3373_v63 = vld [vmem:[#allocation7 + $0xc4] ss:$16 sps:$4 sm:$0xff]  }
 0x580   :  { %874 = vst [vmem:[#allocation12 + $0x10] sm:$0xf] %v872_v30  ;;  %915 = vmatmul.mubr.bf16.vlgmr.msra.gmra.mrb[20].mxu0 %v872_v30  ;;  %956 = vmatmul.mubr.bf16.vlgmr.msra.gmra.mrb[20].mxu1 %v872_v30  ;;  %v3376_v30 = vld [vmem:[#allocation7 + $0xcc] ss:$16 sps:$4 sm:$0xff]  }
 0x581   :  { %1003 = vmatpush1.bf16.msra.mxu0 %v2978_v2  ;;  %1044 = vmatpush1.bf16.msra.mxu1 %v2991_v7  ;;  %v3295_v2 = vld [vmem:[#allocation7 + $0x4] ss:$16 sps:$4 sm:$0xff]  }
 0x582   :  { %1004 = vmatprep.subr.bf16.mxu0 %v2981_v3  ;;  %1045 = vmatprep.subr.bf16.mxu1 %v3001_v10  ;;  %v3298_v3 = vld [vmem:[#allocation7 + $0xc] ss:$16 sps:$4 sm:$0xff]  }
 0x583   :  { %1034 = vmatprep.mubr.bf16.mxu0 %v2878_v0  ;;  %1075 = vmatprep.mubr.bf16.mxu1 %v2878_v0 }
 0x585   :  { %1005 = vmatpush1.bf16.msra.mxu0 %v2984_v4  ;;  %1046 = vmatpush1.bf16.msra.mxu1 %v3003_v11  ;;  %v876_v4 = vld [vmem:[#allocation4 + $0x50] sm:$0xff]  ;;  %v877_v11 = vld [vmem:[#allocation4 + $0x58] sm:$0xff] }
 0x586   :  { %1006 = vmatprep.subr.bf16.mxu0 %v2987_v5  ;;  %1047 = vmatprep.subr.bf16.mxu1 %v3011_v14  ;;  %v878_v5 = vunpack.c.l.bf16 %v876_v4  ;;  %v879_v7 = vunpack.c.h.bf16 %v876_v4  ;;  %v3379_v4 = vld [vmem:[#allocation7 + $0xc0] ss:$16 sps:$4 sm:$0xff]  }
 0x589   :  { %1007 = vmatpush1.bf16.msra.mxu0 %v2994_v8  ;;  %1048 = vmatpush1.bf16.msra.mxu1 %v3015_v15 }
 0x58a   :  { %1008 = vmatprep.subr.bf16.mxu0 %v2998_v9  ;;  %1049 = vmatprep.subr.bf16.mxu1 %v3018_v16 }
 0x58d   :  { %1009 = vmatpush1.bf16.msra.mxu0 %v3007_v12  ;;  %1050 = vmatpush1.bf16.msra.mxu1 %v3027_v19 }
 0x58e   :  { %1010 = vmatprep.subr.bf16.mxu0 %v3009_v13  ;;  %1051 = vmatprep.subr.bf16.mxu1 %v3030_v20 }
 0x591   :  { %1011 = vmatpush1.bf16.msra.mxu0 %v3021_v17  ;;  %1052 = vmatpush1.bf16.msra.mxu1 %v3039_v23  ;;  %v880_v23 = vunpack.c.l.bf16 %v877_v11 }
 0x592   :  { %1012 = vmatprep.subr.bf16.mxu0 %v3024_v18  ;;  %1053 = vmatprep.subr.bf16.mxu1 %v3042_v24 }
 0x595   :  { %1013 = vmatpush1.bf16.msra.mxu0 %v3032_v21  ;;  %1054 = vmatpush1.bf16.msra.mxu1 %v3051_v27  ;;  %v881_v21 = vunpack.c.h.bf16 %v877_v11  ;;  %v996_v11 = vld [vmem:[#allocation4 + $0x60] sm:$0xff] }
 0x596   :  { %1014 = vmatprep.subr.bf16.mxu0 %v3035_v22  ;;  %1055 = vmatprep.subr.bf16.mxu1 %v3054_v28 }
 0x599   :  { %1015 = vmatpush1.bf16.msra.mxu0 %v3045_v25  ;;  %1056 = vmatpush1.bf16.msra.mxu1 %v3061_v31 }
 0x59a   :  { %1016 = vmatprep.subr.bf16.mxu0 %v3048_v26  ;;  %1057 = vmatprep.subr.bf16.mxu1 %v3064_v32 }
 0x59d   :  { %1017 = vmatpush1.bf16.msra.mxu0 %v3057_v29  ;;  %1058 = vmatpush1.bf16.msra.mxu1 %v3068_v34 }
 0x59e   :  { %1122 = vmatprep.subr.bf16.mxu0 %v3295_v2  ;;  %1163 = vmatprep.subr.bf16.mxu1 %v3298_v3 }
 0x653   :  { %v916_v8 = vpop.f32.mrb[20].mxu0  ;;  %v957_v9 = vpop.f32.mrb[20].mxu1 }
 0x654   :  { %v964_v10 = vadd.f32 %v916_v8, %v878_v5  ;;  %v918_v12 = vpop.f32.mrb[21].mxu0  ;;  %v959_v13 = vpop.f32.mrb[21].mxu1  ;;  %v966_v25 = vadd.f32 %v957_v9, %v880_v23  ;;  %v3382_v5 = vld [vmem:[#allocation7 + $0xc8] ss:$16 sps:$4 sm:$0xff]   ;;  %v3388_v8 = vld [vmem:[#allocation7 + $0xec] ss:$16 sps:$4 sm:$0xff]  }
 0x655   :  { %v965_v14 = vadd.f32 %v918_v12, %v879_v7  ;;  %v920_v15 = vpop.f32.mrb[22].mxu0  ;;  %v961_v16 = vpop.f32.mrb[22].mxu1  ;;  %v967_v22 = vadd.f32 %v959_v13, %v881_v21  ;;  %v3385_v7 = vld [vmem:[#allocation7 + $0xe4] ss:$16 sps:$4 sm:$0xff]   ;;  %v3391_v9 = vld [vmem:[#allocation7 + $0xe0] ss:$16 sps:$4 sm:$0xff]   ;;  %v998_v12 = vunpack.c.l.bf16 %v996_v11  ;;  %v999_v13 = vunpack.c.h.bf16 %v996_v11 }
 0x656   :  { %v2295_v17 = vmul.f32 -1.442695, %v964_v10  ;;  %v921_v18 = vpop.f32.mrb[23].mxu0  ;;  %v962_v19 = vpop.f32.mrb[23].mxu1  ;;  %v3394_v10 = vld [vmem:[#allocation7 + $0xe8] ss:$16 sps:$4 sm:$0xff]  }
 0x657   :  { %v2296_v20 = vmul.f32 -1.442695, %v965_v14  ;;  %v2297_v24 = vmul.f32 -1.442695, %v967_v22 }
 0x658   :  { %2468 = vpow2.f32 %v2295_v17  ;;  %v997_v17 = vld [vmem:[#allocation4 + $0x68] sm:$0xff] }
 0x659   :  { %2470 = vpow2.f32 %v2296_v20 }
 0x65a   :  { %2472 = vpow2.f32 %v2297_v24 }
 0x65b   :  { %2474 = vtanh.f32 %v966_v25 }
 0x662   :  { %v2469_v26 = vpop.eup %2468 }
 0x663   :  { %v2471_v27 = vpop.eup %2470  ;;  %v971_v28 = vadd.f32 1.0, %v2469_v26 }
 0x664   :  { %v977_v29 = vadd.f32 1.0, %v2471_v27  ;;  %v2473_v31 = vpop.eup %2472  ;;  %v1001_v27 = vunpack.c.h.bf16 %v997_v17 }
 0x665   :  { %2476 = vrcp.f32 %v971_v28  ;;  %v2475_v32 = vpop.eup %2474  ;;  %v984_v35 = vadd.f32 1.0, %v2473_v31 }
 0x666   :  { %2478 = vrcp.f32 %v977_v29  ;;  %v1000_v29 = vunpack.c.l.bf16 %v997_v17 }
 0x667   :  { %2480 = vrcp.f32 %v984_v35 }
 0x66f   :  { %v2477_v34 = vpop.eup %2476 }
 0x670   :  { %v2479_v56 = vpop.eup %2478  ;;  %v988_v33 = vmul.f32 %v2477_v34, %v2475_v32 }
 0x671   :  { %v987_v36 = vmul.f32 %v2479_v56, %v3260_v50  ;;  %v2481_v39 = vpop.eup %2480  ;;  %v3364_v50 = vld [vmem:[#allocation7 + $0xac] ss:$16 sps:$4 sm:$0xff]  }
 0x673   :  { %v3302_v38 = vadd.f32 %v988_v33, %v987_v36 }
 0x675   :  { %2482 = vtanh.f32 %v3302_v38 }
 0x67f   :  { %v2483_v40 = vpop.eup %2482 }
 0x680   :  { %v991_v41 = vmul.f32 %v2483_v40, %v2481_v39 }
 0x682   :  { %v992_v42 = vpack.c.bf16 %v991_v41, %v991_v41 }
 0x684   :  { %994 = vst [vmem:[#allocation12 + $0x14] sm:$0xf] %v992_v42  ;;  %1035 = vmatmul.mubr.bf16.vlgmr.msra.gmra.mrb[24].mxu0 %v992_v42  ;;  %1076 = vmatmul.mubr.bf16.vlgmr.msra.gmra.mrb[24].mxu1 %v992_v42 }
 0x685   :  { %1123 = vmatpush1.bf16.msra.mxu0 %v3305_v43  ;;  %1164 = vmatpush1.bf16.msra.mxu1 %v3308_v45 }
 0x686   :  { %1124 = vmatprep.subr.bf16.mxu0 %v3311_v46  ;;  %1165 = vmatprep.subr.bf16.mxu1 %v3314_v47 }
 0x687   :  { %1154 = vmatprep.mubr.bf16.mxu0 %v2878_v0  ;;  %1195 = vmatprep.mubr.bf16.mxu1 %v2878_v0 }
 0x689   :  { %1125 = vmatpush1.bf16.msra.mxu0 %v3319_v1  ;;  %1166 = vmatpush1.bf16.msra.mxu1 %v3322_v6 }
 0x68a   :  { %1126 = vmatprep.subr.bf16.mxu0 %v3325_v48  ;;  %1167 = vmatprep.subr.bf16.mxu1 %v3328_v37 }
 0x68d   :  { %1127 = vmatpush1.bf16.msra.mxu0 %v3331_v49  ;;  %1168 = vmatpush1.bf16.msra.mxu1 %v3334_v51 }
 0x68e   :  { %1128 = vmatprep.subr.bf16.mxu0 %v3337_v52  ;;  %1169 = vmatprep.subr.bf16.mxu1 %v3340_v53 }
 0x691   :  { %1129 = vmatpush1.bf16.msra.mxu0 %v3343_v54  ;;  %1170 = vmatpush1.bf16.msra.mxu1 %v3346_v44 }
 0x692   :  { %1130 = vmatprep.subr.bf16.mxu0 %v3349_v55  ;;  %1171 = vmatprep.subr.bf16.mxu1 %v3352_v57 }
 0x695   :  { %1131 = vmatpush1.bf16.msra.mxu0 %v3355_v58  ;;  %1172 = vmatpush1.bf16.msra.mxu1 %v3358_v59 }
 0x696   :  { %1132 = vmatprep.subr.bf16.mxu0 %v3361_v60  ;;  %1173 = vmatprep.subr.bf16.mxu1 %v3364_v50 }
 0x699   :  { %1133 = vmatpush1.bf16.msra.mxu0 %v3367_v61  ;;  %1174 = vmatpush1.bf16.msra.mxu1 %v3370_v62 }
 0x69a   :  { %1134 = vmatprep.subr.bf16.mxu0 %v3373_v63  ;;  %1175 = vmatprep.subr.bf16.mxu1 %v3376_v30 }
 0x69d   :  { %1135 = vmatpush1.bf16.msra.mxu0 %v3379_v4  ;;  %1176 = vmatpush1.bf16.msra.mxu1 %v3382_v5 }
 0x69e   :  { %1136 = vmatprep.subr.bf16.mxu0 %v3385_v7  ;;  %1177 = vmatprep.subr.bf16.mxu1 %v3388_v8 }
 0x6a1   :  { %1137 = vmatpush1.bf16.msra.mxu0 %v3391_v9  ;;  %1178 = vmatpush1.bf16.msra.mxu1 %v3394_v10 }
 0x6a2   :  { %1242 = vmatprep.subr.bf16.mxu0 %v3295_v2  ;;  %1283 = vmatprep.subr.bf16.mxu1 %v3298_v3 }
 0x757   :  { %v1036_v14 = vpop.f32.mrb[24].mxu0  ;;  %v1077_v15 = vpop.f32.mrb[24].mxu1 }
 0x758   :  { %v1084_v16 = vadd.f32 %v1036_v14, %v998_v12  ;;  %v1038_v18 = vpop.f32.mrb[25].mxu0  ;;  %v1079_v19 = vpop.f32.mrb[25].mxu1  ;;  %v1086_v32 = vadd.f32 %v1077_v15, %v1000_v29 }
 0x759   :  { %v1085_v20 = vadd.f32 %v1038_v18, %v999_v13  ;;  %v1040_v21 = vpop.f32.mrb[26].mxu0  ;;  %v1081_v22 = vpop.f32.mrb[26].mxu1  ;;  %v1087_v28 = vadd.f32 %v1079_v19, %v1001_v27 }
 0x75a   :  { %v2298_v23 = vmul.f32 -1.442695, %v1084_v16  ;;  %v1041_v24 = vpop.f32.mrb[27].mxu0  ;;  %v1082_v25 = vpop.f32.mrb[27].mxu1 }
 0x75b   :  { %v2299_v26 = vmul.f32 -1.442695, %v1085_v20  ;;  %v2300_v31 = vmul.f32 -1.442695, %v1087_v28 }
 0x75c   :  { %2484 = vpow2.f32 %v2298_v23  ;;  %v1117_v23 = vld [vmem:[#allocation4 + $0x78] sm:$0xff] }
 0x75d   :  { %2486 = vpow2.f32 %v2299_v26 }
 0x75e   :  { %2488 = vpow2.f32 %v2300_v31 }
 0x75f   :  { %2490 = vtanh.f32 %v1086_v32 }
 0x766   :  { %v2485_v34 = vpop.eup %2484 }
 0x767   :  { %v2487_v56 = vpop.eup %2486  ;;  %v1091_v33 = vadd.f32 1.0, %v2485_v34 }
 0x768   :  { %v1097_v35 = vadd.f32 1.0, %v2487_v56  ;;  %v2489_v36 = vpop.eup %2488  ;;  %v1121_v56 = vunpack.c.h.bf16 %v1117_v23 }
 0x769   :  { %2492 = vrcp.f32 %v1091_v33  ;;  %v2491_v39 = vpop.eup %2490  ;;  %v1104_v11 = vadd.f32 1.0, %v2489_v36 }
 0x76a   :  { %2494 = vrcp.f32 %v1097_v35  ;;  %v1120_v35 = vunpack.c.l.bf16 %v1117_v23 }
 0x76b   :  { %2496 = vrcp.f32 %v1104_v11 }
 0x773   :  { %v2493_v40 = vpop.eup %2492 }
 0x774   :  { %v2495_v41 = vpop.eup %2494  ;;  %v1108_v42 = vmul.f32 %v2493_v40, %v2491_v39 }
 0x775   :  { %v1107_v12 = vmul.f32 %v2495_v41, %v3302_v38  ;;  %v2497_v14 = vpop.eup %2496  ;;  %v1116_v38 = vld [vmem:[#allocation4 + $0x70] sm:$0xff] }
 0x776   :  { %v1118_v18 = vunpack.c.l.bf16 %v1116_v38  ;;  %v1119_v19 = vunpack.c.h.bf16 %v1116_v38 }
 0x777   :  { %v3400_v13 = vadd.f32 %v1108_v42, %v1107_v12 }
 0x779   :  { %2498 = vtanh.f32 %v3400_v13 }
 0x783   :  { %v2499_v15 = vpop.eup %2498 }
 0x784   :  { %v1111_v16 = vmul.f32 %v2499_v15, %v2497_v14 }
 0x786   :  { %v1112_v17 = vpack.c.bf16 %v1111_v16, %v1111_v16 }
 0x788   :  { %1114 = vst [vmem:[#allocation12 + $0x18] sm:$0xf] %v1112_v17  ;;  %1155 = vmatmul.mubr.bf16.vlgmr.msra.gmra.mrb[28].mxu0 %v1112_v17  ;;  %1196 = vmatmul.mubr.bf16.vlgmr.msra.gmra.mrb[28].mxu1 %v1112_v17 }
 0x789   :  { %1243 = vmatpush1.bf16.msra.mxu0 %v3305_v43  ;;  %1284 = vmatpush1.bf16.msra.mxu1 %v3308_v45 }
 0x78a   :  { %1244 = vmatprep.subr.bf16.mxu0 %v3311_v46  ;;  %1285 = vmatprep.subr.bf16.mxu1 %v3314_v47 }
 0x78b   :  { %1274 = vmatprep.mubr.bf16.mxu0 %v2878_v0  ;;  %1315 = vmatprep.mubr.bf16.mxu1 %v2878_v0 }
 0x78d   :  { %1245 = vmatpush1.bf16.msra.mxu0 %v3319_v1  ;;  %1286 = vmatpush1.bf16.msra.mxu1 %v3322_v6 }
 0x78e   :  { %1246 = vmatprep.subr.bf16.mxu0 %v3325_v48  ;;  %1287 = vmatprep.subr.bf16.mxu1 %v3328_v37 }
 0x791   :  { %1247 = vmatpush1.bf16.msra.mxu0 %v3331_v49  ;;  %1288 = vmatpush1.bf16.msra.mxu1 %v3334_v51 }
 0x792   :  { %1248 = vmatprep.subr.bf16.mxu0 %v3337_v52  ;;  %1289 = vmatprep.subr.bf16.mxu1 %v3340_v53 }
 0x795   :  { %1249 = vmatpush1.bf16.msra.mxu0 %v3343_v54  ;;  %1290 = vmatpush1.bf16.msra.mxu1 %v3346_v44 }
 0x796   :  { %1250 = vmatprep.subr.bf16.mxu0 %v3349_v55  ;;  %1291 = vmatprep.subr.bf16.mxu1 %v3352_v57 }
 0x799   :  { %1251 = vmatpush1.bf16.msra.mxu0 %v3355_v58  ;;  %1292 = vmatpush1.bf16.msra.mxu1 %v3358_v59 }
 0x79a   :  { %1252 = vmatprep.subr.bf16.mxu0 %v3361_v60  ;;  %1293 = vmatprep.subr.bf16.mxu1 %v3364_v50 }
 0x79d   :  { %1253 = vmatpush1.bf16.msra.mxu0 %v3367_v61  ;;  %1294 = vmatpush1.bf16.msra.mxu1 %v3370_v62 }
 0x79e   :  { %1254 = vmatprep.subr.bf16.mxu0 %v3373_v63  ;;  %1295 = vmatprep.subr.bf16.mxu1 %v3376_v30 }
 0x7a1   :  { %1255 = vmatpush1.bf16.msra.mxu0 %v3379_v4  ;;  %1296 = vmatpush1.bf16.msra.mxu1 %v3382_v5 }
 0x7a2   :  { %1256 = vmatprep.subr.bf16.mxu0 %v3385_v7  ;;  %1297 = vmatprep.subr.bf16.mxu1 %v3388_v8 }
 0x7a5   :  { %1257 = vmatpush1.bf16.msra.mxu0 %v3391_v9  ;;  %1298 = vmatpush1.bf16.msra.mxu1 %v3394_v10 }
 0x7a6   :  { %1362 = vmatprep.subr.bf16.mxu0 %v3295_v2  ;;  %1403 = vmatprep.subr.bf16.mxu1 %v3298_v3 }
 0x85b   :  { %v1156_v20 = vpop.f32.mrb[28].mxu0  ;;  %v1197_v21 = vpop.f32.mrb[28].mxu1 }
 0x85c   :  { %v1204_v22 = vadd.f32 %v1156_v20, %v1118_v18  ;;  %v1158_v24 = vpop.f32.mrb[29].mxu0  ;;  %v1199_v25 = vpop.f32.mrb[29].mxu1  ;;  %v1206_v39 = vadd.f32 %v1197_v21, %v1120_v35 }
 0x85d   :  { %v1205_v26 = vadd.f32 %v1158_v24, %v1119_v19  ;;  %v1160_v27 = vpop.f32.mrb[30].mxu0  ;;  %v1201_v28 = vpop.f32.mrb[30].mxu1  ;;  %v1207_v33 = vadd.f32 %v1199_v25, %v1121_v56 }
 0x85e   :  { %v2301_v29 = vmul.f32 -1.442695, %v1204_v22  ;;  %v1161_v31 = vpop.f32.mrb[31].mxu0  ;;  %v1202_v32 = vpop.f32.mrb[31].mxu1 }
 0x85f   :  { %v2302_v34 = vmul.f32 -1.442695, %v1205_v26  ;;  %v2303_v36 = vmul.f32 -1.442695, %v1207_v33 }
 0x860   :  { %2500 = vpow2.f32 %v2301_v29  ;;  %v1237_v29 = vld [vmem:[#allocation4 + $0x88] sm:$0xff] }
 0x861   :  { %2502 = vpow2.f32 %v2302_v34 }
 0x862   :  { %2504 = vpow2.f32 %v2303_v36 }
 0x863   :  { %2506 = vtanh.f32 %v1206_v39 }
 0x86a   :  { %v2501_v40 = vpop.eup %2500 }
 0x86b   :  { %v2503_v41 = vpop.eup %2502  ;;  %v1211_v42 = vadd.f32 1.0, %v2501_v40 }
 0x86c   :  { %v1217_v11 = vadd.f32 1.0, %v2503_v41  ;;  %v2505_v12 = vpop.eup %2504  ;;  %v1241_v41 = vunpack.c.h.bf16 %v1237_v29 }
 0x86d   :  { %2508 = vrcp.f32 %v1211_v42  ;;  %v2507_v14 = vpop.eup %2506  ;;  %v1224_v38 = vadd.f32 1.0, %v2505_v12 }
 0x86e   :  { %2510 = vrcp.f32 %v1217_v11  ;;  %v1240_v11 = vunpack.c.l.bf16 %v1237_v29 }
 0x86f   :  { %2512 = vrcp.f32 %v1224_v38 }
 0x877   :  { %v2509_v15 = vpop.eup %2508 }
 0x878   :  { %v2511_v16 = vpop.eup %2510  ;;  %v1228_v17 = vmul.f32 %v2509_v15, %v2507_v14 }
 0x879   :  { %v1227_v18 = vmul.f32 %v2511_v16, %v3400_v13  ;;  %v2513_v20 = vpop.eup %2512  ;;  %v1236_v13 = vld [vmem:[#allocation4 + $0x80] sm:$0xff] }
 0x87a   :  { %v1238_v24 = vunpack.c.l.bf16 %v1236_v13  ;;  %v1239_v25 = vunpack.c.h.bf16 %v1236_v13 }
 0x87b   :  { %v3438_v19 = vadd.f32 %v1228_v17, %v1227_v18 }
 0x87d   :  { %2514 = vtanh.f32 %v3438_v19 }
 0x887   :  { %v2515_v21 = vpop.eup %2514 }
 0x888   :  { %v1231_v22 = vmul.f32 %v2515_v21, %v2513_v20 }
 0x88a   :  { %v1232_v23 = vpack.c.bf16 %v1231_v22, %v1231_v22 }
 0x88c   :  { %1234 = vst [vmem:[#allocation12 + $0x1c] sm:$0xf] %v1232_v23  ;;  %1275 = vmatmul.mubr.bf16.vlgmr.msra.gmra.mrb[32].mxu0 %v1232_v23  ;;  %1316 = vmatmul.mubr.bf16.vlgmr.msra.gmra.mrb[32].mxu1 %v1232_v23 }
 0x88d   :  { %1363 = vmatpush1.bf16.msra.mxu0 %v3305_v43  ;;  %1404 = vmatpush1.bf16.msra.mxu1 %v3308_v45 }
 0x88e   :  { %1364 = vmatprep.subr.bf16.mxu0 %v3311_v46  ;;  %1405 = vmatprep.subr.bf16.mxu1 %v3314_v47 }
 0x88f   :  { %1394 = vmatprep.mubr.bf16.mxu0 %v2878_v0  ;;  %1435 = vmatprep.mubr.bf16.mxu1 %v2878_v0 }
 0x891   :  { %1365 = vmatpush1.bf16.msra.mxu0 %v3319_v1  ;;  %1406 = vmatpush1.bf16.msra.mxu1 %v3322_v6 }
 0x892   :  { %1366 = vmatprep.subr.bf16.mxu0 %v3325_v48  ;;  %1407 = vmatprep.subr.bf16.mxu1 %v3328_v37 }
 0x895   :  { %1367 = vmatpush1.bf16.msra.mxu0 %v3331_v49  ;;  %1408 = vmatpush1.bf16.msra.mxu1 %v3334_v51 }
 0x896   :  { %1368 = vmatprep.subr.bf16.mxu0 %v3337_v52  ;;  %1409 = vmatprep.subr.bf16.mxu1 %v3340_v53 }
 0x899   :  { %1369 = vmatpush1.bf16.msra.mxu0 %v3343_v54  ;;  %1410 = vmatpush1.bf16.msra.mxu1 %v3346_v44 }
 0x89a   :  { %1370 = vmatprep.subr.bf16.mxu0 %v3349_v55  ;;  %1411 = vmatprep.subr.bf16.mxu1 %v3352_v57 }
 0x89d   :  { %1371 = vmatpush1.bf16.msra.mxu0 %v3355_v58  ;;  %1412 = vmatpush1.bf16.msra.mxu1 %v3358_v59 }
 0x89e   :  { %1372 = vmatprep.subr.bf16.mxu0 %v3361_v60  ;;  %1413 = vmatprep.subr.bf16.mxu1 %v3364_v50 }
 0x8a1   :  { %1373 = vmatpush1.bf16.msra.mxu0 %v3367_v61  ;;  %1414 = vmatpush1.bf16.msra.mxu1 %v3370_v62 }
 0x8a2   :  { %1374 = vmatprep.subr.bf16.mxu0 %v3373_v63  ;;  %1415 = vmatprep.subr.bf16.mxu1 %v3376_v30 }
 0x8a5   :  { %1375 = vmatpush1.bf16.msra.mxu0 %v3379_v4  ;;  %1416 = vmatpush1.bf16.msra.mxu1 %v3382_v5 }
 0x8a6   :  { %1376 = vmatprep.subr.bf16.mxu0 %v3385_v7  ;;  %1417 = vmatprep.subr.bf16.mxu1 %v3388_v8 }
 0x8a9   :  { %1377 = vmatpush1.bf16.msra.mxu0 %v3391_v9  ;;  %1418 = vmatpush1.bf16.msra.mxu1 %v3394_v10 }
 0x8aa   :  { %1482 = vmatprep.subr.bf16.mxu0 %v3295_v2  ;;  %1523 = vmatprep.subr.bf16.mxu1 %v3298_v3 }
 0x95f   :  { %v1276_v26 = vpop.f32.mrb[32].mxu0  ;;  %v1317_v27 = vpop.f32.mrb[32].mxu1 }
 0x960   :  { %v1324_v28 = vadd.f32 %v1276_v26, %v1238_v24  ;;  %v1278_v31 = vpop.f32.mrb[33].mxu0  ;;  %v1319_v32 = vpop.f32.mrb[33].mxu1  ;;  %v1326_v14 = vadd.f32 %v1317_v27, %v1240_v11 }
 0x961   :  { %v1325_v34 = vadd.f32 %v1278_v31, %v1239_v25  ;;  %v1280_v56 = vpop.f32.mrb[34].mxu0  ;;  %v1321_v33 = vpop.f32.mrb[34].mxu1  ;;  %v1327_v42 = vadd.f32 %v1319_v32, %v1241_v41 }
 0x962   :  { %v2304_v35 = vmul.f32 -1.442695, %v1324_v28  ;;  %v1281_v36 = vpop.f32.mrb[35].mxu0  ;;  %v1322_v39 = vpop.f32.mrb[35].mxu1 }
 0x963   :  { %v2305_v40 = vmul.f32 -1.442695, %v1325_v34  ;;  %v2306_v12 = vmul.f32 -1.442695, %v1327_v42 }
 0x964   :  { %2516 = vpow2.f32 %v2304_v35  ;;  %v1357_v35 = vld [vmem:[#allocation4 + $0x98] sm:$0xff] }
 0x965   :  { %2518 = vpow2.f32 %v2305_v40 }
 0x966   :  { %2520 = vpow2.f32 %v2306_v12 }
 0x967   :  { %2522 = vtanh.f32 %v1326_v14 }
 0x96e   :  { %v2517_v15 = vpop.eup %2516 }
 0x96f   :  { %v2519_v16 = vpop.eup %2518  ;;  %v1331_v17 = vadd.f32 1.0, %v2517_v15 }
 0x970   :  { %v1337_v38 = vadd.f32 1.0, %v2519_v16  ;;  %v2521_v18 = vpop.eup %2520  ;;  %v1361_v16 = vunpack.c.h.bf16 %v1357_v35 }
 0x971   :  { %2524 = vrcp.f32 %v1331_v17  ;;  %v2523_v20 = vpop.eup %2522  ;;  %v1344_v13 = vadd.f32 1.0, %v2521_v18 }
 0x972   :  { %2526 = vrcp.f32 %v1337_v38  ;;  %v1360_v38 = vunpack.c.l.bf16 %v1357_v35 }
 0x973   :  { %2528 = vrcp.f32 %v1344_v13 }
 0x97b   :  { %v2525_v21 = vpop.eup %2524 }
 0x97c   :  { %v2527_v22 = vpop.eup %2526  ;;  %v1348_v23 = vmul.f32 %v2525_v21, %v2523_v20 }
 0x97d   :  { %v1347_v24 = vmul.f32 %v2527_v22, %v3438_v19  ;;  %v2529_v26 = vpop.eup %2528  ;;  %v1356_v19 = vld [vmem:[#allocation4 + $0x90] sm:$0xff] }
 0x97e   :  { %v1358_v31 = vunpack.c.l.bf16 %v1356_v19  ;;  %v1359_v32 = vunpack.c.h.bf16 %v1356_v19 }
 0x97f   :  { %v3476_v25 = vadd.f32 %v1348_v23, %v1347_v24 }
 0x981   :  { %2530 = vtanh.f32 %v3476_v25 }
 0x98b   :  { %v2531_v27 = vpop.eup %2530 }
 0x98c   :  { %v1351_v28 = vmul.f32 %v2531_v27, %v2529_v26 }
 0x98e   :  { %v1352_v29 = vpack.c.bf16 %v1351_v28, %v1351_v28 }
 0x990   :  { %1354 = vst [vmem:[#allocation12 + $0x20] sm:$0xf] %v1352_v29  ;;  %1395 = vmatmul.mubr.bf16.vlgmr.msra.gmra.mrb[36].mxu0 %v1352_v29  ;;  %1436 = vmatmul.mubr.bf16.vlgmr.msra.gmra.mrb[36].mxu1 %v1352_v29 }
 0x991   :  { %1483 = vmatpush1.bf16.msra.mxu0 %v3305_v43  ;;  %1524 = vmatpush1.bf16.msra.mxu1 %v3308_v45 }
 0x992   :  { %1484 = vmatprep.subr.bf16.mxu0 %v3311_v46  ;;  %1525 = vmatprep.subr.bf16.mxu1 %v3314_v47 }
 0x993   :  { %1514 = vmatprep.mubr.bf16.mxu0 %v2878_v0  ;;  %1555 = vmatprep.mubr.bf16.mxu1 %v2878_v0 }
 0x995   :  { %1485 = vmatpush1.bf16.msra.mxu0 %v3319_v1  ;;  %1526 = vmatpush1.bf16.msra.mxu1 %v3322_v6 }
 0x996   :  { %1486 = vmatprep.subr.bf16.mxu0 %v3325_v48  ;;  %1527 = vmatprep.subr.bf16.mxu1 %v3328_v37 }
 0x999   :  { %1487 = vmatpush1.bf16.msra.mxu0 %v3331_v49  ;;  %1528 = vmatpush1.bf16.msra.mxu1 %v3334_v51 }
 0x99a   :  { %1488 = vmatprep.subr.bf16.mxu0 %v3337_v52  ;;  %1529 = vmatprep.subr.bf16.mxu1 %v3340_v53 }
 0x99d   :  { %1489 = vmatpush1.bf16.msra.mxu0 %v3343_v54  ;;  %1530 = vmatpush1.bf16.msra.mxu1 %v3346_v44 }
 0x99e   :  { %1490 = vmatprep.subr.bf16.mxu0 %v3349_v55  ;;  %1531 = vmatprep.subr.bf16.mxu1 %v3352_v57 }
 0x9a1   :  { %1491 = vmatpush1.bf16.msra.mxu0 %v3355_v58  ;;  %1532 = vmatpush1.bf16.msra.mxu1 %v3358_v59 }
 0x9a2   :  { %1492 = vmatprep.subr.bf16.mxu0 %v3361_v60  ;;  %1533 = vmatprep.subr.bf16.mxu1 %v3364_v50 }
 0x9a5   :  { %1493 = vmatpush1.bf16.msra.mxu0 %v3367_v61  ;;  %1534 = vmatpush1.bf16.msra.mxu1 %v3370_v62 }
 0x9a6   :  { %1494 = vmatprep.subr.bf16.mxu0 %v3373_v63  ;;  %1535 = vmatprep.subr.bf16.mxu1 %v3376_v30 }
 0x9a9   :  { %1495 = vmatpush1.bf16.msra.mxu0 %v3379_v4  ;;  %1536 = vmatpush1.bf16.msra.mxu1 %v3382_v5 }
 0x9aa   :  { %1496 = vmatprep.subr.bf16.mxu0 %v3385_v7  ;;  %1537 = vmatprep.subr.bf16.mxu1 %v3388_v8 }
 0x9ad   :  { %1497 = vmatpush1.bf16.msra.mxu0 %v3391_v9  ;;  %1538 = vmatpush1.bf16.msra.mxu1 %v3394_v10 }
 0x9ae   :  { %1602 = vmatprep.subr.bf16.mxu0 %v3295_v2  ;;  %1643 = vmatprep.subr.bf16.mxu1 %v3298_v3 }
 0xa63   :  { %v1396_v34 = vpop.f32.mrb[36].mxu0  ;;  %v1437_v56 = vpop.f32.mrb[36].mxu1 }
 0xa64   :  { %v1444_v33 = vadd.f32 %v1396_v34, %v1358_v31  ;;  %v1398_v36 = vpop.f32.mrb[37].mxu0  ;;  %v1439_v39 = vpop.f32.mrb[37].mxu1  ;;  %v1446_v20 = vadd.f32 %v1437_v56, %v1360_v38 }
 0xa65   :  { %v1445_v40 = vadd.f32 %v1398_v36, %v1359_v32  ;;  %v1400_v41 = vpop.f32.mrb[38].mxu0  ;;  %v1441_v42 = vpop.f32.mrb[38].mxu1  ;;  %v1447_v17 = vadd.f32 %v1439_v39, %v1361_v16 }
 0xa66   :  { %v2307_v11 = vmul.f32 -1.442695, %v1444_v33  ;;  %v1401_v12 = vpop.f32.mrb[39].mxu0  ;;  %v1442_v14 = vpop.f32.mrb[39].mxu1 }
 0xa67   :  { %v2308_v15 = vmul.f32 -1.442695, %v1445_v40  ;;  %v2309_v18 = vmul.f32 -1.442695, %v1447_v17 }
 0xa68   :  { %2532 = vpow2.f32 %v2307_v11  ;;  %v1477_v11 = vld [vmem:[#allocation4 + $0xa8] sm:$0xff] }
 0xa69   :  { %2534 = vpow2.f32 %v2308_v15 }
 0xa6a   :  { %2536 = vpow2.f32 %v2309_v18 }
 0xa6b   :  { %2538 = vtanh.f32 %v1446_v20 }
 0xa72   :  { %v2533_v21 = vpop.eup %2532 }
 0xa73   :  { %v2535_v22 = vpop.eup %2534  ;;  %v1451_v23 = vadd.f32 1.0, %v2533_v21 }
 0xa74   :  { %v1457_v13 = vadd.f32 1.0, %v2535_v22  ;;  %v2537_v24 = vpop.eup %2536  ;;  %v1481_v22 = vunpack.c.h.bf16 %v1477_v11 }
 0xa75   :  { %2540 = vrcp.f32 %v1451_v23  ;;  %v2539_v26 = vpop.eup %2538  ;;  %v1464_v19 = vadd.f32 1.0, %v2537_v24 }
 0xa76   :  { %2542 = vrcp.f32 %v1457_v13  ;;  %v1480_v13 = vunpack.c.l.bf16 %v1477_v11 }
 0xa77   :  { %2544 = vrcp.f32 %v1464_v19 }
 0xa7f   :  { %v2541_v27 = vpop.eup %2540 }
 0xa80   :  { %v2543_v28 = vpop.eup %2542  ;;  %v1468_v29 = vmul.f32 %v2541_v27, %v2539_v26 }
 0xa81   :  { %v1467_v31 = vmul.f32 %v2543_v28, %v3476_v25  ;;  %v2545_v34 = vpop.eup %2544  ;;  %v1476_v25 = vld [vmem:[#allocation4 + $0xa0] sm:$0xff] }
 0xa82   :  { %v1478_v36 = vunpack.c.l.bf16 %v1476_v25  ;;  %v1479_v39 = vunpack.c.h.bf16 %v1476_v25 }
 0xa83   :  { %v3514_v32 = vadd.f32 %v1468_v29, %v1467_v31 }
 0xa85   :  { %2546 = vtanh.f32 %v3514_v32 }
 0xa8f   :  { %v2547_v56 = vpop.eup %2546 }
 0xa90   :  { %v1471_v33 = vmul.f32 %v2547_v56, %v2545_v34 }
 0xa92   :  { %v1472_v35 = vpack.c.bf16 %v1471_v33, %v1471_v33 }
 0xa94   :  { %1474 = vst [vmem:[#allocation12 + $0x24] sm:$0xf] %v1472_v35  ;;  %1515 = vmatmul.mubr.bf16.vlgmr.msra.gmra.mrb[40].mxu0 %v1472_v35  ;;  %1556 = vmatmul.mubr.bf16.vlgmr.msra.gmra.mrb[40].mxu1 %v1472_v35 }
 0xa95   :  { %1603 = vmatpush1.bf16.msra.mxu0 %v3305_v43  ;;  %1644 = vmatpush1.bf16.msra.mxu1 %v3308_v45 }
 0xa96   :  { %1604 = vmatprep.subr.bf16.mxu0 %v3311_v46  ;;  %1645 = vmatprep.subr.bf16.mxu1 %v3314_v47 }
 0xa97   :  { %1634 = vmatprep.mubr.bf16.mxu0 %v2878_v0  ;;  %1675 = vmatprep.mubr.bf16.mxu1 %v2878_v0 }
 0xa99   :  { %1605 = vmatpush1.bf16.msra.mxu0 %v3319_v1  ;;  %1646 = vmatpush1.bf16.msra.mxu1 %v3322_v6 }
 0xa9a   :  { %1606 = vmatprep.subr.bf16.mxu0 %v3325_v48  ;;  %1647 = vmatprep.subr.bf16.mxu1 %v3328_v37 }
 0xa9d   :  { %1607 = vmatpush1.bf16.msra.mxu0 %v3331_v49  ;;  %1648 = vmatpush1.bf16.msra.mxu1 %v3334_v51 }
 0xa9e   :  { %1608 = vmatprep.subr.bf16.mxu0 %v3337_v52  ;;  %1649 = vmatprep.subr.bf16.mxu1 %v3340_v53 }
 0xaa1   :  { %1609 = vmatpush1.bf16.msra.mxu0 %v3343_v54  ;;  %1650 = vmatpush1.bf16.msra.mxu1 %v3346_v44 }
 0xaa2   :  { %1610 = vmatprep.subr.bf16.mxu0 %v3349_v55  ;;  %1651 = vmatprep.subr.bf16.mxu1 %v3352_v57 }
 0xaa5   :  { %1611 = vmatpush1.bf16.msra.mxu0 %v3355_v58  ;;  %1652 = vmatpush1.bf16.msra.mxu1 %v3358_v59 }
 0xaa6   :  { %1612 = vmatprep.subr.bf16.mxu0 %v3361_v60  ;;  %1653 = vmatprep.subr.bf16.mxu1 %v3364_v50 }
 0xaa9   :  { %1613 = vmatpush1.bf16.msra.mxu0 %v3367_v61  ;;  %1654 = vmatpush1.bf16.msra.mxu1 %v3370_v62 }
 0xaaa   :  { %1614 = vmatprep.subr.bf16.mxu0 %v3373_v63  ;;  %1655 = vmatprep.subr.bf16.mxu1 %v3376_v30 }
 0xaad   :  { %1615 = vmatpush1.bf16.msra.mxu0 %v3379_v4  ;;  %1656 = vmatpush1.bf16.msra.mxu1 %v3382_v5 }
 0xaae   :  { %1616 = vmatprep.subr.bf16.mxu0 %v3385_v7  ;;  %1657 = vmatprep.subr.bf16.mxu1 %v3388_v8 }
 0xab1   :  { %1617 = vmatpush1.bf16.msra.mxu0 %v3391_v9  ;;  %1658 = vmatpush1.bf16.msra.mxu1 %v3394_v10 }
 0xab2   :  { %1722 = vmatprep.subr.bf16.mxu0 %v3295_v2  ;;  %1763 = vmatprep.subr.bf16.mxu1 %v3298_v3 }
 0xb67   :  { %v1516_v40 = vpop.f32.mrb[40].mxu0  ;;  %v1557_v41 = vpop.f32.mrb[40].mxu1 }
 0xb68   :  { %v1564_v42 = vadd.f32 %v1516_v40, %v1478_v36  ;;  %v1518_v12 = vpop.f32.mrb[41].mxu0  ;;  %v1559_v14 = vpop.f32.mrb[41].mxu1  ;;  %v1566_v26 = vadd.f32 %v1557_v41, %v1480_v13 }
 0xb69   :  { %v1565_v15 = vadd.f32 %v1518_v12, %v1479_v39  ;;  %v1520_v16 = vpop.f32.mrb[42].mxu0  ;;  %v1561_v17 = vpop.f32.mrb[42].mxu1  ;;  %v1567_v23 = vadd.f32 %v1559_v14, %v1481_v22 }
 0xb6a   :  { %v2310_v38 = vmul.f32 -1.442695, %v1564_v42  ;;  %v1521_v18 = vpop.f32.mrb[43].mxu0  ;;  %v1562_v20 = vpop.f32.mrb[43].mxu1 }
 0xb6b   :  { %v2311_v21 = vmul.f32 -1.442695, %v1565_v15  ;;  %v2312_v24 = vmul.f32 -1.442695, %v1567_v23 }
 0xb6c   :  { %2548 = vpow2.f32 %v2310_v38  ;;  %v1597_v38 = vld [vmem:[#allocation4 + $0xb8] sm:$0xff] }
 0xb6d   :  { %2550 = vpow2.f32 %v2311_v21 }
 0xb6e   :  { %2552 = vpow2.f32 %v2312_v24 }
 0xb6f   :  { %2554 = vtanh.f32 %v1566_v26 }
 0xb76   :  { %v2549_v27 = vpop.eup %2548 }
 0xb77   :  { %v2551_v28 = vpop.eup %2550  ;;  %v1571_v29 = vadd.f32 1.0, %v2549_v27 }
 0xb78   :  { %v1577_v19 = vadd.f32 1.0, %v2551_v28  ;;  %v2553_v31 = vpop.eup %2552  ;;  %v1601_v28 = vunpack.c.h.bf16 %v1597_v38 }
 0xb79   :  { %2556 = vrcp.f32 %v1571_v29  ;;  %v2555_v34 = vpop.eup %2554  ;;  %v1584_v25 = vadd.f32 1.0, %v2553_v31 }
 0xb7a   :  { %2558 = vrcp.f32 %v1577_v19 }
 0xb7b   :  { %2560 = vrcp.f32 %v1584_v25 }
 0xb83   :  { %v2557_v56 = vpop.eup %2556 }
 0xb84   :  { %v2559_v33 = vpop.eup %2558  ;;  %v1588_v35 = vmul.f32 %v2557_v56, %v2555_v34 }
 0xb85   :  { %v1587_v36 = vmul.f32 %v2559_v33, %v3514_v32  ;;  %v2561_v40 = vpop.eup %2560  ;;  %v1596_v32 = vld [vmem:[#allocation4 + $0xb0] sm:$0xff] }
 0xb86   :  { %v1598_v12 = vunpack.c.l.bf16 %v1596_v32  ;;  %v1599_v14 = vunpack.c.h.bf16 %v1596_v32 }
 0xb87   :  { %v3552_v39 = vadd.f32 %v1588_v35, %v1587_v36 }
 0xb89   :  { %2562 = vtanh.f32 %v3552_v39 }
 0xb93   :  { %v2563_v41 = vpop.eup %2562 }
 0xb94   :  { %v1591_v42 = vmul.f32 %v2563_v41, %v2561_v40 }
 0xb96   :  { %v1592_v11 = vpack.c.bf16 %v1591_v42, %v1591_v42 }
 0xb98   :  { %1594 = vst [vmem:[#allocation12 + $0x28] sm:$0xf] %v1592_v11  ;;  %1635 = vmatmul.mubr.bf16.vlgmr.msra.gmra.mrb[44].mxu0 %v1592_v11  ;;  %1676 = vmatmul.mubr.bf16.vlgmr.msra.gmra.mrb[44].mxu1 %v1592_v11 }
 0xb99   :  { %1723 = vmatpush1.bf16.msra.mxu0 %v3305_v43  ;;  %1764 = vmatpush1.bf16.msra.mxu1 %v3308_v45 }
 0xb9a   :  { %1724 = vmatprep.subr.bf16.mxu0 %v3311_v46  ;;  %1765 = vmatprep.subr.bf16.mxu1 %v3314_v47 }
 0xb9b   :  { %1754 = vmatprep.mubr.bf16.mxu0 %v2878_v0  ;;  %1795 = vmatprep.mubr.bf16.mxu1 %v2878_v0 }
 0xb9d   :  { %1725 = vmatpush1.bf16.msra.mxu0 %v3319_v1  ;;  %1766 = vmatpush1.bf16.msra.mxu1 %v3322_v6 }
 0xb9e   :  { %1726 = vmatprep.subr.bf16.mxu0 %v3325_v48  ;;  %1767 = vmatprep.subr.bf16.mxu1 %v3328_v37 }
 0xba1   :  { %1727 = vmatpush1.bf16.msra.mxu0 %v3331_v49  ;;  %1768 = vmatpush1.bf16.msra.mxu1 %v3334_v51 }
 0xba2   :  { %1728 = vmatprep.subr.bf16.mxu0 %v3337_v52  ;;  %1769 = vmatprep.subr.bf16.mxu1 %v3340_v53 }
 0xba5   :  { %1729 = vmatpush1.bf16.msra.mxu0 %v3343_v54  ;;  %1770 = vmatpush1.bf16.msra.mxu1 %v3346_v44 }
 0xba6   :  { %1730 = vmatprep.subr.bf16.mxu0 %v3349_v55  ;;  %1771 = vmatprep.subr.bf16.mxu1 %v3352_v57 }
 0xba9   :  { %1731 = vmatpush1.bf16.msra.mxu0 %v3355_v58  ;;  %1772 = vmatpush1.bf16.msra.mxu1 %v3358_v59 }
 0xbaa   :  { %1732 = vmatprep.subr.bf16.mxu0 %v3361_v60  ;;  %1773 = vmatprep.subr.bf16.mxu1 %v3364_v50 }
 0xbad   :  { %1733 = vmatpush1.bf16.msra.mxu0 %v3367_v61  ;;  %1774 = vmatpush1.bf16.msra.mxu1 %v3370_v62 }
 0xbae   :  { %1734 = vmatprep.subr.bf16.mxu0 %v3373_v63  ;;  %1775 = vmatprep.subr.bf16.mxu1 %v3376_v30 }
 0xbb1   :  { %1735 = vmatpush1.bf16.msra.mxu0 %v3379_v4  ;;  %1776 = vmatpush1.bf16.msra.mxu1 %v3382_v5 }
 0xbb2   :  { %1736 = vmatprep.subr.bf16.mxu0 %v3385_v7  ;;  %1777 = vmatprep.subr.bf16.mxu1 %v3388_v8 }
 0xbb5   :  { %1737 = vmatpush1.bf16.msra.mxu0 %v3391_v9  ;;  %1778 = vmatpush1.bf16.msra.mxu1 %v3394_v10 }
 0xbb6   :  { %1842 = vmatprep.subr.bf16.mxu0 %v3295_v2  ;;  %1883 = vmatprep.subr.bf16.mxu1 %v3298_v3  ;;  %v1600_v3 = vunpack.c.l.bf16 %v1597_v38 }
 0xc6b   :  { %v1636_v15 = vpop.f32.mrb[44].mxu0  ;;  %v1677_v16 = vpop.f32.mrb[44].mxu1 }
 0xc6c   :  { %v1684_v17 = vadd.f32 %v1636_v15, %v1598_v12  ;;  %v1638_v18 = vpop.f32.mrb[45].mxu0  ;;  %v1679_v20 = vpop.f32.mrb[45].mxu1  ;;  %v1686_v19 = vadd.f32 %v1677_v16, %v1600_v3  ;;  %v3652_v3 = vld [vmem:[#allocation7 + $0x28] ss:$16 sps:$4 sm:$0xff]  }
 0xc6d   :  { %v1685_v21 = vadd.f32 %v1638_v18, %v1599_v14  ;;  %v1640_v22 = vpop.f32.mrb[46].mxu0  ;;  %v1681_v23 = vpop.f32.mrb[46].mxu1  ;;  %v1687_v2 = vadd.f32 %v1679_v20, %v1601_v28  ;;  %v3644_v28 = vld [vmem:[#allocation7 + $0x2c] ss:$16 sps:$4 sm:$0xff]  }
 0xc6e   :  { %v2313_v13 = vmul.f32 -1.442695, %v1684_v17  ;;  %v1641_v24 = vpop.f32.mrb[47].mxu0  ;;  %v1682_v26 = vpop.f32.mrb[47].mxu1 }
 0xc6f   :  { %v2314_v27 = vmul.f32 -1.442695, %v1685_v21  ;;  %v2315_v29 = vmul.f32 -1.442695, %v1687_v2  ;;  %v3635_v24 = vld [vmem:[#allocation7] ss:$16 sps:$4 sm:$0xff]  }
 0xc70   :  { %2564 = vpow2.f32 %v2313_v13  ;;  %v3638_v26 = vld [vmem:[#allocation7 + $0x8] ss:$16 sps:$4 sm:$0xff]   ;;  %v3649_v2 = vld [vmem:[#allocation7 + $0x20] ss:$16 sps:$4 sm:$0xff]  }
 0xc71   :  { %2566 = vpow2.f32 %v2314_v27  ;;  %v3641_v27 = vld [vmem:[#allocation7 + $0x24] ss:$16 sps:$4 sm:$0xff]  }
 0xc72   :  { %2568 = vpow2.f32 %v2315_v29  ;;  %v3655_v29 = vld [vmem:[#allocation7 + $0x44] ss:$16 sps:$4 sm:$0xff]  }
 0xc73   :  { %2570 = vtanh.f32 %v1686_v19  ;;  %v3658_v19 = vld [vmem:[#allocation7 + $0x4c] ss:$16 sps:$4 sm:$0xff]  }
 0xc7a   :  { %v2565_v31 = vpop.eup %2564 }
 0xc7b   :  { %v2567_v34 = vpop.eup %2566  ;;  %v1691_v56 = vadd.f32 1.0, %v2565_v31  ;;  %v3661_v31 = vld [vmem:[#allocation7 + $0x40] ss:$16 sps:$4 sm:$0xff]  }
 0xc7c   :  { %v1697_v33 = vadd.f32 1.0, %v2567_v34  ;;  %v2569_v35 = vpop.eup %2568  ;;  %v3664_v34 = vld [vmem:[#allocation7 + $0x48] ss:$16 sps:$4 sm:$0xff]  }
 0xc7d   :  { %2572 = vrcp.f32 %v1691_v56  ;;  %v2571_v25 = vpop.eup %2570  ;;  %v1704_v42 = vadd.f32 1.0, %v2569_v35  ;;  %v3667_v56 = vld [vmem:[#allocation7 + $0x64] ss:$16 sps:$4 sm:$0xff]   ;;  %v3673_v35 = vld [vmem:[#allocation7 + $0x60] ss:$16 sps:$4 sm:$0xff]  }
 0xc7e   :  { %2574 = vrcp.f32 %v1697_v33  ;;  %v3670_v33 = vld [vmem:[#allocation7 + $0x6c] ss:$16 sps:$4 sm:$0xff]  }
 0xc7f   :  { %2576 = vrcp.f32 %v1704_v42  ;;  %v3688_v42 = vld [vmem:[#allocation7 + $0x88] ss:$16 sps:$4 sm:$0xff]  }
 0xc87   :  { %v2573_v36 = vpop.eup %2572 }
 0xc88   :  { %v2575_v40 = vpop.eup %2574  ;;  %v1708_v41 = vmul.f32 %v2573_v36, %v2571_v25  ;;  %v3676_v25 = vld [vmem:[#allocation7 + $0x68] ss:$16 sps:$4 sm:$0xff]   ;;  %v3679_v36 = vld [vmem:[#allocation7 + $0x84] ss:$16 sps:$4 sm:$0xff]  }
 0xc89   :  { %v1707_v11 = vmul.f32 %v2575_v40, %v3552_v39  ;;  %v2577_v12 = vpop.eup %2576  ;;  %v3682_v40 = vld [vmem:[#allocation7 + $0x8c] ss:$16 sps:$4 sm:$0xff]  }
 0xc8b   :  { %v3590_v32 = vadd.f32 %v1708_v41, %v1707_v11  ;;  %v3685_v41 = vld [vmem:[#allocation7 + $0x80] ss:$16 sps:$4 sm:$0xff]   ;;  %v3691_v11 = vld [vmem:[#allocation7 + $0xa4] ss:$16 sps:$4 sm:$0xff]  }
 0xc8d   :  { %2578 = vtanh.f32 %v3590_v32 }
 0xc97   :  { %v2579_v14 = vpop.eup %2578 }
 0xc98   :  { %v1711_v15 = vmul.f32 %v2579_v14, %v2577_v12  ;;  %v3697_v12 = vld [vmem:[#allocation7 + $0xa0] ss:$16 sps:$4 sm:$0xff]   ;;  %v3700_v14 = vld [vmem:[#allocation7 + $0xa8] ss:$16 sps:$4 sm:$0xff]  }
 0xc9a   :  { %v1712_v16 = vpack.c.bf16 %v1711_v15, %v1711_v15  ;;  %v3703_v15 = vld [vmem:[#allocation7 + $0xc4] ss:$16 sps:$4 sm:$0xff]  }
 0xc9c   :  { %1714 = vst [vmem:[#allocation12 + $0x2c] sm:$0xf] %v1712_v16  ;;  %1755 = vmatmul.mubr.bf16.vlgmr.msra.gmra.mrb[48].mxu0 %v1712_v16  ;;  %1796 = vmatmul.mubr.bf16.vlgmr.msra.gmra.mrb[48].mxu1 %v1712_v16  ;;  %v3706_v16 = vld [vmem:[#allocation7 + $0xcc] ss:$16 sps:$4 sm:$0xff]  }
 0xc9d   :  { %1843 = vmatpush1.bf16.msra.mxu0 %v3305_v43  ;;  %1884 = vmatpush1.bf16.msra.mxu1 %v3308_v45  ;;  %v3625_v43 = vld [vmem:[#allocation7 + $0x4] ss:$16 sps:$4 sm:$0xff]   ;;  %v3628_v45 = vld [vmem:[#allocation7 + $0xc] ss:$16 sps:$4 sm:$0xff]  }
 0xc9e   :  { %1844 = vmatprep.subr.bf16.mxu0 %v3311_v46  ;;  %1885 = vmatprep.subr.bf16.mxu1 %v3314_v47  ;;  %v1716_v46 = vld [vmem:[#allocation4 + $0xc0] sm:$0xff] }
 0xc9f   :  { %1874 = vmatprep.mubr.bf16.mxu0 %v2878_v0  ;;  %1915 = vmatprep.mubr.bf16.mxu1 %v2878_v0  ;;  %v1718_v47 = vunpack.c.l.bf16 %v1716_v46 }
 0xca1   :  { %1845 = vmatpush1.bf16.msra.mxu0 %v3319_v1  ;;  %1886 = vmatpush1.bf16.msra.mxu1 %v3322_v6  ;;  %v1719_v1 = vunpack.c.h.bf16 %v1716_v46  ;;  %v3709_v46 = vld [vmem:[#allocation7 + $0xc0] ss:$16 sps:$4 sm:$0xff]  }
 0xca2   :  { %1846 = vmatprep.subr.bf16.mxu0 %v3325_v48  ;;  %1887 = vmatprep.subr.bf16.mxu1 %v3328_v37 }
 0xca5   :  { %1847 = vmatpush1.bf16.msra.mxu0 %v3331_v49  ;;  %1888 = vmatpush1.bf16.msra.mxu1 %v3334_v51  ;;  %v1717_v49 = vld [vmem:[#allocation4 + $0xc8] sm:$0xff] }
 0xca6   :  { %1848 = vmatprep.subr.bf16.mxu0 %v3337_v52  ;;  %1889 = vmatprep.subr.bf16.mxu1 %v3340_v53 }
 0xca9   :  { %1849 = vmatpush1.bf16.msra.mxu0 %v3343_v54  ;;  %1890 = vmatpush1.bf16.msra.mxu1 %v3346_v44 }
 0xcaa   :  { %1850 = vmatprep.subr.bf16.mxu0 %v3349_v55  ;;  %1891 = vmatprep.subr.bf16.mxu1 %v3352_v57 }
 0xcad   :  { %1851 = vmatpush1.bf16.msra.mxu0 %v3355_v58  ;;  %1892 = vmatpush1.bf16.msra.mxu1 %v3358_v59 }
 0xcae   :  { %1852 = vmatprep.subr.bf16.mxu0 %v3361_v60  ;;  %1893 = vmatprep.subr.bf16.mxu1 %v3364_v50  ;;  %v1721_v60 = vunpack.c.h.bf16 %v1717_v49 }
 0xcb1   :  { %1853 = vmatpush1.bf16.msra.mxu0 %v3367_v61  ;;  %1894 = vmatpush1.bf16.msra.mxu1 %v3370_v62  ;;  %v1720_v61 = vunpack.c.l.bf16 %v1717_v49  ;;  %v1836_v49 = vld [vmem:[#allocation4 + $0xd0] sm:$0xff] }
 0xcb2   :  { %1854 = vmatprep.subr.bf16.mxu0 %v3373_v63  ;;  %1895 = vmatprep.subr.bf16.mxu1 %v3376_v30 }
 0xcb5   :  { %1855 = vmatpush1.bf16.msra.mxu0 %v3379_v4  ;;  %1896 = vmatpush1.bf16.msra.mxu1 %v3382_v5 }
 0xcb6   :  { %1856 = vmatprep.subr.bf16.mxu0 %v3385_v7  ;;  %1897 = vmatprep.subr.bf16.mxu1 %v3388_v8 }
 0xcb9   :  { %1857 = vmatpush1.bf16.msra.mxu0 %v3391_v9  ;;  %1898 = vmatpush1.bf16.msra.mxu1 %v3394_v10 }
 0xcba   :  { %1962 = vmatprep.subr.bf16.mxu0 %v3625_v43  ;;  %2003 = vmatprep.subr.bf16.mxu1 %v3628_v45 }
 0xd6f   :  { %v1756_v6 = vpop.f32.mrb[48].mxu0  ;;  %v1797_v48 = vpop.f32.mrb[48].mxu1 }
 0xd70   :  { %v1804_v37 = vadd.f32 %v1756_v6, %v1718_v47  ;;  %v1758_v51 = vpop.f32.mrb[49].mxu0  ;;  %v1799_v52 = vpop.f32.mrb[49].mxu1  ;;  %v1806_v63 = vadd.f32 %v1797_v48, %v1720_v61  ;;  %v3712_v47 = vld [vmem:[#allocation7 + $0xc8] ss:$16 sps:$4 sm:$0xff]   ;;  %v3718_v6 = vld [vmem:[#allocation7 + $0xec] ss:$16 sps:$4 sm:$0xff]  }
 0xd71   :  { %v1805_v53 = vadd.f32 %v1758_v51, %v1719_v1  ;;  %v1760_v54 = vpop.f32.mrb[50].mxu0  ;;  %v1801_v44 = vpop.f32.mrb[50].mxu1  ;;  %v1807_v50 = vadd.f32 %v1799_v52, %v1721_v60  ;;  %v3715_v1 = vld [vmem:[#allocation7 + $0xe4] ss:$16 sps:$4 sm:$0xff]   ;;  %v3721_v48 = vld [vmem:[#allocation7 + $0xe0] ss:$16 sps:$4 sm:$0xff]   ;;  %v1838_v51 = vunpack.c.l.bf16 %v1836_v49  ;;  %v1839_v52 = vunpack.c.h.bf16 %v1836_v49 }
 0xd72   :  { %v2316_v55 = vmul.f32 -1.442695, %v1804_v37  ;;  %v1761_v57 = vpop.f32.mrb[51].mxu0  ;;  %v1802_v58 = vpop.f32.mrb[51].mxu1  ;;  %v3724_v37 = vld [vmem:[#allocation7 + $0xe8] ss:$16 sps:$4 sm:$0xff]  }
 0xd73   :  { %v2317_v59 = vmul.f32 -1.442695, %v1805_v53  ;;  %v2318_v62 = vmul.f32 -1.442695, %v1807_v50 }
 0xd74   :  { %2580 = vpow2.f32 %v2316_v55  ;;  %v1837_v55 = vld [vmem:[#allocation4 + $0xd8] sm:$0xff] }
 0xd75   :  { %2582 = vpow2.f32 %v2317_v59 }
 0xd76   :  { %2584 = vpow2.f32 %v2318_v62 }
 0xd77   :  { %2586 = vtanh.f32 %v1806_v63 }
 0xd7e   :  { %v2581_v30 = vpop.eup %2580 }
 0xd7f   :  { %v2583_v4 = vpop.eup %2582  ;;  %v1811_v5 = vadd.f32 1.0, %v2581_v30 }
 0xd80   :  { %v1817_v7 = vadd.f32 1.0, %v2583_v4  ;;  %v2585_v8 = vpop.eup %2584  ;;  %v1841_v4 = vunpack.c.h.bf16 %v1837_v55 }
 0xd81   :  { %2588 = vrcp.f32 %v1811_v5  ;;  %v2587_v9 = vpop.eup %2586  ;;  %v1824_v38 = vadd.f32 1.0, %v2585_v8 }
 0xd82   :  { %2590 = vrcp.f32 %v1817_v7 }
 0xd83   :  { %2592 = vrcp.f32 %v1824_v38 }
 0xd8b   :  { %v2589_v10 = vpop.eup %2588 }
 0xd8c   :  { %v2591_v39 = vpop.eup %2590  ;;  %v1828_v17 = vmul.f32 %v2589_v10, %v2587_v9 }
 0xd8d   :  { %v1827_v18 = vmul.f32 %v2591_v39, %v3590_v32  ;;  %v2593_v21 = vpop.eup %2592  ;;  %v3694_v32 = vld [vmem:[#allocation7 + $0xac] ss:$16 sps:$4 sm:$0xff]  }
 0xd8f   :  { %v3632_v20 = vadd.f32 %v1828_v17, %v1827_v18 }
 0xd91   :  { %2594 = vtanh.f32 %v3632_v20 }
 0xd9b   :  { %v2595_v22 = vpop.eup %2594 }
 0xd9c   :  { %v1831_v23 = vmul.f32 %v2595_v22, %v2593_v21 }
 0xd9e   :  { %v1832_v13 = vpack.c.bf16 %v1831_v23, %v1831_v23 }
 0xda0   :  { %1834 = vst [vmem:[#allocation12 + $0x30] sm:$0xf] %v1832_v13  ;;  %1875 = vmatmul.mubr.bf16.vlgmr.msra.gmra.mrb[52].mxu0 %v1832_v13  ;;  %1916 = vmatmul.mubr.bf16.vlgmr.msra.gmra.mrb[52].mxu1 %v1832_v13 }
 0xda1   :  { %1963 = vmatpush1.bf16.msra.mxu0 %v3635_v24  ;;  %2004 = vmatpush1.bf16.msra.mxu1 %v3638_v26 }
 0xda2   :  { %1964 = vmatprep.subr.bf16.mxu0 %v3641_v27  ;;  %2005 = vmatprep.subr.bf16.mxu1 %v3644_v28 }
 0xda3   :  { %1994 = vmatprep.mubr.bf16.mxu0 %v2878_v0  ;;  %2035 = vmatprep.mubr.bf16.mxu1 %v2878_v0 }
 0xda5   :  { %1965 = vmatpush1.bf16.msra.mxu0 %v3649_v2  ;;  %2006 = vmatpush1.bf16.msra.mxu1 %v3652_v3 }
 0xda6   :  { %1966 = vmatprep.subr.bf16.mxu0 %v3655_v29  ;;  %2007 = vmatprep.subr.bf16.mxu1 %v3658_v19 }
 0xda9   :  { %1967 = vmatpush1.bf16.msra.mxu0 %v3661_v31  ;;  %2008 = vmatpush1.bf16.msra.mxu1 %v3664_v34 }
 0xdaa   :  { %1968 = vmatprep.subr.bf16.mxu0 %v3667_v56  ;;  %2009 = vmatprep.subr.bf16.mxu1 %v3670_v33 }
 0xdad   :  { %1969 = vmatpush1.bf16.msra.mxu0 %v3673_v35  ;;  %2010 = vmatpush1.bf16.msra.mxu1 %v3676_v25 }
 0xdae   :  { %1970 = vmatprep.subr.bf16.mxu0 %v3679_v36  ;;  %2011 = vmatprep.subr.bf16.mxu1 %v3682_v40 }
 0xdb1   :  { %1971 = vmatpush1.bf16.msra.mxu0 %v3685_v41  ;;  %2012 = vmatpush1.bf16.msra.mxu1 %v3688_v42 }
 0xdb2   :  { %1972 = vmatprep.subr.bf16.mxu0 %v3691_v11  ;;  %2013 = vmatprep.subr.bf16.mxu1 %v3694_v32 }
 0xdb5   :  { %1973 = vmatpush1.bf16.msra.mxu0 %v3697_v12  ;;  %2014 = vmatpush1.bf16.msra.mxu1 %v3700_v14 }
 0xdb6   :  { %1974 = vmatprep.subr.bf16.mxu0 %v3703_v15  ;;  %2015 = vmatprep.subr.bf16.mxu1 %v3706_v16 }
 0xdb9   :  { %1975 = vmatpush1.bf16.msra.mxu0 %v3709_v46  ;;  %2016 = vmatpush1.bf16.msra.mxu1 %v3712_v47 }
 0xdba   :  { %1976 = vmatprep.subr.bf16.mxu0 %v3715_v1  ;;  %2017 = vmatprep.subr.bf16.mxu1 %v3718_v6 }
 0xdbd   :  { %1977 = vmatpush1.bf16.msra.mxu0 %v3721_v48  ;;  %2018 = vmatpush1.bf16.msra.mxu1 %v3724_v37 }
 0xdbe   :  { %2082 = vmatprep.subr.bf16.mxu0 %v3625_v43  ;;  %2123 = vmatprep.subr.bf16.mxu1 %v3628_v45  ;;  %v1840_v45 = vunpack.c.l.bf16 %v1837_v55 }
 0xe73   :  { %v1876_v53 = vpop.f32.mrb[52].mxu0  ;;  %v1917_v54 = vpop.f32.mrb[52].mxu1 }
 0xe74   :  { %v1924_v44 = vadd.f32 %v1876_v53, %v1838_v51  ;;  %v1878_v57 = vpop.f32.mrb[53].mxu0  ;;  %v1919_v58 = vpop.f32.mrb[53].mxu1  ;;  %v1926_v7 = vadd.f32 %v1917_v54, %v1840_v45 }
 0xe75   :  { %v1925_v59 = vadd.f32 %v1878_v57, %v1839_v52  ;;  %v1880_v60 = vpop.f32.mrb[54].mxu0  ;;  %v1921_v50 = vpop.f32.mrb[54].mxu1  ;;  %v1927_v43 = vadd.f32 %v1919_v58, %v1841_v4  ;;  %v2077_v4 = vld [vmem:[#allocation4 + $0xf8] sm:$0xff] }
 0xe76   :  { %v2319_v61 = vmul.f32 -1.442695, %v1924_v44  ;;  %v1881_v62 = vpop.f32.mrb[55].mxu0  ;;  %v1922_v63 = vpop.f32.mrb[55].mxu1  ;;  %v2076_v60 = vld [vmem:[#allocation4 + $0xf0] sm:$0xff] }
 0xe77   :  { %v2320_v30 = vmul.f32 -1.442695, %v1925_v59  ;;  %v2321_v5 = vmul.f32 -1.442695, %v1927_v43  ;;  %v2078_v50 = vunpack.c.l.bf16 %v2076_v60 }
 0xe78   :  { %2596 = vpow2.f32 %v2319_v61  ;;  %v2079_v61 = vunpack.c.h.bf16 %v2076_v60 }
 0xe79   :  { %2598 = vpow2.f32 %v2320_v30 }
 0xe7a   :  { %2600 = vpow2.f32 %v2321_v5 }
 0xe7b   :  { %2602 = vtanh.f32 %v1926_v7 }
 0xe82   :  { %v2597_v8 = vpop.eup %2596 }
 0xe83   :  { %v2599_v9 = vpop.eup %2598  ;;  %v1931_v10 = vadd.f32 1.0, %v2597_v8 }
 0xe84   :  { %v1937_v39 = vadd.f32 1.0, %v2599_v9  ;;  %v2601_v17 = vpop.eup %2600 }
 0xe85   :  { %2604 = vrcp.f32 %v1931_v10  ;;  %v2603_v38 = vpop.eup %2602  ;;  %v1944_v23 = vadd.f32 1.0, %v2601_v17 }
 0xe86   :  { %2606 = vrcp.f32 %v1937_v39 }
 0xe87   :  { %2608 = vrcp.f32 %v1944_v23 }
 0xe8f   :  { %v2605_v18 = vpop.eup %2604 }
 0xe90   :  { %v2607_v21 = vpop.eup %2606  ;;  %v1948_v22 = vmul.f32 %v2605_v18, %v2603_v38  ;;  %v2081_v38 = vunpack.c.h.bf16 %v2077_v4 }
 0xe91   :  { %v1947_v13 = vmul.f32 %v2607_v21, %v3632_v20  ;;  %v2609_v51 = vpop.eup %2608  ;;  %v2080_v21 = vunpack.c.l.bf16 %v2077_v4 }
 0xe93   :  { %v3730_v49 = vadd.f32 %v1948_v22, %v1947_v13 }
 0xe95   :  { %2610 = vtanh.f32 %v3730_v49 }
 0xe9f   :  { %v2611_v52 = vpop.eup %2610 }
 0xea0   :  { %v1951_v53 = vmul.f32 %v2611_v52, %v2609_v51 }
 0xea2   :  { %v1952_v54 = vpack.c.bf16 %v1951_v53, %v1951_v53 }
 0xea4   :  { %1954 = vst [vmem:[#allocation12 + $0x34] sm:$0xf] %v1952_v54  ;;  %1995 = vmatmul.mubr.bf16.vlgmr.msra.gmra.mrb[56].mxu0 %v1952_v54  ;;  %2036 = vmatmul.mubr.bf16.vlgmr.msra.gmra.mrb[56].mxu1 %v1952_v54 }
 0xea5   :  { %2083 = vmatpush1.bf16.msra.mxu0 %v3635_v24  ;;  %2124 = vmatpush1.bf16.msra.mxu1 %v3638_v26 }
 0xea6   :  { %2084 = vmatprep.subr.bf16.mxu0 %v3641_v27  ;;  %2125 = vmatprep.subr.bf16.mxu1 %v3644_v28 }
 0xea7   :  { %2114 = vmatprep.mubr.bf16.mxu0 %v2878_v0  ;;  %2155 = vmatprep.mubr.bf16.mxu1 %v2878_v0  ;;  %v1956_v0 = vld [vmem:[#allocation4 + $0xe0] sm:$0xff] }
 0xea8   :  { %v1958_v20 = vunpack.c.l.bf16 %v1956_v0  ;;  %v1959_v24 = vunpack.c.h.bf16 %v1956_v0 }
 0xea9   :  { %2085 = vmatpush1.bf16.msra.mxu0 %v3649_v2  ;;  %2126 = vmatpush1.bf16.msra.mxu1 %v3652_v3  ;;  %v1957_v2 = vld [vmem:[#allocation4 + $0xe8] sm:$0xff] }
 0xeaa   :  { %2086 = vmatprep.subr.bf16.mxu0 %v3655_v29  ;;  %2127 = vmatprep.subr.bf16.mxu1 %v3658_v19 }
 0xead   :  { %2087 = vmatpush1.bf16.msra.mxu0 %v3661_v31  ;;  %2128 = vmatpush1.bf16.msra.mxu1 %v3664_v34 }
 0xeae   :  { %2088 = vmatprep.subr.bf16.mxu0 %v3667_v56  ;;  %2129 = vmatprep.subr.bf16.mxu1 %v3670_v33 }
 0xeb1   :  { %2089 = vmatpush1.bf16.msra.mxu0 %v3673_v35  ;;  %2130 = vmatpush1.bf16.msra.mxu1 %v3676_v25 }
 0xeb2   :  { %2090 = vmatprep.subr.bf16.mxu0 %v3679_v36  ;;  %2131 = vmatprep.subr.bf16.mxu1 %v3682_v40  ;;  %v1961_v36 = vunpack.c.h.bf16 %v1957_v2 }
 0xeb5   :  { %2091 = vmatpush1.bf16.msra.mxu0 %v3685_v41  ;;  %2132 = vmatpush1.bf16.msra.mxu1 %v3688_v42  ;;  %v1960_v41 = vunpack.c.l.bf16 %v1957_v2 }
 0xeb6   :  { %2092 = vmatprep.subr.bf16.mxu0 %v3691_v11  ;;  %2133 = vmatprep.subr.bf16.mxu1 %v3694_v32 }
 0xeb9   :  { %2093 = vmatpush1.bf16.msra.mxu0 %v3697_v12  ;;  %2134 = vmatpush1.bf16.msra.mxu1 %v3700_v14 }
 0xeba   :  { %2094 = vmatprep.subr.bf16.mxu0 %v3703_v15  ;;  %2135 = vmatprep.subr.bf16.mxu1 %v3706_v16 }
 0xebd   :  { %2095 = vmatpush1.bf16.msra.mxu0 %v3709_v46  ;;  %2136 = vmatpush1.bf16.msra.mxu1 %v3712_v47 }
 0xebe   :  { %2096 = vmatprep.subr.bf16.mxu0 %v3715_v1  ;;  %2137 = vmatprep.subr.bf16.mxu1 %v3718_v6 }
 0xec1   :  { %2097 = vmatpush1.bf16.msra.mxu0 %v3721_v48  ;;  %2138 = vmatpush1.bf16.msra.mxu1 %v3724_v37 }
 0xf77   :  { %v1996_v26 = vpop.f32.mrb[56].mxu0  ;;  %v2037_v27 = vpop.f32.mrb[56].mxu1 }
 0xf78   :  { %v2044_v28 = vadd.f32 %v1996_v26, %v1958_v20  ;;  %v1998_v3 = vpop.f32.mrb[57].mxu0  ;;  %v2039_v29 = vpop.f32.mrb[57].mxu1  ;;  %v2046_v11 = vadd.f32 %v2037_v27, %v1960_v41 }
 0xf79   :  { %v2045_v19 = vadd.f32 %v1998_v3, %v1959_v24  ;;  %v2000_v31 = vpop.f32.mrb[58].mxu0  ;;  %v2041_v34 = vpop.f32.mrb[58].mxu1  ;;  %v2047_v40 = vadd.f32 %v2039_v29, %v1961_v36 }
 0xf7a   :  { %v2322_v56 = vmul.f32 -1.442695, %v2044_v28  ;;  %v2001_v33 = vpop.f32.mrb[59].mxu0  ;;  %v2042_v35 = vpop.f32.mrb[59].mxu1 }
 0xf7b   :  { %v2323_v25 = vmul.f32 -1.442695, %v2045_v19  ;;  %v2324_v42 = vmul.f32 -1.442695, %v2047_v40 }
 0xf7c   :  { %2612 = vpow2.f32 %v2322_v56 }
 0xf7d   :  { %2614 = vpow2.f32 %v2323_v25 }
 0xf7e   :  { %2616 = vpow2.f32 %v2324_v42 }
 0xf7f   :  { %2618 = vtanh.f32 %v2046_v11 }
 0xf86   :  { %v2613_v32 = vpop.eup %2612 }
 0xf87   :  { %v2615_v12 = vpop.eup %2614  ;;  %v2051_v14 = vadd.f32 1.0, %v2613_v32 }
 0xf88   :  { %v2057_v15 = vadd.f32 1.0, %v2615_v12  ;;  %v2617_v16 = vpop.eup %2616 }
 0xf89   :  { %2620 = vrcp.f32 %v2051_v14  ;;  %v2619_v46 = vpop.eup %2618  ;;  %v2064_v48 = vadd.f32 1.0, %v2617_v16 }
 0xf8a   :  { %2622 = vrcp.f32 %v2057_v15 }
 0xf8b   :  { %2624 = vrcp.f32 %v2064_v48 }
 0xf93   :  { %v2621_v47 = vpop.eup %2620 }
 0xf94   :  { %v2623_v1 = vpop.eup %2622  ;;  %v2068_v6 = vmul.f32 %v2621_v47, %v2619_v46 }
 0xf95   :  { %v2067_v37 = vmul.f32 %v2623_v1, %v3730_v49  ;;  %v2625_v55 = vpop.eup %2624 }
 0xf97   :  { %v2069_v44 = vadd.f32 %v2068_v6, %v2067_v37 }
 0xf99   :  { %2626 = vtanh.f32 %v2069_v44 }
 0xfa3   :  { %v2627_v57 = vpop.eup %2626 }
 0xfa4   :  { %v2071_v58 = vmul.f32 %v2627_v57, %v2625_v55 }
 0xfa6   :  { %v2072_v59 = vpack.c.bf16 %v2071_v58, %v2071_v58 }
 0xfa8   :  { %2074 = vst [vmem:[#allocation12 + $0x38] sm:$0xf] %v2072_v59  ;;  %2115 = vmatmul.mubr.bf16.vlgmr.msra.gmra.mrb[60].mxu0 %v2072_v59  ;;  %2156 = vmatmul.mubr.bf16.vlgmr.msra.gmra.mrb[60].mxu1 %v2072_v59 }
0x107b   :  { %v2116_v62 = vpop.f32.mrb[60].mxu0  ;;  %v2157_v63 = vpop.f32.mrb[60].mxu1 }
0x107c   :  { %v2164_v30 = vadd.f32 %v2116_v62, %v2078_v50  ;;  %v2118_v43 = vpop.f32.mrb[61].mxu0  ;;  %v2159_v45 = vpop.f32.mrb[61].mxu1  ;;  %v2166_v23 = vadd.f32 %v2157_v63, %v2080_v21 }
0x107d   :  { %v2165_v5 = vadd.f32 %v2118_v43, %v2079_v61  ;;  %v2120_v7 = vpop.f32.mrb[62].mxu0  ;;  %v2161_v8 = vpop.f32.mrb[62].mxu1  ;;  %v2167_v18 = vadd.f32 %v2159_v45, %v2081_v38 }
0x107e   :  { %v2325_v9 = vmul.f32 -1.442695, %v2164_v30  ;;  %v2121_v10 = vpop.f32.mrb[63].mxu0  ;;  %v2162_v39 = vpop.f32.mrb[63].mxu1 }
0x107f   :  { %v2326_v17 = vmul.f32 -1.442695, %v2165_v5  ;;  %v2327_v22 = vmul.f32 -1.442695, %v2167_v18 }
0x1080   :  { %2628 = vpow2.f32 %v2325_v9 }
0x1081   :  { %2630 = vpow2.f32 %v2326_v17 }
0x1082   :  { %2632 = vpow2.f32 %v2327_v22 }
0x1083   :  { %2634 = vtanh.f32 %v2166_v23 }
0x108a   :  { %v2629_v13 = vpop.eup %2628 }
0x108b   :  { %v2631_v49 = vpop.eup %2630  ;;  %v2171_v51 = vadd.f32 1.0, %v2629_v13 }
0x108c   :  { %v2177_v52 = vadd.f32 1.0, %v2631_v49  ;;  %v2633_v53 = vpop.eup %2632 }
0x108d   :  { %2636 = vrcp.f32 %v2171_v51  ;;  %v2635_v54 = vpop.eup %2634  ;;  %v2184_v26 = vadd.f32 1.0, %v2633_v53 }
0x108e   :  { %2638 = vrcp.f32 %v2177_v52 }
0x108f   :  { %2640 = vrcp.f32 %v2184_v26 }
0x1097   :  { %v2637_v0 = vpop.eup %2636 }
0x1098   :  { %v2639_v20 = vpop.eup %2638  ;;  %v2188_v24 = vmul.f32 %v2637_v0, %v2635_v54 }
0x1099   :  { %v2187_v27 = vmul.f32 %v2639_v20, %v2069_v44  ;;  %v2641_v2 = vpop.eup %2640 }
0x109b   :  { %v2189_v28 = vadd.f32 %v2188_v24, %v2187_v27 }
0x109d   :  { %2642 = vtanh.f32 %v2189_v28  ;;  %2201 = vst [vmem:[#allocation15] sm:$0xff] %v2189_v28 }
0x10a7   :  { %v2643_v3 = vpop.eup %2642 }
0x10a8   :  { %v2191_v29 = vmul.f32 %v2643_v3, %v2641_v2 }
0x10aa   :  { %v2192_v19 = vpack.c.bf16 %v2191_v29, %v2191_v29  ;;  %2200 = vst [vmem:[#allocation13] sm:$0xff] %v2191_v29 }
0x10ab   :  { %2807 = shalt.err (!%p2804_p8)
}
0x10ac   :  { %s2808_s28 = scalar_lea.hbm %s3821_s5, 128 }
0x10ad   :  { %p2809_p9 = scmp.ne.s32.totalorder %s3821_s5, %s2808_s28  ;;  %p2812_p10 = scmp.lt.u32.totalorder %s2808_s28, %s3821_s5 }
0x10af   :  { %p2814_p11 = pnand %p2812_p10, %p2809_p9 }
0x10b1   :  { %2817 = shalt.err (!%p2814_p11)
}
0x10b2   :  { %2223 = dma.vmem_to_hbm [thread:$0]  %s2221_s20, 128, %s3821_s5, [#allocation14]   ;;  %2194 = vst [vmem:[#allocation12 + $0x3c] sm:$0xf] %v2192_v19 }
0x10b3   :  { %s2818_s24 = scalar_lea.vmem %s3768_s23, 128  ;;  %p2823_p13 = scmp.lt.s32.totalorder %s3768_s23, %s3768_s23 }
0x10b4   :  { %p2819_p12 = scmp.ne.s32.totalorder %s3768_s23, %s2818_s24  ;;  %p2824_p0 = scmp.lt.s32.totalorder %s2818_s24, %s2818_s24 }
0x10b6   :  { %p2825_p1 = por %p2824_p0, %p2823_p13 }
0x10b8   :  { %p2826_p2 = pnand %p2825_p1, %p2819_p12 }
0x10ba   :  { %2829 = shalt.err (!%p2826_p2)
}
0x10bb   :  { %s2830_s12 = scalar_lea.hbm %s3822_s6, 128 }
0x10bc   :  { %p2831_p3 = scmp.ne.s32.totalorder %s3822_s6, %s2830_s12  ;;  %p2834_p4 = scmp.lt.u32.totalorder %s2830_s12, %s3822_s6 }
0x10be   :  { %p2836_p5 = pnand %p2834_p4, %p2831_p3 }
0x10c0   :  { %2839 = shalt.err (!%p2836_p5)
}
0x10c1   :  { %2233 = dma.vmem_to_hbm [thread:$0]  %s3768_s23, 128, %s3822_s6, [#allocation14]  }
0x10c2   :  { %s2840_s18 = scalar_lea.vmem %s3766_s21, 1024  ;;  %p2845_p7 = scmp.lt.s32.totalorder %s3766_s21, %s3766_s21 }
0x10c3   :  { %p2841_p6 = scmp.ne.s32.totalorder %s3766_s21, %s2840_s18  ;;  %p2846_p8 = scmp.lt.s32.totalorder %s2840_s18, %s2840_s18 }
0x10c5   :  { %p2847_p9 = por %p2846_p8, %p2845_p7 }
0x10c7   :  { %p2848_p10 = pnand %p2847_p9, %p2841_p6 }
0x10c9   :  { %2851 = shalt.err (!%p2848_p10)
}
0x10ca   :  { %s2852_s3 = scalar_lea.hbm %s3820_s4, 1024 }
0x10cb   :  { %p2853_p11 = scmp.ne.s32.totalorder %s3820_s4, %s2852_s3  ;;  %p2856_p12 = scmp.lt.u32.totalorder %s2852_s3, %s3820_s4 }
0x10cd   :  { %p2858_p13 = pnand %p2856_p12, %p2853_p11 }
0x10cf   :  { %2861 = shalt.err (!%p2858_p13)
}
0x10d0   :  { %s2882_s6 = smov 64   ;;  %s2883_s23 = smov 4  }
0x10d1   :  { %2213 = dma.vmem_to_hbm [thread:$0]  %s3766_s21, 1024, %s3820_s4, [#allocation6], %s2882_s6, %s2882_s6, %s2883_s23  }
0x10d2   :  { %2868 = dma.done.wait [#allocation6], 1024  }
0x10d3   :  { %2869 = vsyncadd [#allocation6], 4294966272 }
0x10d4   :  { %2870 = dma.done.wait [#allocation14], 256  }
0x10d5   :  { %2871 = vsyncadd [#allocation14], 4294967040 }
0x10d6   :  { %2243 = vsyncpa [#allocation5], 1 }
0x10d7   :  { %2244 = vsyncpa [#allocation8], 1 }
0x10d8   :  { %2245 = vsyncpa [#allocation11], 1 }
0x10d9   :  { %2246 = vsyncpa [#allocation6], 1 }
0x10da   :  { %2247 = vsyncpa [#allocation14], 1 }

</bundles_post_ra>
